<compile_context>
chip_gen: v5e
topology: v5e:2x2
jax: 0.10.0
libtpu: 0.0.40
codegen_flags: <defaults>
</compile_context>

<pallas_src>
import numpy as np
import jax
import jax.numpy as jnp
from jax.experimental import pallas as pl
from jax.experimental.pallas import tpu as pltpu

NV = 778            # number of MANO vertices
NV_PAD = 896        # padded to 7*128 so the vertex axis is lane-dense
NJ = 16             # number of MANO kinematic joints
MANO_PARENTS = np.array([-1, 0, 1, 2, 0, 4, 5, 0, 7, 8, 0, 10, 11, 0, 13, 14])
TIP_VERT_IDS = [745, 317, 444, 556, 673]   # thumb/index/middle/ring/pinky tips
JOINT_REORDER = [0, 13, 14, 15, 16, 1, 2, 3, 17, 4, 5, 6, 18, 10, 11, 12, 19, 7, 8, 9, 20]

# Kinematic-chain levels (all MANO chains have depth 3 below the root).
_LEVEL1 = np.array([1, 4, 7, 10, 13])
_LEVEL2 = np.array([2, 5, 8, 11, 14])
_LEVEL3 = np.array([3, 6, 9, 12, 15])
_CHAIN_ORDER = np.concatenate([[0], _LEVEL1, _LEVEL2, _LEVEL3])
_CHAIN_INV = np.argsort(_CHAIN_ORDER)
_SAFE_PARENT = np.maximum(MANO_PARENTS, 0)


# ------------------------------ Pallas kernels -------------------------------

def _mlp_head_kernel(x_ref, w1_ref, b1_ref, w2_ref, b2_ref, wh_ref, bh_ref, out_ref):
    """h = relu(x W1 + b1); h = relu(h W2 + b2); out = h W_head + b_head (single 128-lane head)."""
    x = x_ref[...].astype(jnp.bfloat16)
    h = jnp.maximum(
        jnp.dot(x, w1_ref[...], preferred_element_type=jnp.float32) + b1_ref[...], 0.0)
    h = jnp.maximum(
        jnp.dot(h.astype(jnp.bfloat16), w2_ref[...], preferred_element_type=jnp.float32)
        + b2_ref[...], 0.0)
    out_ref[...] = (jnp.dot(h.astype(jnp.bfloat16), wh_ref[...],
                            preferred_element_type=jnp.float32) + bh_ref[...])


def mano_mlp_head(x, p):
    B = x.shape[0]
    H = p["wh"].shape[1]
    return pl.pallas_call(
        _mlp_head_kernel,
        out_shape=jax.ShapeDtypeStruct((B, H), jnp.float32),
    )(x, p["w1"], p["b1"], p["w2"], p["b2"], p["wh"], p["bh"])


def _blend_skin_kernel(bp_ref, m_ref, dirs_ref, vtmpl_ref, wt_ref, out_ref):
    """Fused blendshapes + linear blend skinning, whole batch in one call.

    bp_ref   : (B, 145)        [betas(10) | pose_feature(135)]
    m_ref    : (B*12, 16)      per-batch LBS transforms, row b*12 + 4r + c = A[b, :, r, c]
    dirs_ref : (145, 3*NV_PAD) [shapedirs; posedirs], column index d*NV_PAD + v  (bf16)
    vtmpl_ref: (1, 3*NV_PAD)   template vertices, same layout                     (f32)
    wt_ref   : (16, NV_PAD)    skinning weights transposed, zero-padded past NV   (bf16)
    out_ref  : (B, 3*NV_PAD)   skinned vertices, row-layout r*NV_PAD + v
    """
    B = bp_ref.shape[0]
    NVP = wt_ref.shape[1]
    # v_posed (blendshapes): one K=145 MXU push, lane-dense (3*NV_PAD = 21*128) output.
    vp = vtmpl_ref[...] + jnp.dot(bp_ref[...].astype(jnp.bfloat16), dirs_ref[...],
                                  preferred_element_type=jnp.float32)          # (B, 3*NVP)
    # Blended per-vertex transform entries: T[b*12+4r+c, v] = sum_j A[b,j,r,c] * w[v,j].
    T = jnp.dot(m_ref[...].astype(jnp.bfloat16), wt_ref[...],
                preferred_element_type=jnp.float32)                            # (B*12, NVP)
    for b in range(B):
        vx = vp[b:b + 1, 0 * NVP:1 * NVP]
        vy = vp[b:b + 1, 1 * NVP:2 * NVP]
        vz = vp[b:b + 1, 2 * NVP:3 * NVP]
        for r in range(3):
            base = b * 12 + 4 * r
            # homogeneous 4th component == 1 -> translation column added as constant term.
            row = (T[base + 0:base + 1] * vx + T[base + 1:base + 2] * vy
                   + T[base + 2:base + 3] * vz + T[base + 3:base + 4])
            out_ref[b:b + 1, r * NVP:(r + 1) * NVP] = row


def mano_blend_skin(bp, M, mano):
    B = bp.shape[0]
    NVP = mano["wT"].shape[1]
    return pl.pallas_call(
        _blend_skin_kernel,
        out_shape=jax.ShapeDtypeStruct((B, 3 * NVP), jnp.float32),
    )(bp, M, mano["dirs"], mano["vtmpl"], mano["wT"])


# ------------------------------ plain-JAX glue --------------------------------

def rodrigues(axisang):
    """(N, 3) axis-angle -> (N, 3, 3) rotation matrices."""
    theta = jnp.sqrt(jnp.sum(axisang * axisang, axis=-1)) + 1e-8
    k = axisang / theta[:, None]
    kx, ky, kz = k[:, 0], k[:, 1], k[:, 2]
    z = jnp.zeros_like(kx)
    K = jnp.stack([z, -kz, ky, kz, z, -kx, -ky, kx, z], axis=-1).reshape(-1, 3, 3)
    ct = jnp.cos(theta)[:, None, None]
    st = jnp.sin(theta)[:, None, None]
    kk = k[:, :, None] * k[:, None, :]
    return ct * jnp.eye(3, dtype=jnp.float32)[None] + st * K + (1.0 - ct) * kk


def mano_layer_forward(head, mano, ncomps, center_idx):
    B = head.shape[0]
    npd = ncomps + 3
    # Head column layout: [pca_pose(npd) | hand45 | shape(10) | J(48) | pad].
    pose = head[:, :npd]
    hand45 = head[:, npd:npd + 45]                 # hands_mean + PCA recomposition, pre-folded
    shape = head[:, npd + 45:npd + 55]
    J = head[:, npd + 55:npd + 103].reshape(B, NJ, 3)   # rest-pose joints, pre-folded regressor

    full_pose = jnp.concatenate([pose[:, :3], hand45], axis=1)            # (B, 48)
    rot = rodrigues(full_pose.reshape(-1, 3)).reshape(B, NJ, 3, 3)
    pose_feat = (rot[:, 1:] - jnp.eye(3, dtype=jnp.float32)[None, None]).reshape(B, 15 * 9)

    # Forward kinematics, vectorized level-by-level (chain depth 3).
    rel_t = J - J[:, _SAFE_PARENT]
    rel_t = rel_t.at[:, 0].set(J[:, 0])
    top = jnp.concatenate([rot, rel_t[..., None]], axis=-1)               # (B,16,3,4)
    bot = jnp.broadcast_to(jnp.array([0., 0., 0., 1.], jnp.float32), (B, NJ, 1, 4))
    G_local = jnp.concatenate([top, bot], axis=2)                          # (B,16,4,4)
    g0 = G_local[:, 0]
    g1 = jnp.einsum("bij,bkjl->bkil", g0, G_local[:, _LEVEL1])
    g2 = jnp.einsum("bkij,bkjl->bkil", g1, G_local[:, _LEVEL2])
    g3 = jnp.einsum("bkij,bkjl->bkil", g2, G_local[:, _LEVEL3])
    G = jnp.concatenate([g0[:, None], g1, g2, g3], axis=1)[:, _CHAIN_INV]  # (B,16,4,4)
    posed_joints = G[:, :, :3, 3]                                          # (B,16,3)

    # LBS "A" transforms (rest pose removed), flattened for the skin kernel (row = b*12+4r+c).
    A_rot = G[:, :, :3, :3]
    A_t = posed_joints - jnp.einsum("bkij,bkj->bki", A_rot, J)
    A_top = jnp.concatenate([A_rot, A_t[..., None]], axis=-1)              # (B,16,3,4)
    M = jnp.transpose(A_top, (0, 2, 3, 1)).reshape(B * 12, NJ)

    # Fused blendshapes + skinning (Pallas kernel B).
    bp = jnp.concatenate([shape, pose_feat], axis=1)                       # (B,145)
    out = mano_blend_skin(bp, M, mano)                                     # (B, 3*NV_PAD)
    verts = jnp.transpose(out.reshape(B, 3, NV_PAD)[:, :, :NV], (0, 2, 1))  # (B,778,3)

    # 21 joints = 16 kinematic + 5 fingertips, reordered to the standard layout.
    tips = verts[:, jnp.array(TIP_VERT_IDS)]
    joints = jnp.concatenate([posed_joints, tips], axis=1)[:, jnp.array(JOINT_REORDER)]

    center = joints[:, center_idx:center_idx + 1]
    return verts - center, joints - center, full_pose, pose, shape


def mano_branch_forward(feature, params, mano, ncomps, center_idx):
    head = mano_mlp_head(feature, params)                                  # Pallas kernel A
    verts, joints, full_pose, pose, shape = mano_layer_forward(head, mano, ncomps, center_idx)
    return {"hand_verts_3d": verts, "joints_3d": joints, "mano_shape": shape,
            "mano_pca_pose": pose, "mano_full_pose": full_pose}


# ------------------------------ parameter init --------------------------------

def _linear(key, fan_in, fan_out):
    k1, k2 = jax.random.split(key)
    bound = 1.0 / np.sqrt(fan_in)
    w = jax.random.uniform(k1, (fan_in, fan_out), jnp.float32, -bound, bound)
    b = jax.random.uniform(k2, (1, fan_out), jnp.float32, -bound, bound)
    return w, b


def init_params_and_assets(key, inp_dim, ncomps):
    kp, km = jax.random.split(key)

    # Raw linear layers (PyTorch-style init).
    ks = jax.random.split(kp, 4)
    w1, b1 = _linear(ks[0], inp_dim, 512)
    w2, b2 = _linear(ks[1], 512, 512)
    wp, bpo = _linear(ks[2], 512, ncomps + 3)       # pose_reg (use_pca=True -> ncomps + 3)
    ws, bs = _linear(ks[3], 512, 10)                # shape_reg

    # MANO assets (random deterministic stand-ins for the pickled assets).
    ka = jax.random.split(km, 7)
    v_template = jax.random.normal(ka[0], (NV, 3), jnp.float32) * 0.05
    shapedirs = jax.random.normal(ka[1], (NV, 3, 10), jnp.float32) * 0.01
    posedirs = jax.random.normal(ka[2], (NV, 3, 135), jnp.float32) * 0.001
    J_regressor = jax.nn.softmax(jax.random.normal(ka[3], (NJ, NV), jnp.float32), axis=-1)
    lbs_weights = jax.nn.softmax(jax.random.normal(ka[4], (NV, NJ), jnp.float32) * 2.0, axis=-1)
    hands_components = jax.random.normal(ka[5], (45, 45), jnp.float32) * 0.1
    hands_mean = jax.random.normal(ka[6], (45,), jnp.float32) * 0.1
    comps = hands_components[:ncomps]

    # Fold PCA recomposition + hands_mean + joint regression into one fused head (all linear).
    npd = ncomps + 3
    w_hand = wp[:, 3:] @ comps                                   # (512,45)
    b_hand = bpo[:, 3:] @ comps + hands_mean[None]               # (1,45)
    j_sdirs = jnp.einsum("jv,vdk->kjd", J_regressor, shapedirs).reshape(10, NJ * 3)
    j_tmpl = (J_regressor @ v_template).reshape(1, NJ * 3)
    w_j = ws @ j_sdirs                                           # (512,48)
    b_j = bs @ j_sdirs + j_tmpl                                  # (1,48)
    w_head = jnp.concatenate([wp, w_hand, ws, w_j], axis=1)      # (512, npd+103)
    b_head = jnp.concatenate([bpo, b_hand, bs, b_j], axis=1)
    total = npd + 103
    head_w = ((total + 127) // 128) * 128                        # pad head to lane-dense width
    w_head = jnp.pad(w_head, ((0, 0), (0, head_w - total)))
    b_head = jnp.pad(b_head, ((0, 0), (0, head_w - total)))

    params = dict(
        w1=w1.astype(jnp.bfloat16), b1=b1,
        w2=w2.astype(jnp.bfloat16), b2=b2,
        wh=w_head.astype(jnp.bfloat16), bh=b_head,
    )

    # Blend + skin assets: vertex axis on lanes, padded 778 -> 896, layout [d*NV_PAD + v].
    sd = jnp.transpose(shapedirs, (2, 1, 0))                     # (10, 3, NV)
    pd = jnp.transpose(posedirs, (2, 1, 0))                      # (135, 3, NV)
    dirs = jnp.concatenate([sd, pd], axis=0)                     # (145, 3, NV)
    dirs = jnp.pad(dirs, ((0, 0), (0, 0), (0, NV_PAD - NV))).reshape(145, 3 * NV_PAD)
    vt = jnp.pad(v_template.T, ((0, 0), (0, NV_PAD - NV))).reshape(1, 3 * NV_PAD)
    wT = jnp.pad(lbs_weights.T, ((0, 0), (0, NV_PAD - NV)))      # (16, NV_PAD)

    mano = dict(dirs=dirs.astype(jnp.bfloat16),
                vtmpl=vt.astype(jnp.float32),
                wT=wT.astype(jnp.bfloat16))
    return params, mano


# ----------------------------------- main --------------------------------------

if __name__ == "__main__":
    B, INPUT_DIM, NCOMPS, CENTER_IDX = 4, 256, 15, 9

    key = jax.random.PRNGKey(0)
    k_feat, k_init = jax.random.split(key)

    feature = jax.random.normal(k_feat, (B, INPUT_DIM), jnp.float32)
    params, mano = init_params_and_assets(k_init, INPUT_DIM, NCOMPS)

    fwd = jax.jit(lambda f: mano_branch_forward(f, params, mano, NCOMPS, CENTER_IDX))
    out = fwd(feature)
    jax.block_until_ready(out)

    assert out["hand_verts_3d"].shape == (B, NV, 3)
    assert out["joints_3d"].shape == (B, 21, 3)
    assert out["mano_shape"].shape == (B, 10)
    assert out["mano_pca_pose"].shape == (B, NCOMPS + 3)
    assert out["mano_full_pose"].shape == (B, 48)
    assert all(bool(jnp.all(jnp.isfinite(v))) for v in out.values())

    print("KERNEL_OK")
</pallas_src>

<mosaic_0001>
module attributes {stable_mosaic.version = 11 : i64} {
  func.func @_mlp_head_kernel(%arg0: memref<4x256xf32, #tpu.memory_space<vmem>>, %arg1: memref<256x512xbf16, #tpu.memory_space<vmem>>, %arg2: memref<1x512xf32, #tpu.memory_space<vmem>>, %arg3: memref<512x512xbf16, #tpu.memory_space<vmem>>, %arg4: memref<1x512xf32, #tpu.memory_space<vmem>>, %arg5: memref<512x128xbf16, #tpu.memory_space<vmem>>, %arg6: memref<1x128xf32, #tpu.memory_space<vmem>>, %arg7: memref<4x128xf32, #tpu.memory_space<vmem>>) attributes {dimension_semantics = [], scalar_prefetch = 0 : i64, scratch_operands = 0 : i64, tpu.core_type = #tpu.core_type<tc>} {
    %c0 = arith.constant 0 : index
    %c0_0 = arith.constant 0 : index
    %0 = vector.load %arg0[%c0, %c0_0] : memref<4x256xf32, #tpu.memory_space<vmem>>, vector<4x256xf32>
    %1 = arith.truncf %0 : vector<4x256xf32> to vector<4x256xbf16>
    %c0_1 = arith.constant 0 : index
    %c0_2 = arith.constant 0 : index
    %2 = vector.load %arg1[%c0_1, %c0_2] : memref<256x512xbf16, #tpu.memory_space<vmem>>, vector<256x512xbf16>
    %cst = arith.constant dense<0.000000e+00> : vector<4x512xf32>
    %3 = tpu.matmul %1, %2, %cst {dimension_numbers = #tpu.dot_dimension_numbers<[1], [0], [0], [1], [0, 0, 1, 1], [], []>} : vector<4x256xbf16>, vector<256x512xbf16>, vector<4x512xf32> -> vector<4x512xf32>
    %c0_3 = arith.constant 0 : index
    %c0_4 = arith.constant 0 : index
    %4 = vector.load %arg2[%c0_3, %c0_4] : memref<1x512xf32, #tpu.memory_space<vmem>>, vector<1x512xf32>
    %5 = vector.broadcast %4 : vector<1x512xf32> to vector<4x512xf32>
    %6 = arith.addf %3, %5 : vector<4x512xf32>
    %cst_5 = arith.constant 0.000000e+00 : f32
    %7 = vector.broadcast %cst_5 : f32 to vector<4x512xf32>
    %8 = arith.maximumf %6, %7 : vector<4x512xf32>
    %9 = arith.truncf %8 : vector<4x512xf32> to vector<4x512xbf16>
    %c0_6 = arith.constant 0 : index
    %c0_7 = arith.constant 0 : index
    %10 = vector.load %arg3[%c0_6, %c0_7] : memref<512x512xbf16, #tpu.memory_space<vmem>>, vector<512x512xbf16>
    %cst_8 = arith.constant dense<0.000000e+00> : vector<4x512xf32>
    %11 = tpu.matmul %9, %10, %cst_8 {dimension_numbers = #tpu.dot_dimension_numbers<[1], [0], [0], [1], [0, 0, 1, 1], [], []>} : vector<4x512xbf16>, vector<512x512xbf16>, vector<4x512xf32> -> vector<4x512xf32>
    %c0_9 = arith.constant 0 : index
    %c0_10 = arith.constant 0 : index
    %12 = vector.load %arg4[%c0_9, %c0_10] : memref<1x512xf32, #tpu.memory_space<vmem>>, vector<1x512xf32>
    %13 = vector.broadcast %12 : vector<1x512xf32> to vector<4x512xf32>
    %14 = arith.addf %11, %13 : vector<4x512xf32>
    %cst_11 = arith.constant 0.000000e+00 : f32
    %15 = vector.broadcast %cst_11 : f32 to vector<4x512xf32>
    %16 = arith.maximumf %14, %15 : vector<4x512xf32>
    %17 = arith.truncf %16 : vector<4x512xf32> to vector<4x512xbf16>
    %c0_12 = arith.constant 0 : index
    %c0_13 = arith.constant 0 : index
    %18 = vector.load %arg5[%c0_12, %c0_13] : memref<512x128xbf16, #tpu.memory_space<vmem>>, vector<512x128xbf16>
    %cst_14 = arith.constant dense<0.000000e+00> : vector<4x128xf32>
    %19 = tpu.matmul %17, %18, %cst_14 {dimension_numbers = #tpu.dot_dimension_numbers<[1], [0], [0], [1], [0, 0, 1, 1], [], []>} : vector<4x512xbf16>, vector<512x128xbf16>, vector<4x128xf32> -> vector<4x128xf32>
    %c0_15 = arith.constant 0 : index
    %c0_16 = arith.constant 0 : index
    %20 = vector.load %arg6[%c0_15, %c0_16] : memref<1x128xf32, #tpu.memory_space<vmem>>, vector<1x128xf32>
    %21 = vector.broadcast %20 : vector<1x128xf32> to vector<4x128xf32>
    %22 = arith.addf %19, %21 : vector<4x128xf32>
    %c0_17 = arith.constant 0 : index
    %c0_18 = arith.constant 0 : index
    %23 = vector.load %arg7[%c0_17, %c0_18] : memref<4x128xf32, #tpu.memory_space<vmem>>, vector<4x128xf32>
    tpu.vector_store %arg7[%c0_17, %c0_18], %22 {strides = array<i32>} : memref<4x128xf32, #tpu.memory_space<vmem>>, vector<4x128xf32>,
    return
  }
}

module attributes {stable_mosaic.version = 11 : i64} {
  func.func @_blend_skin_kernel(%arg0: memref<4x145xf32, #tpu.memory_space<vmem>>, %arg1: memref<48x16xf32, #tpu.memory_space<vmem>>, %arg2: memref<145x2688xbf16, #tpu.memory_space<vmem>>, %arg3: memref<1x2688xf32, #tpu.memory_space<vmem>>, %arg4: memref<16x896xbf16, #tpu.memory_space<vmem>>, %arg5: memref<4x2688xf32, #tpu.memory_space<vmem>>) attributes {dimension_semantics = [], scalar_prefetch = 0 : i64, scratch_operands = 0 : i64, tpu.core_type = #tpu.core_type<tc>} {
    %c0 = arith.constant 0 : index
    %c0_0 = arith.constant 0 : index
    %0 = vector.load %arg3[%c0, %c0_0] : memref<1x2688xf32, #tpu.memory_space<vmem>>, vector<1x2688xf32>
    %c0_1 = arith.constant 0 : index
    %c0_2 = arith.constant 0 : index
    %1 = vector.load %arg0[%c0_1, %c0_2] : memref<4x145xf32, #tpu.memory_space<vmem>>, vector<4x145xf32>
    %2 = arith.truncf %1 : vector<4x145xf32> to vector<4x145xbf16>
    %c0_3 = arith.constant 0 : index
    %c0_4 = arith.constant 0 : index
    %3 = vector.load %arg2[%c0_3, %c0_4] : memref<145x2688xbf16, #tpu.memory_space<vmem>>, vector<145x2688xbf16>
    %cst = arith.constant dense<0.000000e+00> : vector<4x2688xf32>
    %4 = tpu.matmul %2, %3, %cst {dimension_numbers = #tpu.dot_dimension_numbers<[1], [0], [0], [1], [0, 0, 1, 1], [], []>} : vector<4x145xbf16>, vector<145x2688xbf16>, vector<4x2688xf32> -> vector<4x2688xf32>
    %5 = vector.broadcast %0 : vector<1x2688xf32> to vector<4x2688xf32>
    %6 = arith.addf %5, %4 : vector<4x2688xf32>
    %c0_5 = arith.constant 0 : index
    %c0_6 = arith.constant 0 : index
    %7 = vector.load %arg1[%c0_5, %c0_6] : memref<48x16xf32, #tpu.memory_space<vmem>>, vector<48x16xf32>
    %8 = arith.truncf %7 : vector<48x16xf32> to vector<48x16xbf16>
    %c0_7 = arith.constant 0 : index
    %c0_8 = arith.constant 0 : index
    %9 = vector.load %arg4[%c0_7, %c0_8] : memref<16x896xbf16, #tpu.memory_space<vmem>>, vector<16x896xbf16>
    %cst_9 = arith.constant dense<0.000000e+00> : vector<48x896xf32>
    %10 = tpu.matmul %8, %9, %cst_9 {dimension_numbers = #tpu.dot_dimension_numbers<[1], [0], [0], [1], [0, 0, 1, 1], [], []>} : vector<48x16xbf16>, vector<16x896xbf16>, vector<48x896xf32> -> vector<48x896xf32>
    %11 = vector.extract_strided_slice %6 {offsets = [0, 0], sizes = [1, 896], strides = [1, 1]} : vector<4x2688xf32> to vector<1x896xf32>
    %12 = vector.extract_strided_slice %6 {offsets = [0, 896], sizes = [1, 896], strides = [1, 1]} : vector<4x2688xf32> to vector<1x896xf32>
    %13 = vector.extract_strided_slice %6 {offsets = [0, 1792], sizes = [1, 896], strides = [1, 1]} : vector<4x2688xf32> to vector<1x896xf32>
    %14 = vector.extract_strided_slice %10 {offsets = [0, 0], sizes = [1, 896], strides = [1, 1]} : vector<48x896xf32> to vector<1x896xf32>
    %15 = arith.mulf %14, %11 : vector<1x896xf32>
    %16 = vector.extract_strided_slice %10 {offsets = [1, 0], sizes = [1, 896], strides = [1, 1]} : vector<48x896xf32> to vector<1x896xf32>
    %17 = arith.mulf %16, %12 : vector<1x896xf32>
    %18 = arith.addf %15, %17 : vector<1x896xf32>
    %19 = vector.extract_strided_slice %10 {offsets = [2, 0], sizes = [1, 896], strides = [1, 1]} : vector<48x896xf32> to vector<1x896xf32>
    %20 = arith.mulf %19, %13 : vector<1x896xf32>
    %21 = arith.addf %18, %20 : vector<1x896xf32>
    %22 = vector.extract_strided_slice %10 {offsets = [3, 0], sizes = [1, 896], strides = [1, 1]} : vector<48x896xf32> to vector<1x896xf32>
    %23 = arith.addf %21, %22 : vector<1x896xf32>
    %c0_10 = arith.constant 0 : index
    %c0_11 = arith.constant 0 : index
    %24 = vector.load %arg5[%c0_10, %c0_11] : memref<4x2688xf32, #tpu.memory_space<vmem>>, vector<1x896xf32>
    tpu.vector_store %arg5[%c0_10, %c0_11], %23 {strides = array<i32>} : memref<4x2688xf32, #tpu.memory_space<vmem>>, vector<1x896xf32>,
    %25 = vector.extract_strided_slice %10 {offsets = [4, 0], sizes = [1, 896], strides = [1, 1]} : vector<48x896xf32> to vector<1x896xf32>
    %26 = arith.mulf %25, %11 : vector<1x896xf32>
    %27 = vector.extract_strided_slice %10 {offsets = [5, 0], sizes = [1, 896], strides = [1, 1]} : vector<48x896xf32> to vector<1x896xf32>
    %28 = arith.mulf %27, %12 : vector<1x896xf32>
    %29 = arith.addf %26, %28 : vector<1x896xf32>
    %30 = vector.extract_strided_slice %10 {offsets = [6, 0], sizes = [1, 896], strides = [1, 1]} : vector<48x896xf32> to vector<1x896xf32>
    %31 = arith.mulf %30, %13 : vector<1x896xf32>
    %32 = arith.addf %29, %31 : vector<1x896xf32>
    %33 = vector.extract_strided_slice %10 {offsets = [7, 0], sizes = [1, 896], strides = [1, 1]} : vector<48x896xf32> to vector<1x896xf32>
    %34 = arith.addf %32, %33 : vector<1x896xf32>
    %c0_12 = arith.constant 0 : index
    %c896 = arith.constant 896 : index
    %35 = vector.load %arg5[%c0_12, %c896] : memref<4x2688xf32, #tpu.memory_space<vmem>>, vector<1x896xf32>
    tpu.vector_store %arg5[%c0_12, %c896], %34 {strides = array<i32>} : memref<4x2688xf32, #tpu.memory_space<vmem>>, vector<1x896xf32>,
    %36 = vector.extract_strided_slice %10 {offsets = [8, 0], sizes = [1, 896], strides = [1, 1]} : vector<48x896xf32> to vector<1x896xf32>
    %37 = arith.mulf %36, %11 : vector<1x896xf32>
    %38 = vector.extract_strided_slice %10 {offsets = [9, 0], sizes = [1, 896], strides = [1, 1]} : vector<48x896xf32> to vector<1x896xf32>
    %39 = arith.mulf %38, %12 : vector<1x896xf32>
    %40 = arith.addf %37, %39 : vector<1x896xf32>
    %41 = vector.extract_strided_slice %10 {offsets = [10, 0], sizes = [1, 896], strides = [1, 1]} : vector<48x896xf32> to vector<1x896xf32>
    %42 = arith.mulf %41, %13 : vector<1x896xf32>
    %43 = arith.addf %40, %42 : vector<1x896xf32>
    %44 = vector.extract_strided_slice %10 {offsets = [11, 0], sizes = [1, 896], strides = [1, 1]} : vector<48x896xf32> to vector<1x896xf32>
    %45 = arith.addf %43, %44 : vector<1x896xf32>
    %c0_13 = arith.constant 0 : index
    %c1792 = arith.constant 1792 : index
    %46 = vector.load %arg5[%c0_13, %c1792] : memref<4x2688xf32, #tpu.memory_space<vmem>>, vector<1x896xf32>
    tpu.vector_store %arg5[%c0_13, %c1792], %45 {strides = array<i32>} : memref<4x2688xf32, #tpu.memory_space<vmem>>, vector<1x896xf32>,
    %47 = vector.extract_strided_slice %6 {offsets = [1, 0], sizes = [1, 896], strides = [1, 1]} : vector<4x2688xf32> to vector<1x896xf32>
    %48 = vector.extract_strided_slice %6 {offsets = [1, 896], sizes = [1, 896], strides = [1, 1]} : vector<4x2688xf32> to vector<1x896xf32>
    %49 = vector.extract_strided_slice %6 {offsets = [1, 1792], sizes = [1, 896], strides = [1, 1]} : vector<4x2688xf32> to vector<1x896xf32>
    %50 = vector.extract_strided_slice %10 {offsets = [12, 0], sizes = [1, 896], strides = [1, 1]} : vector<48x896xf32> to vector<1x896xf32>
    %51 = arith.mulf %50, %47 : vector<1x896xf32>
    %52 = vector.extract_strided_slice %10 {offsets = [13, 0], sizes = [1, 896], strides = [1, 1]} : vector<48x896xf32> to vector<1x896xf32>
    %53 = arith.mulf %52, %48 : vector<1x896xf32>
    %54 = arith.addf %51, %53 : vector<1x896xf32>
    %55 = vector.extract_strided_slice %10 {offsets = [14, 0], sizes = [1, 896], strides = [1, 1]} : vector<48x896xf32> to vector<1x896xf32>
    %56 = arith.mulf %55, %49 : vector<1x896xf32>
    %57 = arith.addf %54, %56 : vector<1x896xf32>
    %58 = vector.extract_strided_slice %10 {offsets = [15, 0], sizes = [1, 896], strides = [1, 1]} : vector<48x896xf32> to vector<1x896xf32>
    %59 = arith.addf %57, %58 : vector<1x896xf32>
    %c1 = arith.constant 1 : index
    %c0_14 = arith.constant 0 : index
    %60 = vector.load %arg5[%c1, %c0_14] : memref<4x2688xf32, #tpu.memory_space<vmem>>, vector<1x896xf32>
    tpu.vector_store %arg5[%c1, %c0_14], %59 {strides = array<i32>} : memref<4x2688xf32, #tpu.memory_space<vmem>>, vector<1x896xf32>,
    %61 = vector.extract_strided_slice %10 {offsets = [16, 0], sizes = [1, 896], strides = [1, 1]} : vector<48x896xf32> to vector<1x896xf32>
    %62 = arith.mulf %61, %47 : vector<1x896xf32>
    %63 = vector.extract_strided_slice %10 {offsets = [17, 0], sizes = [1, 896], strides = [1, 1]} : vector<48x896xf32> to vector<1x896xf32>
    %64 = arith.mulf %63, %48 : vector<1x896xf32>
    %65 = arith.addf %62, %64 : vector<1x896xf32>
    %66 = vector.extract_strided_slice %10 {offsets = [18, 0], sizes = [1, 896], strides = [1, 1]} : vector<48x896xf32> to vector<1x896xf32>
    %67 = arith.mulf %66, %49 : vector<1x896xf32>
    %68 = arith.addf %65, %67 : vector<1x896xf32>
    %69 = vector.extract_strided_slice %10 {offsets = [19, 0], sizes = [1, 896], strides = [1, 1]} : vector<48x896xf32> to vector<1x896xf32>
    %70 = arith.addf %68, %69 : vector<1x896xf32>
    %c1_15 = arith.constant 1 : index
    %c896_16 = arith.constant 896 : index
    %71 = vector.load %arg5[%c1_15, %c896_16] : memref<4x2688xf32, #tpu.memory_space<vmem>>, vector<1x896xf32>
    tpu.vector_store %arg5[%c1_15, %c896_16], %70 {strides = array<i32>} : memref<4x2688xf32, #tpu.memory_space<vmem>>, vector<1x896xf32>,
    %72 = vector.extract_strided_slice %10 {offsets = [20, 0], sizes = [1, 896], strides = [1, 1]} : vector<48x896xf32> to vector<1x896xf32>
    %73 = arith.mulf %72, %47 : vector<1x896xf32>
    %74 = vector.extract_strided_slice %10 {offsets = [21, 0], sizes = [1, 896], strides = [1, 1]} : vector<48x896xf32> to vector<1x896xf32>
    %75 = arith.mulf %74, %48 : vector<1x896xf32>
    %76 = arith.addf %73, %75 : vector<1x896xf32>
    %77 = vector.extract_strided_slice %10 {offsets = [22, 0], sizes = [1, 896], strides = [1, 1]} : vector<48x896xf32> to vector<1x896xf32>
    %78 = arith.mulf %77, %49 : vector<1x896xf32>
    %79 = arith.addf %76, %78 : vector<1x896xf32>
    %80 = vector.extract_strided_slice %10 {offsets = [23, 0], sizes = [1, 896], strides = [1, 1]} : vector<48x896xf32> to vector<1x896xf32>
    %81 = arith.addf %79, %80 : vector<1x896xf32>
    %c1_17 = arith.constant 1 : index
    %c1792_18 = arith.constant 1792 : index
    %82 = vector.load %arg5[%c1_17, %c1792_18] : memref<4x2688xf32, #tpu.memory_space<vmem>>, vector<1x896xf32>
    tpu.vector_store %arg5[%c1_17, %c1792_18], %81 {strides = array<i32>} : memref<4x2688xf32, #tpu.memory_space<vmem>>, vector<1x896xf32>,
    %83 = vector.extract_strided_slice %6 {offsets = [2, 0], sizes = [1, 896], strides = [1, 1]} : vector<4x2688xf32> to vector<1x896xf32>
    %84 = vector.extract_strided_slice %6 {offsets = [2, 896], sizes = [1, 896], strides = [1, 1]} : vector<4x2688xf32> to vector<1x896xf32>
    %85 = vector.extract_strided_slice %6 {offsets = [2, 1792], sizes = [1, 896], strides = [1, 1]} : vector<4x2688xf32> to vector<1x896xf32>
    %86 = vector.extract_strided_slice %10 {offsets = [24, 0], sizes = [1, 896], strides = [1, 1]} : vector<48x896xf32> to vector<1x896xf32>
    %87 = arith.mulf %86, %83 : vector<1x896xf32>
    %88 = vector.extract_strided_slice %10 {offsets = [25, 0], sizes = [1, 896], strides = [1, 1]} : vector<48x896xf32> to vector<1x896xf32>
    %89 = arith.mulf %88, %84 : vector<1x896xf32>
    %90 = arith.addf %87, %89 : vector<1x896xf32>
    %91 = vector.extract_strided_slice %10 {offsets = [26, 0], sizes = [1, 896], strides = [1, 1]} : vector<48x896xf32> to vector<1x896xf32>
    %92 = arith.mulf %91, %85 : vector<1x896xf32>
    %93 = arith.addf %90, %92 : vector<1x896xf32>
    %94 = vector.extract_strided_slice %10 {offsets = [27, 0], sizes = [1, 896], strides = [1, 1]} : vector<48x896xf32> to vector<1x896xf32>
    %95 = arith.addf %93, %94 : vector<1x896xf32>
    %c2 = arith.constant 2 : index
    %c0_19 = arith.constant 0 : index
    %96 = vector.load %arg5[%c2, %c0_19] : memref<4x2688xf32, #tpu.memory_space<vmem>>, vector<1x896xf32>
    tpu.vector_store %arg5[%c2, %c0_19], %95 {strides = array<i32>} : memref<4x2688xf32, #tpu.memory_space<vmem>>, vector<1x896xf32>,
    %97 = vector.extract_strided_slice %10 {offsets = [28, 0], sizes = [1, 896], strides = [1, 1]} : vector<48x896xf32> to vector<1x896xf32>
    %98 = arith.mulf %97, %83 : vector<1x896xf32>
    %99 = vector.extract_strided_slice %10 {offsets = [29, 0], sizes = [1, 896], strides = [1, 1]} : vector<48x896xf32> to vector<1x896xf32>
    %100 = arith.mulf %99, %84 : vector<1x896xf32>
    %101 = arith.addf %98, %100 : vector<1x896xf32>
    %102 = vector.extract_strided_slice %10 {offsets = [30, 0], sizes = [1, 896], strides = [1, 1]} : vector<48x896xf32> to vector<1x896xf32>
    %103 = arith.mulf %102, %85 : vector<1x896xf32>
    %104 = arith.addf %101, %103 : vector<1x896xf32>
    %105 = vector.extract_strided_slice %10 {offsets = [31, 0], sizes = [1, 896], strides = [1, 1]} : vector<48x896xf32> to vector<1x896xf32>
    %106 = arith.addf %104, %105 : vector<1x896xf32>
    %c2_20 = arith.constant 2 : index
    %c896_21 = arith.constant 896 : index
    %107 = vector.load %arg5[%c2_20, %c896_21] : memref<4x2688xf32, #tpu.memory_space<vmem>>, vector<1x896xf32>
    tpu.vector_store %arg5[%c2_20, %c896_21], %106 {strides = array<i32>} : memref<4x2688xf32, #tpu.memory_space<vmem>>, vector<1x896xf32>,
    %108 = vector.extract_strided_slice %10 {offsets = [32, 0], sizes = [1, 896], strides = [1, 1]} : vector<48x896xf32> to vector<1x896xf32>
    %109 = arith.mulf %108, %83 : vector<1x896xf32>
    %110 = vector.extract_strided_slice %10 {offsets = [33, 0], sizes = [1, 896], strides = [1, 1]} : vector<48x896xf32> to vector<1x896xf32>
    %111 = arith.mulf %110, %84 : vector<1x896xf32>
    %112 = arith.addf %109, %111 : vector<1x896xf32>
    %113 = vector.extract_strided_slice %10 {offsets = [34, 0], sizes = [1, 896], strides = [1, 1]} : vector<48x896xf32> to vector<1x896xf32>
    %114 = arith.mulf %113, %85 : vector<1x896xf32>
    %115 = arith.addf %112, %114 : vector<1x896xf32>
    %116 = vector.extract_strided_slice %10 {offsets = [35, 0], sizes = [1, 896], strides = [1, 1]} : vector<48x896xf32> to vector<1x896xf32>
    %117 = arith.addf %115, %116 : vector<1x896xf32>
    %c2_22 = arith.constant 2 : index
    %c1792_23 = arith.constant 1792 : index
    %118 = vector.load %arg5[%c2_22, %c1792_23] : memref<4x2688xf32, #tpu.memory_space<vmem>>, vector<1x896xf32>
    tpu.vector_store %arg5[%c2_22, %c1792_23], %117 {strides = array<i32>} : memref<4x2688xf32, #tpu.memory_space<vmem>>, vector<1x896xf32>,
    %119 = vector.extract_strided_slice %6 {offsets = [3, 0], sizes = [1, 896], strides = [1, 1]} : vector<4x2688xf32> to vector<1x896xf32>
    %120 = vector.extract_strided_slice %6 {offsets = [3, 896], sizes = [1, 896], strides = [1, 1]} : vector<4x2688xf32> to vector<1x896xf32>
    %121 = vector.extract_strided_slice %6 {offsets = [3, 1792], sizes = [1, 896], strides = [1, 1]} : vector<4x2688xf32> to vector<1x896xf32>
    %122 = vector.extract_strided_slice %10 {offsets = [36, 0], sizes = [1, 896], strides = [1, 1]} : vector<48x896xf32> to vector<1x896xf32>
    %123 = arith.mulf %122, %119 : vector<1x896xf32>
    %124 = vector.extract_strided_slice %10 {offsets = [37, 0], sizes = [1, 896], strides = [1, 1]} : vector<48x896xf32> to vector<1x896xf32>
    %125 = arith.mulf %124, %120 : vector<1x896xf32>
    %126 = arith.addf %123, %125 : vector<1x896xf32>
    %127 = vector.extract_strided_slice %10 {offsets = [38, 0], sizes = [1, 896], strides = [1, 1]} : vector<48x896xf32> to vector<1x896xf32>
    %128 = arith.mulf %127, %121 : vector<1x896xf32>
    %129 = arith.addf %126, %128 : vector<1x896xf32>
    %130 = vector.extract_strided_slice %10 {offsets = [39, 0], sizes = [1, 896], strides = [1, 1]} : vector<48x896xf32> to vector<1x896xf32>
    %131 = arith.addf %129, %130 : vector<1x896xf32>
    %c3 = arith.constant 3 : index
    %c0_24 = arith.constant 0 : index
    %132 = vector.load %arg5[%c3, %c0_24] : memref<4x2688xf32, #tpu.memory_space<vmem>>, vector<1x896xf32>
    tpu.vector_store %arg5[%c3, %c0_24], %131 {strides = array<i32>} : memref<4x2688xf32, #tpu.memory_space<vmem>>, vector<1x896xf32>,
    %133 = vector.extract_strided_slice %10 {offsets = [40, 0], sizes = [1, 896], strides = [1, 1]} : vector<48x896xf32> to vector<1x896xf32>
    %134 = arith.mulf %133, %119 : vector<1x896xf32>
    %135 = vector.extract_strided_slice %10 {offsets = [41, 0], sizes = [1, 896], strides = [1, 1]} : vector<48x896xf32> to vector<1x896xf32>
    %136 = arith.mulf %135, %120 : vector<1x896xf32>
    %137 = arith.addf %134, %136 : vector<1x896xf32>
    %138 = vector.extract_strided_slice %10 {offsets = [42, 0], sizes = [1, 896], strides = [1, 1]} : vector<48x896xf32> to vector<1x896xf32>
    %139 = arith.mulf %138, %121 : vector<1x896xf32>
    %140 = arith.addf %137, %139 : vector<1x896xf32>
    %141 = vector.extract_strided_slice %10 {offsets = [43, 0], sizes = [1, 896], strides = [1, 1]} : vector<48x896xf32> to vector<1x896xf32>
    %142 = arith.addf %140, %141 : vector<1x896xf32>
    %c3_25 = arith.constant 3 : index
    %c896_26 = arith.constant 896 : index
    %143 = vector.load %arg5[%c3_25, %c896_26] : memref<4x2688xf32, #tpu.memory_space<vmem>>, vector<1x896xf32>
    tpu.vector_store %arg5[%c3_25, %c896_26], %142 {strides = array<i32>} : memref<4x2688xf32, #tpu.memory_space<vmem>>, vector<1x896xf32>,
    %144 = vector.extract_strided_slice %10 {offsets = [44, 0], sizes = [1, 896], strides = [1, 1]} : vector<48x896xf32> to vector<1x896xf32>
    %145 = arith.mulf %144, %119 : vector<1x896xf32>
    %146 = vector.extract_strided_slice %10 {offsets = [45, 0], sizes = [1, 896], strides = [1, 1]} : vector<48x896xf32> to vector<1x896xf32>
    %147 = arith.mulf %146, %120 : vector<1x896xf32>
    %148 = arith.addf %145, %147 : vector<1x896xf32>
    %149 = vector.extract_strided_slice %10 {offsets = [46, 0], sizes = [1, 896], strides = [1, 1]} : vector<48x896xf32> to vector<1x896xf32>
    %150 = arith.mulf %149, %121 : vector<1x896xf32>
    %151 = arith.addf %148, %150 : vector<1x896xf32>
    %152 = vector.extract_strided_slice %10 {offsets = [47, 0], sizes = [1, 896], strides = [1, 1]} : vector<48x896xf32> to vector<1x896xf32>
    %153 = arith.addf %151, %152 : vector<1x896xf32>
    %c3_27 = arith.constant 3 : index
    %c1792_28 = arith.constant 1792 : index
    %154 = vector.load %arg5[%c3_27, %c1792_28] : memref<4x2688xf32, #tpu.memory_space<vmem>>, vector<1x896xf32>
    tpu.vector_store %arg5[%c3_27, %c1792_28], %153 {strides = array<i32>} : memref<4x2688xf32, #tpu.memory_space<vmem>>, vector<1x896xf32>,
    return
  }
}

</mosaic_0001>

<bundles_post_ra>
// kernel: _lambda_.2
= control target key start
LH: loop header
LB: loop body
LE: loop exit
PB: predicated region body
PF: predicated region fallthrough
CT: control target
= control target key end

     0   :  { %12 = vsyncpa [#allocation3], 0  ;;  %s3388_s0 = inlined_call_operand.hbm [shape: f32[4,256], index: 0, kind: input, shape index: {}]   ;;  %s3389_s1 = inlined_call_operand.hbm [shape: bf16[256,512], index: 1, kind: input, shape index: {}]   ;;  %s3390_s2 = inlined_call_operand.hbm [shape: f32[1,512], index: 2, kind: input, shape index: {}]   ;;  %s3391_s3 = inlined_call_operand.hbm [shape: bf16[512,512], index: 3, kind: input, shape index: {}]   ;;  %s3392_s4 = inlined_call_operand.hbm [shape: f32[1,512], index: 4, kind: input, shape index: {}]   ;;  %s3393_s5 = inlined_call_operand.hbm [shape: bf16[512,128], index: 5, kind: input, shape index: {}]   ;;  %s3394_s6 = inlined_call_operand.hbm [shape: f32[1,128], index: 6, kind: input, shape index: {}]   ;;  %s3395_s7 = inlined_call_operand.vmem [shape: f32[4,128], index: 7, kind: output, shape index: {}]  }
   0x1   :  { %13 = vsyncpa [#allocation5], 0 }
   0x2   :  { %14 = vsyncpa [#allocation8], 0  ;;  %s31_s26 = sshll.u32 %s3389_s1, 4  ;;  %s32_s26 = int_to_ptr.hbm [resolvable:$true] %s31_s26 }
   0x3   :  { %15 = vsyncpa [#allocation11], 0  ;;  %s3265_s27 = smov [#allocation4]   ;;  %s55_s8 = sshll.u32 %s3391_s3, 4  ;;  %s56_s8 = int_to_ptr.hbm [resolvable:$true] %s55_s8 }
   0x4   :  { %s33_s28 = sshll.u32 %s3265_s27, 4  ;;  %s3266_s9 = smov 256   ;;  %s34_s28 = int_to_ptr.vmem [resolvable:$true] %s33_s28 }
   0x5   :  { %s3267_s10 = smov 16   ;;  %s3268_s11 = smov [#allocation7]  }
   0x6   :  { %39 = dma.hbm_to_vmem [thread:$0]  %s32_s26, 8192, %s34_s28, [#allocation5], %s3266_s9, %s3266_s9, %s3267_s10  }
   0x7   :  { %s57_s12 = sshll.u32 %s3268_s11, 4  ;;  %s79_s15 = sshll.u32 %s3393_s5, 4  ;;  %s58_s12 = int_to_ptr.vmem [resolvable:$true] %s57_s12  ;;  %s80_s15 = int_to_ptr.hbm [resolvable:$true] %s79_s15 }
   0x8   :  { %63 = dma.hbm_to_vmem [thread:$0]  %s56_s8, 16384, %s58_s12, [#allocation8], %s3266_s9, %s3266_s9, %s3267_s10  }
   0x9   :  { %s3269_s1 = smov [#allocation10]   ;;  %s21_s3 = sshll.u32 %s3388_s0, 4  ;;  %s22_s3 = int_to_ptr.hbm [resolvable:$true] %s21_s3 }
   0xa   :  { %s81_s16 = sshll.u32 %s3269_s1, 4  ;;  %s3270_s19 = smov 64   ;;  %s82_s16 = int_to_ptr.vmem [resolvable:$true] %s81_s16 }
   0xb   :  { %s3271_s20 = smov 4   ;;  %s3272_s21 = smov [#allocation2]  }
   0xc   :  { %87 = dma.hbm_to_vmem [thread:$0]  %s80_s15, 4096, %s82_s16, [#allocation11], %s3270_s19, %s3270_s19, %s3271_s20  }
   0xd   :  { %s23_s22 = sshll.u32 %s3272_s21, 4  ;;  %s45_s5 = sshll.u32 %s3390_s2, 4  ;;  %s24_s22 = int_to_ptr.vmem [resolvable:$true] %s23_s22  ;;  %s46_s5 = int_to_ptr.hbm [resolvable:$true] %s45_s5 }
   0xe   :  { %26 = dma.hbm_to_vmem [thread:$0]  %s22_s3, 128, %s24_s22, [#allocation3]  }
   0xf   :  { %s69_s27 = sshll.u32 %s3392_s4, 4  ;;  %s3273_s28 = smov [#allocation6]   ;;  %s70_s27 = int_to_ptr.hbm [resolvable:$true] %s69_s27 }
  0x10   :  { %s47_s29 = sshll.u32 %s3273_s28, 4  ;;  %s3274_s0 = smov [#allocation9]   ;;  %s48_s29 = int_to_ptr.vmem [resolvable:$true] %s47_s29 }
  0x11   :  { %50 = dma.hbm_to_vmem [thread:$0]  %s46_s5, 64, %s48_s29, [#allocation5]  }
  0x12   :  { %s71_s30 = sshll.u32 %s3274_s0, 4  ;;  %s93_s10 = sshll.u32 %s3394_s6, 4  ;;  %s72_s30 = int_to_ptr.vmem [resolvable:$true] %s71_s30  ;;  %s94_s10 = int_to_ptr.hbm [resolvable:$true] %s93_s10 }
  0x13   :  { %74 = dma.hbm_to_vmem [thread:$0]  %s70_s27, 64, %s72_s30, [#allocation8]  }
  0x14   :  { %s3275_s2 = smov [#allocation12]  }
  0x15   :  { %s95_s11 = sshll.u32 %s3275_s2, 4  ;;  %s96_s11 = int_to_ptr.vmem [resolvable:$true] %s95_s11 }
  0x16   :  { %98 = dma.hbm_to_vmem [thread:$0]  %s94_s10, 16, %s96_s11, [#allocation11]  }
  0x17   :  { %3257 = dma.done.wait [#allocation3], 128  }
  0x18   :  { %3258 = vsyncadd [#allocation3], 4294967168 }
  0x19   :  { %3259 = dma.done.wait [#allocation5], 8256  }
  0x1a   :  { %3260 = vsyncadd [#allocation5], 4294959040 }
  0x1b   :  { %3261 = dma.done.wait [#allocation8], 16448  }
  0x1c   :  { %3262 = vsyncadd [#allocation8], 4294950848 }
  0x1d   :  { %3263 = dma.done.wait [#allocation11], 4112  }
  0x1e   :  { %3264 = vsyncadd [#allocation11], 4294963184  ;;  %v2071_v0 = vld [vmem:[#allocation4 + $0xe0] sm:$0xf]  ;;  %v2883_v1 = vld [vmem:[#allocation4 + $0xec] sm:$0xf0] }
  0x1f   :  { %v2199_v2 = vld [vmem:[#allocation4 + $0x1e0] sm:$0xf]  ;;  %v2072_v3 = vor.u32 %v2883_v1, %v2071_v0  ;;  %v2915_v4 = vld [vmem:[#allocation4 + $0x1ec] sm:$0xf0]  ;;  %v2881_v5 = vld [vmem:[#allocation4 + $0xe4] sm:$0xf] }
  0x20   :  { %v2073_v6 = vld [vmem:[#allocation4 + $0xf0] sm:$0xf0]  ;;  %v2200_v7 = vor.u32 %v2915_v4, %v2199_v2  ;;  %v2913_v9 = vld [vmem:[#allocation4 + $0x1e4] sm:$0xf]  ;;  %v2055_v11 = vld [vmem:[#allocation4 + $0xc0] sm:$0xf] }
  0x21   :  { %v2076_v8 = vor.u32 %v2881_v5, %v2073_v6  ;;  %v2201_v10 = vld [vmem:[#allocation4 + $0x1f0] sm:$0xf0]  ;;  %530 = vmatpush.bf16.msra.mxu0 %v2072_v3  ;;  %v2879_v13 = vld [vmem:[#allocation4 + $0xcc] sm:$0xf0]  ;;  %v2183_v14 = vld [vmem:[#allocation4 + $0x1c0] sm:$0xf] }
  0x22   :  { %v2204_v12 = vor.u32 %v2913_v9, %v2201_v10  ;;  %v2911_v15 = vld [vmem:[#allocation4 + $0x1cc] sm:$0xf0]  ;;  %543 = vmatpush.bf16.msra.mxu1 %v2200_v7  ;;  %v2056_v16 = vor.u32 %v2879_v13, %v2055_v11  ;;  %v2877_v18 = vld [vmem:[#allocation4 + $0xc4] sm:$0xf]  ;;  %v2057_v19 = vld [vmem:[#allocation4 + $0xd0] sm:$0xf0] }
  0x23   :  { %556 = vmatpush.bf16.msra.mxu2 %v2076_v8  ;;  %v2184_v17 = vor.u32 %v2911_v15, %v2183_v14  ;;  %v2909_v20 = vld [vmem:[#allocation4 + $0x1c4] sm:$0xf]  ;;  %v2060_v21 = vor.u32 %v2877_v18, %v2057_v19  ;;  %v2185_v22 = vld [vmem:[#allocation4 + $0x1d0] sm:$0xf0]  ;;  %v2039_v23 = vld [vmem:[#allocation4 + $0xa0] sm:$0xf] }
  0x24   :  { %569 = vmatpush.bf16.msra.mxu3 %v2204_v12  ;;  %v2875_v24 = vld [vmem:[#allocation4 + $0xac] sm:$0xf0]  ;;  %v2188_v25 = vor.u32 %v2909_v20, %v2185_v22  ;;  %v2167_v26 = vld [vmem:[#allocation4 + $0x1a0] sm:$0xf]  ;;  %v2873_v28 = vld [vmem:[#allocation4 + $0xa4] sm:$0xf] }
  0x25   :  { %v2907_v27 = vld [vmem:[#allocation4 + $0x1ac] sm:$0xf0]  ;;  %531 = vmatpush.bf16.msra.mxu0 %v2056_v16  ;;  %v2040_v29 = vor.u32 %v2875_v24, %v2039_v23  ;;  %v2041_v30 = vld [vmem:[#allocation4 + $0xb0] sm:$0xf0]  ;;  %v2905_v31 = vld [vmem:[#allocation4 + $0x1a4] sm:$0xf] }
  0x26   :  { %v2169_v32 = vld [vmem:[#allocation4 + $0x1b0] sm:$0xf0]  ;;  %544 = vmatpush.bf16.msra.mxu1 %v2184_v17  ;;  %v2168_v33 = vor.u32 %v2907_v27, %v2167_v26  ;;  %v2044_v34 = vor.u32 %v2873_v28, %v2041_v30  ;;  %v2023_v35 = vld [vmem:[#allocation4 + $0x80] sm:$0xf]  ;;  %v2871_v36 = vld [vmem:[#allocation4 + $0x8c] sm:$0xf0] }
  0x27   :  { %557 = vmatpush.bf16.msra.mxu2 %v2060_v21  ;;  %v2151_v37 = vld [vmem:[#allocation4 + $0x180] sm:$0xf]  ;;  %v2172_v38 = vor.u32 %v2905_v31, %v2169_v32  ;;  %v2903_v39 = vld [vmem:[#allocation4 + $0x18c] sm:$0xf0]  ;;  %v2869_v40 = vld [vmem:[#allocation4 + $0x84] sm:$0xf]  ;;  %v2024_v44 = vor.u32 %v2871_v36, %v2023_v35 }
  0x28   :  { %570 = vmatpush.bf16.msra.mxu3 %v2188_v25  ;;  %v2025_v41 = vld [vmem:[#allocation4 + $0x90] sm:$0xf0]  ;;  %v2901_v42 = vld [vmem:[#allocation4 + $0x184] sm:$0xf]  ;;  %v2152_v45 = vor.u32 %v2903_v39, %v2151_v37  ;;  %v2007_v47 = vld [vmem:[#allocation4 + $0x60] sm:$0xf] }
  0x29   :  { %v2153_v43 = vld [vmem:[#allocation4 + $0x190] sm:$0xf0]  ;;  %532 = vmatpush.bf16.msra.mxu0 %v2040_v29  ;;  %v2028_v46 = vor.u32 %v2869_v40, %v2025_v41  ;;  %v2867_v48 = vld [vmem:[#allocation4 + $0x6c] sm:$0xf0]  ;;  %v2135_v49 = vld [vmem:[#allocation4 + $0x160] sm:$0xf] }
  0x2a   :  { %545 = vmatpush.bf16.msra.mxu1 %v2168_v33  ;;  %v2156_v50 = vor.u32 %v2901_v42, %v2153_v43  ;;  %v2899_v51 = vld [vmem:[#allocation4 + $0x16c] sm:$0xf0]  ;;  %v2865_v52 = vld [vmem:[#allocation4 + $0x64] sm:$0xf]  ;;  %v2009_v53 = vld [vmem:[#allocation4 + $0x70] sm:$0xf0]  ;;  %v2008_v56 = vor.u32 %v2867_v48, %v2007_v47 }
  0x2b   :  { %558 = vmatpush.bf16.msra.mxu2 %v2044_v34  ;;  %v2897_v54 = vld [vmem:[#allocation4 + $0x164] sm:$0xf]  ;;  %v2137_v55 = vld [vmem:[#allocation4 + $0x170] sm:$0xf0]  ;;  %v2136_v57 = vor.u32 %v2899_v51, %v2135_v49  ;;  %v2012_v58 = vor.u32 %v2865_v52, %v2009_v53  ;;  %v1991_v59 = vld [vmem:[#allocation4 + $0x40] sm:$0xf] }
  0x2c   :  { %571 = vmatpush.bf16.msra.mxu3 %v2172_v38  ;;  %v2863_v60 = vld [vmem:[#allocation4 + $0x4c] sm:$0xf0]  ;;  %v2119_v61 = vld [vmem:[#allocation4 + $0x140] sm:$0xf]  ;;  %v2140_v62 = vor.u32 %v2897_v54, %v2137_v55  ;;  %v2861_v0 = vld [vmem:[#allocation4 + $0x44] sm:$0xf] }
  0x2d   :  { %533 = vmatpush.bf16.msra.mxu0 %v2024_v44  ;;  %v2895_v63 = vld [vmem:[#allocation4 + $0x14c] sm:$0xf0]  ;;  %v1993_v1 = vld [vmem:[#allocation4 + $0x50] sm:$0xf0]  ;;  %v2893_v2 = vld [vmem:[#allocation4 + $0x144] sm:$0xf]  ;;  %v1992_v4 = vor.u32 %v2863_v60, %v1991_v59 }
  0x2e   :  { %546 = vmatpush.bf16.msra.mxu1 %v2152_v45  ;;  %v2121_v3 = vld [vmem:[#allocation4 + $0x150] sm:$0xf0]  ;;  %v2120_v5 = vor.u32 %v2895_v63, %v2119_v61  ;;  %v1996_v6 = vor.u32 %v2861_v0, %v1993_v1  ;;  %v1975_v7 = vld [vmem:[#allocation4 + $0x20] sm:$0xf]  ;;  %v2859_v8 = vld [vmem:[#allocation4 + $0x2c] sm:$0xf0] }
  0x2f   :  { %559 = vmatpush.bf16.msra.mxu2 %v2028_v46  ;;  %v2103_v9 = vld [vmem:[#allocation4 + $0x120] sm:$0xf]  ;;  %v2124_v10 = vor.u32 %v2893_v2, %v2121_v3  ;;  %v2891_v11 = vld [vmem:[#allocation4 + $0x12c] sm:$0xf0]  ;;  %v2857_v12 = vld [vmem:[#allocation4 + $0x24] sm:$0xf]  ;;  %v1976_v17 = vor.u32 %v2859_v8, %v1975_v7 }
  0x30   :  { %572 = vmatpush.bf16.msra.mxu3 %v2156_v50  ;;  %v1977_v13 = vld [vmem:[#allocation4 + $0x30] sm:$0xf0]  ;;  %v2889_v14 = vld [vmem:[#allocation4 + $0x124] sm:$0xf]  ;;  %v1959_v16 = vld [vmem:[#allocation4] sm:$0xf]  ;;  %v2104_v21 = vor.u32 %v2891_v11, %v2103_v9 }
  0x31   :  { %534 = vmatpush.bf16.msra.mxu0 %v2008_v56  ;;  %v2105_v15 = vld [vmem:[#allocation4 + $0x130] sm:$0xf0]  ;;  %v2855_v18 = vld [vmem:[#allocation4 + $0xc] sm:$0xf0]  ;;  %v2087_v19 = vld [vmem:[#allocation4 + $0x100] sm:$0xf]  ;;  %v1980_v22 = vor.u32 %v2857_v12, %v1977_v13 }
  0x32   :  { %547 = vmatpush.bf16.msra.mxu1 %v2136_v57  ;;  %v2887_v20 = vld [vmem:[#allocation4 + $0x10c] sm:$0xf0]  ;;  %v2853_v23 = vld [vmem:[#allocation4 + $0x4] sm:$0xf]  ;;  %v1961_v24 = vld [vmem:[#allocation4 + $0x10] sm:$0xf0]  ;;  %v2108_v26 = vor.u32 %v2889_v14, %v2105_v15  ;;  %v1960_v32 = vor.u32 %v2855_v18, %v1959_v16 }
  0x33   :  { %560 = vmatpush.bf16.msra.mxu2 %v2012_v58  ;;  %v127_v25 = vld [vmem:[#allocation2] sm:$0xff]  ;;  %v2885_v27 = vld [vmem:[#allocation4 + $0x104] sm:$0xf]  ;;  %v2089_v28 = vld [vmem:[#allocation4 + $0x110] sm:$0xf0]  ;;  %v2088_v36 = vor.u32 %v2887_v20, %v2087_v19  ;;  %v1964_v37 = vor.u32 %v2853_v23, %v1961_v24 }
  0x34   :  { %573 = vmatpush.bf16.msra.mxu3 %v2140_v62  ;;  %129 = vst [vmem:[#allocation1] ss:$2 sm:$0xff] %v127_v25  ;;  %v2079_v29 = vld [vmem:[#allocation4 + $0xe8] sm:$0xf]  ;;  %v2884_v30 = vld [vmem:[#allocation4 + $0xf4] sm:$0xf0]  ;;  %v2092_v40 = vor.u32 %v2885_v27, %v2089_v28 }
  0x35   :  { %535 = vmatpush.bf16.msra.mxu0 %v1992_v4  ;;  %v2207_v31 = vld [vmem:[#allocation4 + $0x1e8] sm:$0xf]  ;;  %v2916_v33 = vld [vmem:[#allocation4 + $0x1f4] sm:$0xf0]  ;;  %v2882_v34 = vld [vmem:[#allocation4 + $0xec] sm:$0xf]  ;;  %v2080_v41 = vor.u32 %v2884_v30, %v2079_v29 }
  0x36   :  { %548 = vmatpush.bf16.msra.mxu1 %v2120_v5  ;;  %v2081_v35 = vld [vmem:[#allocation4 + $0xf8] sm:$0xf0]  ;;  %v2914_v38 = vld [vmem:[#allocation4 + $0x1ec] sm:$0xf]  ;;  %v2063_v42 = vld [vmem:[#allocation4 + $0xc8] sm:$0xf]  ;;  %v2208_v44 = vor.u32 %v2916_v33, %v2207_v31 }
  0x37   :  { %561 = vmatpush.bf16.msra.mxu2 %v1996_v6  ;;  %v2209_v39 = vld [vmem:[#allocation4 + $0x1f8] sm:$0xf0]  ;;  %v2880_v43 = vld [vmem:[#allocation4 + $0xd4] sm:$0xf0]  ;;  %v2084_v45 = vor.u32 %v2882_v34, %v2081_v35  ;;  %v2191_v46 = vld [vmem:[#allocation4 + $0x1c8] sm:$0xf] }
  0x38   :  { %574 = vmatpush.bf16.msra.mxu3 %v2124_v10  ;;  %v2912_v47 = vld [vmem:[#allocation4 + $0x1d4] sm:$0xf0]  ;;  %v2878_v48 = vld [vmem:[#allocation4 + $0xcc] sm:$0xf]  ;;  %v2212_v49 = vor.u32 %v2914_v38, %v2209_v39  ;;  %v2065_v50 = vld [vmem:[#allocation4 + $0xd8] sm:$0xf0]  ;;  %v2064_v57 = vor.u32 %v2880_v43, %v2063_v42 }
  0x39   :  { %536 = vmatpush.bf16.msra.mxu0 %v1976_v17  ;;  %v2910_v51 = vld [vmem:[#allocation4 + $0x1cc] sm:$0xf]  ;;  %v2193_v52 = vld [vmem:[#allocation4 + $0x1d8] sm:$0xf0]  ;;  %v2192_v58 = vor.u32 %v2912_v47, %v2191_v46  ;;  %v2068_v59 = vor.u32 %v2878_v48, %v2065_v50  ;;  %v2047_v60 = vld [vmem:[#allocation4 + $0xa8] sm:$0xf] }
  0x3a   :  { %549 = vmatpush.bf16.msra.mxu1 %v2104_v21  ;;  %v2876_v61 = vld [vmem:[#allocation4 + $0xb4] sm:$0xf0]  ;;  %v2175_v62 = vld [vmem:[#allocation4 + $0x1a8] sm:$0xf]  ;;  %v2196_v63 = vor.u32 %v2910_v51, %v2193_v52  ;;  %v2874_v1 = vld [vmem:[#allocation4 + $0xac] sm:$0xf] }
  0x3b   :  { %562 = vmatpush.bf16.msra.mxu2 %v1980_v22  ;;  %v130_v53 = vld.sshfl [vmem:[#allocation1] sm:$0xff pattern:$0x75316420]  ;;  %v131_v54 = vld.sshfl [vmem:[#allocation1 + $0x8] sm:$0xff pattern:$0x75316420]  ;;  %v2048_v5 = vor.u32 %v2876_v61, %v2047_v60 }
  0x3c   :  { %575 = vmatpush.bf16.msra.mxu3 %v2108_v26  ;;  %v3337_v55 = vpack.c.bf16 %v130_v53, %v130_v53  ;;  %v3339_v56 = vpack.c.bf16 %v131_v54, %v131_v54  ;;  %v2908_v0 = vld [vmem:[#allocation4 + $0x1b4] sm:$0xf0]  ;;  %v2049_v2 = vld [vmem:[#allocation4 + $0xb8] sm:$0xf0]  ;;  %v2906_v3 = vld [vmem:[#allocation4 + $0x1ac] sm:$0xf] }
  0x3d   :  { %537 = vmatpush.bf16.msra.mxu0 %v1960_v32  ;;  %v2177_v4 = vld [vmem:[#allocation4 + $0x1b8] sm:$0xf0]  ;;  %v2176_v6 = vor.u32 %v2908_v0, %v2175_v62  ;;  %v2052_v7 = vor.u32 %v2874_v1, %v2049_v2  ;;  %v2031_v8 = vld [vmem:[#allocation4 + $0x88] sm:$0xf]  ;;  %v2872_v9 = vld [vmem:[#allocation4 + $0x94] sm:$0xf0] }
  0x3e   :  { %550 = vmatpush.bf16.msra.mxu1 %v2088_v36  ;;  %v2159_v10 = vld [vmem:[#allocation4 + $0x188] sm:$0xf]  ;;  %v2180_v11 = vor.u32 %v2906_v3, %v2177_v4  ;;  %v2904_v12 = vld [vmem:[#allocation4 + $0x194] sm:$0xf0]  ;;  %v2870_v13 = vld [vmem:[#allocation4 + $0x8c] sm:$0xf]  ;;  %v2032_v17 = vor.u32 %v2872_v9, %v2031_v8 }
  0x3f   :  { %563 = vmatpush.bf16.msra.mxu2 %v1964_v37  ;;  %v2033_v14 = vld [vmem:[#allocation4 + $0x98] sm:$0xf0]  ;;  %v2902_v15 = vld [vmem:[#allocation4 + $0x18c] sm:$0xf]  ;;  %v2160_v18 = vor.u32 %v2904_v12, %v2159_v10  ;;  %v2015_v20 = vld [vmem:[#allocation4 + $0x68] sm:$0xf] }
  0x40   :  { %576 = vmatpush.bf16.msra.mxu3 %v2092_v40  ;;  %538 = vmatmul.bf16.vlgmr.msra.gmra.mxu0 %v3337_v55  ;;  %v2161_v16 = vld [vmem:[#allocation4 + $0x198] sm:$0xf0]  ;;  %v2036_v19 = vor.u32 %v2870_v13, %v2033_v14  ;;  %v2868_v21 = vld [vmem:[#allocation4 + $0x74] sm:$0xf0]  ;;  %v2143_v22 = vld [vmem:[#allocation4 + $0x168] sm:$0xf] }
  0x41   :  { %582 = vmatpush.bf16.msrb.mxu0 %v2080_v41  ;;  %551 = vmatmul.bf16.vlgmr.msra.gmra.mxu1 %v3339_v56  ;;  %v2164_v23 = vor.u32 %v2902_v15, %v2161_v16  ;;  %v2900_v24 = vld [vmem:[#allocation4 + $0x174] sm:$0xf0]  ;;  %v2866_v25 = vld [vmem:[#allocation4 + $0x6c] sm:$0xf]  ;;  %v2017_v26 = vld [vmem:[#allocation4 + $0x78] sm:$0xf0]  ;;  %v2016_v29 = vor.u32 %v2868_v21, %v2015_v20 }
  0x42   :  { %595 = vmatpush.bf16.msrb.mxu1 %v2208_v44  ;;  %564 = vmatmul.bf16.vlgmr.msra.gmra.mxu2 %v3337_v55  ;;  %v2898_v27 = vld [vmem:[#allocation4 + $0x16c] sm:$0xf]  ;;  %v2145_v28 = vld [vmem:[#allocation4 + $0x178] sm:$0xf0]  ;;  %v2144_v30 = vor.u32 %v2900_v24, %v2143_v22  ;;  %v2020_v31 = vor.u32 %v2866_v25, %v2017_v26  ;;  %v1999_v32 = vld [vmem:[#allocation4 + $0x48] sm:$0xf] }
  0x43   :  { %608 = vmatpush.bf16.msrb.mxu2 %v2084_v45  ;;  %577 = vmatmul.bf16.vlgmr.msra.gmra.mxu3 %v3339_v56  ;;  %v2864_v33 = vld [vmem:[#allocation4 + $0x54] sm:$0xf0]  ;;  %v2127_v34 = vld [vmem:[#allocation4 + $0x148] sm:$0xf]  ;;  %v2148_v35 = vor.u32 %v2898_v27, %v2145_v28  ;;  %v2862_v37 = vld [vmem:[#allocation4 + $0x4c] sm:$0xf] }
  0x44   :  { %621 = vmatpush.bf16.msrb.mxu3 %v2212_v49  ;;  %v2896_v36 = vld [vmem:[#allocation4 + $0x154] sm:$0xf0]  ;;  %v2001_v38 = vld [vmem:[#allocation4 + $0x58] sm:$0xf0]  ;;  %v2894_v39 = vld [vmem:[#allocation4 + $0x14c] sm:$0xf]  ;;  %v2000_v41 = vor.u32 %v2864_v33, %v1999_v32 }
  0x45   :  { %583 = vmatpush.bf16.msrb.mxu0 %v2064_v57  ;;  %v2129_v40 = vld [vmem:[#allocation4 + $0x158] sm:$0xf0]  ;;  %v2128_v42 = vor.u32 %v2896_v36, %v2127_v34  ;;  %v2004_v43 = vor.u32 %v2862_v37, %v2001_v38  ;;  %v1983_v44 = vld [vmem:[#allocation4 + $0x28] sm:$0xf]  ;;  %v2860_v45 = vld [vmem:[#allocation4 + $0x34] sm:$0xf0] }
  0x46   :  { %596 = vmatpush.bf16.msrb.mxu1 %v2192_v58  ;;  %v2111_v46 = vld [vmem:[#allocation4 + $0x128] sm:$0xf]  ;;  %v2132_v47 = vor.u32 %v2894_v39, %v2129_v40  ;;  %v2892_v48 = vld [vmem:[#allocation4 + $0x134] sm:$0xf0]  ;;  %v2858_v49 = vld [vmem:[#allocation4 + $0x2c] sm:$0xf]  ;;  %v1984_v53 = vor.u32 %v2860_v45, %v1983_v44 }
  0x47   :  { %609 = vmatpush.bf16.msrb.mxu2 %v2068_v59  ;;  %v1985_v50 = vld [vmem:[#allocation4 + $0x38] sm:$0xf0]  ;;  %v2890_v51 = vld [vmem:[#allocation4 + $0x12c] sm:$0xf]  ;;  %v1967_v54 = vld [vmem:[#allocation4 + $0x8] sm:$0xf]  ;;  %v2112_v57 = vor.u32 %v2892_v48, %v2111_v46 }
  0x48   :  { %622 = vmatpush.bf16.msrb.mxu3 %v2196_v63  ;;  %v2113_v52 = vld [vmem:[#allocation4 + $0x138] sm:$0xf0]  ;;  %v1988_v58 = vor.u32 %v2858_v49, %v1985_v50  ;;  %v2856_v59 = vld [vmem:[#allocation4 + $0x14] sm:$0xf0]  ;;  %v2095_v60 = vld [vmem:[#allocation4 + $0x108] sm:$0xf] }
  0x49   :  { %584 = vmatpush.bf16.msrb.mxu0 %v2048_v5  ;;  %v2888_v61 = vld [vmem:[#allocation4 + $0x114] sm:$0xf0]  ;;  %v2116_v62 = vor.u32 %v2890_v51, %v2113_v52  ;;  %v2854_v63 = vld [vmem:[#allocation4 + $0xc] sm:$0xf]  ;;  %v1969_v0 = vld [vmem:[#allocation4 + $0x18] sm:$0xf0]  ;;  %v1968_v5 = vor.u32 %v2856_v59, %v1967_v54 }
  0x4a   :  { %597 = vmatpush.bf16.msrb.mxu1 %v2176_v6  ;;  %v2886_v1 = vld [vmem:[#allocation4 + $0x10c] sm:$0xf]  ;;  %v2097_v2 = vld [vmem:[#allocation4 + $0x118] sm:$0xf0]  ;;  %v2327_v3 = vld [vmem:[#allocation7 + $0xe0] sm:$0xf]  ;;  %v2096_v8 = vor.u32 %v2888_v61, %v2095_v60  ;;  %v1972_v9 = vor.u32 %v2854_v63, %v1969_v0 }
  0x4b   :  { %610 = vmatpush.bf16.msrb.mxu2 %v2052_v7  ;;  %v2947_v4 = vld [vmem:[#allocation7 + $0xec] sm:$0xf0]  ;;  %v2455_v6 = vld [vmem:[#allocation7 + $0x1e0] sm:$0xf]  ;;  %v2100_v10 = vor.u32 %v2886_v1, %v2097_v2 }
  0x4c   :  { %623 = vmatpush.bf16.msrb.mxu3 %v2180_v11  ;;  %v2979_v7 = vld [vmem:[#allocation7 + $0x1ec] sm:$0xf0]  ;;  %v2328_v11 = vor.u32 %v2947_v4, %v2327_v3  ;;  %v2583_v12 = vld [vmem:[#allocation7 + $0x2e0] sm:$0xf] }
  0x4d   :  { %585 = vmatpush.bf16.msrb.mxu0 %v2032_v17  ;;  %v3011_v13 = vld [vmem:[#allocation7 + $0x2ec] sm:$0xf0]  ;;  %v2311_v14 = vld [vmem:[#allocation7 + $0xc0] sm:$0xf]  ;;  %v2456_v16 = vor.u32 %v2979_v7, %v2455_v6 }
  0x4e   :  { %598 = vmatpush.bf16.msrb.mxu1 %v2160_v18  ;;  %v2943_v15 = vld [vmem:[#allocation7 + $0xcc] sm:$0xf0]  ;;  %v2439_v17 = vld [vmem:[#allocation7 + $0x1c0] sm:$0xf] }
  0x4f   :  { %611 = vmatpush.bf16.msrb.mxu2 %v2036_v19  ;;  %v2975_v18 = vld [vmem:[#allocation7 + $0x1cc] sm:$0xf0]  ;;  %v2584_v19 = vor.u32 %v3011_v13, %v2583_v12  ;;  %v2312_v20 = vor.u32 %v2943_v15, %v2311_v14  ;;  %v2567_v21 = vld [vmem:[#allocation7 + $0x2c0] sm:$0xf]  ;;  %v2945_v13 = vld [vmem:[#allocation7 + $0xe4] sm:$0xf] }
  0x50   :  { %624 = vmatpush.bf16.msrb.mxu3 %v2164_v23  ;;  %v3007_v22 = vld [vmem:[#allocation7 + $0x2cc] sm:$0xf0]  ;;  %v2295_v23 = vld [vmem:[#allocation7 + $0xa0] sm:$0xf]  ;;  %v2440_v25 = vor.u32 %v2975_v18, %v2439_v17  ;;  %v2329_v15 = vld [vmem:[#allocation7 + $0xf0] sm:$0xf0] }
  0x51   :  { %586 = vmatpush.bf16.msrb.mxu0 %v2016_v29  ;;  %v2939_v24 = vld [vmem:[#allocation7 + $0xac] sm:$0xf0]  ;;  %v2711_v26 = vld [vmem:[#allocation7 + $0x3e0] sm:$0xf]  ;;  %v2977_v18 = vld [vmem:[#allocation7 + $0x1e4] sm:$0xf] }
  0x52   :  { %599 = vmatpush.bf16.msrb.mxu1 %v2144_v30  ;;  %v2423_v27 = vld [vmem:[#allocation7 + $0x1a0] sm:$0xf]  ;;  %v2971_v28 = vld [vmem:[#allocation7 + $0x1ac] sm:$0xf0]  ;;  %v2568_v30 = vor.u32 %v3007_v22, %v2567_v21  ;;  %v2296_v32 = vor.u32 %v2939_v24, %v2295_v23  ;;  %v2332_v21 = vor.u32 %v2945_v13, %v2329_v15  ;;  %v2941_v23 = vld [vmem:[#allocation7 + $0xc4] sm:$0xf] }
  0x53   :  { %612 = vmatpush.bf16.msrb.mxu2 %v2020_v31  ;;  %v3043_v29 = vld [vmem:[#allocation7 + $0x3ec] sm:$0xf0]  ;;  %v2279_v33 = vld [vmem:[#allocation7 + $0x80] sm:$0xf]  ;;  %v2424_v37 = vor.u32 %v2971_v28, %v2423_v27  ;;  %v2313_v24 = vld [vmem:[#allocation7 + $0xd0] sm:$0xf0] }
  0x54   :  { %625 = vmatpush.bf16.msrb.mxu3 %v2148_v35  ;;  %v2712_v31 = vor.u32 %v3043_v29, %v2711_v26  ;;  %v2551_v34 = vld [vmem:[#allocation7 + $0x2a0] sm:$0xf]  ;;  %v3003_v35 = vld [vmem:[#allocation7 + $0x2ac] sm:$0xf0]  ;;  %v2973_v26 = vld [vmem:[#allocation7 + $0x1c4] sm:$0xf]  ;;  %v2316_v28 = vor.u32 %v2941_v23, %v2313_v24 }
  0x55   :  { %587 = vmatpush.bf16.msrb.mxu0 %v2000_v41  ;;  %v2935_v36 = vld [vmem:[#allocation7 + $0x8c] sm:$0xf0]  ;;  %v2695_v38 = vld [vmem:[#allocation7 + $0x3c0] sm:$0xf]  ;;  %v2441_v27 = vld [vmem:[#allocation7 + $0x1d0] sm:$0xf0] }
  0x56   :  { %600 = vmatpush.bf16.msrb.mxu1 %v2128_v42  ;;  %v3039_v39 = vld [vmem:[#allocation7 + $0x3cc] sm:$0xf0]  ;;  %v2552_v42 = vor.u32 %v3003_v35, %v2551_v34  ;;  %v2535_v44 = vld [vmem:[#allocation7 + $0x280] sm:$0xf]  ;;  %v2937_v29 = vld [vmem:[#allocation7 + $0xa4] sm:$0xf] }
  0x57   :  { %613 = vmatpush.bf16.msrb.mxu2 %v2004_v43  ;;  %v2967_v40 = vld [vmem:[#allocation7 + $0x18c] sm:$0xf0]  ;;  %v2696_v41 = vor.u32 %v3039_v39, %v2695_v38  ;;  %v2263_v43 = vld [vmem:[#allocation7 + $0x60] sm:$0xf]  ;;  %v2933_v35 = vld [vmem:[#allocation7 + $0x84] sm:$0xf] }
  0x58   :  { %626 = vmatpush.bf16.msrb.mxu3 %v2132_v47  ;;  %v2999_v45 = vld [vmem:[#allocation7 + $0x28c] sm:$0xf0]  ;;  %v2679_v48 = vld [vmem:[#allocation7 + $0x3a0] sm:$0xf]  ;;  %v2965_v38 = vld [vmem:[#allocation7 + $0x184] sm:$0xf] }
  0x59   :  { %588 = vmatpush.bf16.msrb.mxu0 %v1984_v53  ;;  %v2931_v46 = vld [vmem:[#allocation7 + $0x6c] sm:$0xf0]  ;;  %v2391_v50 = vld [vmem:[#allocation7 + $0x160] sm:$0xf]  ;;  %v2536_v53 = vor.u32 %v2999_v45, %v2535_v44  ;;  %v2409_v39 = vld [vmem:[#allocation7 + $0x190] sm:$0xf0] }
  0x5a   :  { %601 = vmatpush.bf16.msrb.mxu1 %v2112_v57  ;;  %v3035_v49 = vld [vmem:[#allocation7 + $0x3ac] sm:$0xf0]  ;;  %v2264_v54 = vor.u32 %v2931_v46, %v2263_v43  ;;  %v2247_v57 = vld [vmem:[#allocation7 + $0x40] sm:$0xf]  ;;  %v2925_v45 = vld [vmem:[#allocation7 + $0x44] sm:$0xf] }
  0x5b   :  { %614 = vmatpush.bf16.msrb.mxu2 %v1988_v58  ;;  %v2963_v51 = vld [vmem:[#allocation7 + $0x16c] sm:$0xf0]  ;;  %v2680_v52 = vor.u32 %v3035_v49, %v2679_v48  ;;  %v2519_v58 = vld [vmem:[#allocation7 + $0x260] sm:$0xf] }
  0x5c   :  { %627 = vmatpush.bf16.msrb.mxu3 %v2116_v62  ;;  %v2995_v59 = vld [vmem:[#allocation7 + $0x26c] sm:$0xf0]  ;;  %v2392_v61 = vor.u32 %v2963_v51, %v2391_v50  ;;  %v2663_v62 = vld [vmem:[#allocation7 + $0x380] sm:$0xf]  ;;  %v2961_v51 = vld [vmem:[#allocation7 + $0x164] sm:$0xf] }
  0x5d   :  { %589 = vmatpush.bf16.msrb.mxu0 %v1968_v5  ;;  %v2927_v60 = vld [vmem:[#allocation7 + $0x4c] sm:$0xf0]  ;;  %v2375_v0 = vld [vmem:[#allocation7 + $0x140] sm:$0xf]  ;;  %v2520_v3 = vor.u32 %v2995_v59, %v2519_v58  ;;  %v2921_v59 = vld [vmem:[#allocation7 + $0x24] sm:$0xf] }
  0x5e   :  { %602 = vmatpush.bf16.msrb.mxu1 %v2096_v8  ;;  %v3031_v63 = vld [vmem:[#allocation7 + $0x38c] sm:$0xf0]  ;;  %v2248_v4 = vor.u32 %v2927_v60, %v2247_v57  ;;  %v2231_v5 = vld [vmem:[#allocation7 + $0x20] sm:$0xf] }
  0x5f   :  { %615 = vmatpush.bf16.msrb.mxu2 %v1972_v9  ;;  %v2959_v1 = vld [vmem:[#allocation7 + $0x14c] sm:$0xf0]  ;;  %v2664_v2 = vor.u32 %v3031_v63, %v2663_v62  ;;  %v2359_v8 = vld [vmem:[#allocation7 + $0x120] sm:$0xf] }
  0x60   :  { %628 = vmatpush.bf16.msrb.mxu3 %v2100_v10  ;;  %590 = vmatmul.bf16.vlgmr.msrb.gmra.mxu0 %v3337_v55  ;;  %v2923_v6 = vld [vmem:[#allocation7 + $0x2c] sm:$0xf0]  ;;  %v2376_v7 = vor.u32 %v2959_v1, %v2375_v0  ;;  %v2503_v43 = vld [vmem:[#allocation7 + $0x240] sm:$0xf]  ;;  %v2957_v1 = vld [vmem:[#allocation7 + $0x144] sm:$0xf] }
  0x61   :  { %1420 = vmatpush.bf16.msra.mxu0 %v2328_v11  ;;  %603 = vmatmul.bf16.vlgmr.msrb.gmra.mxu1 %v3339_v56  ;;  %v2955_v9 = vld [vmem:[#allocation7 + $0x12c] sm:$0xf0]  ;;  %v2232_v10 = vor.u32 %v2923_v6, %v2231_v5  ;;  %v2215_v11 = vld [vmem:[#allocation7] sm:$0xf] }
  0x62   :  { %1433 = vmatpush.bf16.msra.mxu1 %v2456_v16  ;;  %616 = vmatmul.bf16.vlgmr.msrb.gmra.mxu2 %v3337_v55  ;;  %v2407_v55 = vld [vmem:[#allocation7 + $0x180] sm:$0xf]  ;;  %v2919_v12 = vld [vmem:[#allocation7 + $0xc] sm:$0xf0]  ;;  %v2360_v14 = vor.u32 %v2955_v9, %v2359_v8  ;;  %v2917_v8 = vld [vmem:[#allocation7 + $0x4] sm:$0xf] }
  0x63   :  { %629 = vmatmul.bf16.vlgmr.msrb.gmra.mxu3 %v3339_v56  ;;  %1446 = vmatpush.bf16.msra.mxu2 %v2584_v19  ;;  %v2280_v56 = vor.u32 %v2935_v36, %v2279_v33  ;;  %v2408_v47 = vor.u32 %v2967_v40, %v2407_v55  ;;  %v2343_v16 = vld [vmem:[#allocation7 + $0x100] sm:$0xf]  ;;  %v2951_v17 = vld [vmem:[#allocation7 + $0x10c] sm:$0xf0]  ;;  %v2457_v19 = vld [vmem:[#allocation7 + $0x1f0] sm:$0xf0] }
  0x64   :  { %1459 = vmatpush.bf16.msra.mxu3 %v2712_v31  ;;  %v2344_v22 = vor.u32 %v2951_v17, %v2343_v16  ;;  %v2444_v31 = vor.u32 %v2973_v26, %v2441_v27  ;;  %v2425_v33 = vld [vmem:[#allocation7 + $0x1b0] sm:$0xf0]  ;;  %v2929_v40 = vld [vmem:[#allocation7 + $0x64] sm:$0xf]  ;;  %v2991_v44 = vld [vmem:[#allocation7 + $0x24c] sm:$0xf0] }
  0x65   :  { %1421 = vmatpush.bf16.msra.mxu0 %v2312_v20  ;;  %v2216_v20 = vor.u32 %v2919_v12, %v2215_v11  ;;  %v2281_v36 = vld [vmem:[#allocation7 + $0x90] sm:$0xf0]  ;;  %v2504_v46 = vor.u32 %v2991_v44, %v2503_v43  ;;  %v2647_v49 = vld [vmem:[#allocation7 + $0x360] sm:$0xf]  ;;  %v3027_v50 = vld [vmem:[#allocation7 + $0x36c] sm:$0xf0] }
  0x66   :  { %1434 = vmatpush.bf16.msra.mxu1 %v2440_v25  ;;  %v2460_v25 = vor.u32 %v2977_v18, %v2457_v19  ;;  %v2284_v55 = vor.u32 %v2933_v35, %v2281_v36  ;;  %v2487_v57 = vld [vmem:[#allocation7 + $0x220] sm:$0xf]  ;;  %v2987_v58 = vld [vmem:[#allocation7 + $0x22c] sm:$0xf0]  ;;  %v2217_v9 = vld [vmem:[#allocation7 + $0x10] sm:$0xf0] }
  0x67   :  { %1447 = vmatpush.bf16.msra.mxu2 %v2568_v30  ;;  %v2297_v30 = vld [vmem:[#allocation7 + $0xb0] sm:$0xf0]  ;;  %v2488_v60 = vor.u32 %v2987_v58, %v2487_v57  ;;  %v2631_v63 = vld [vmem:[#allocation7 + $0x340] sm:$0xf]  ;;  %v3023_v0 = vld [vmem:[#allocation7 + $0x34c] sm:$0xf0]  ;;  %v2220_v11 = vor.u32 %v2917_v8, %v2217_v9 }
  0x68   :  { %1460 = vmatpush.bf16.msra.mxu3 %v2696_v41  ;;  %v2300_v34 = vor.u32 %v2937_v29, %v2297_v30  ;;  %v2265_v41 = vld [vmem:[#allocation7 + $0x70] sm:$0xf0]  ;;  %v2471_v5 = vld [vmem:[#allocation7 + $0x200] sm:$0xf]  ;;  %v2983_v6 = vld [vmem:[#allocation7 + $0x20c] sm:$0xf0] }
  0x69   :  { %1422 = vmatpush.bf16.msra.mxu0 %v2296_v32  ;;  %v2969_v32 = vld [vmem:[#allocation7 + $0x1a4] sm:$0xf]  ;;  %v2585_v12 = vld [vmem:[#allocation7 + $0x2f0] sm:$0xf0]  ;;  %v3019_v15 = vld [vmem:[#allocation7 + $0x32c] sm:$0xf0] }
  0x6a   :  { %1435 = vmatpush.bf16.msra.mxu1 %v2424_v37  ;;  %v2428_v37 = vor.u32 %v2969_v32, %v2425_v33  ;;  %v2953_v16 = vld [vmem:[#allocation7 + $0x124] sm:$0xf]  ;;  %v2361_v18 = vld [vmem:[#allocation7 + $0x130] sm:$0xf0]  ;;  %v2599_v23 = vld [vmem:[#allocation7 + $0x300] sm:$0xf] }
  0x6b   :  { %1448 = vmatpush.bf16.msra.mxu2 %v2552_v42  ;;  %v2412_v42 = vor.u32 %v2965_v38, %v2409_v39  ;;  %v2364_v19 = vor.u32 %v2953_v16, %v2361_v18  ;;  %v3015_v24 = vld [vmem:[#allocation7 + $0x30c] sm:$0xf0]  ;;  %v2949_v26 = vld [vmem:[#allocation7 + $0x104] sm:$0xf]  ;;  %v2345_v27 = vld [vmem:[#allocation7 + $0x110] sm:$0xf0] }
  0x6c   :  { %1461 = vmatpush.bf16.msra.mxu3 %v2680_v52  ;;  %v2648_v52 = vor.u32 %v3027_v50, %v2647_v49  ;;  %v2348_v29 = vor.u32 %v2949_v26, %v2345_v27  ;;  %v2713_v30 = vld [vmem:[#allocation7 + $0x3f0] sm:$0xf0]  ;;  %v3001_v32 = vld [vmem:[#allocation7 + $0x2a4] sm:$0xf]  ;;  %v2980_v26 = vld [vmem:[#allocation7 + $0x1f4] sm:$0xf0] }
  0x6d   :  { %1423 = vmatpush.bf16.msra.mxu0 %v2280_v56  ;;  %v2268_v56 = vor.u32 %v2929_v40, %v2265_v41  ;;  %v2553_v33 = vld [vmem:[#allocation7 + $0x2b0] sm:$0xf0]  ;;  %v3037_v35 = vld [vmem:[#allocation7 + $0x3c4] sm:$0xf] }
  0x6e   :  { %1436 = vmatpush.bf16.msra.mxu1 %v2408_v47  ;;  %v2249_v47 = vld [vmem:[#allocation7 + $0x50] sm:$0xf0]  ;;  %v2997_v38 = vld [vmem:[#allocation7 + $0x284] sm:$0xf] }
  0x6f   :  { %1449 = vmatpush.bf16.msra.mxu2 %v2536_v53  ;;  %v2252_v48 = vor.u32 %v2925_v45, %v2249_v47  ;;  %v2393_v53 = vld [vmem:[#allocation7 + $0x170] sm:$0xf0]  ;;  %v3033_v40 = vld [vmem:[#allocation7 + $0x3a4] sm:$0xf]  ;;  %v3349_v45 = vld [vmem:[#allocation6] sm:$0xf] }
  0x70   :  { %1462 = vmatpush.bf16.msra.mxu3 %v2664_v2  ;;  %v2632_v2 = vor.u32 %v3023_v0, %v2631_v63  ;;  %v2697_v36 = vld [vmem:[#allocation7 + $0x3d0] sm:$0xf0]  ;;  %v2989_v49 = vld [vmem:[#allocation7 + $0x244] sm:$0xf] }
  0x71   :  { %1424 = vmatpush.bf16.msra.mxu0 %v2264_v54  ;;  %v2396_v54 = vor.u32 %v2961_v51, %v2393_v53  ;;  %v2537_v39 = vld [vmem:[#allocation7 + $0x290] sm:$0xf0]  ;;  %v202_v51 = vperm.slane %v3349_v45, 0  ;;  %v3025_v53 = vld [vmem:[#allocation7 + $0x364] sm:$0xf] }
  0x72   :  { %1437 = vmatpush.bf16.msra.mxu1 %v2392_v61  ;;  %v2233_v61 = vld [vmem:[#allocation7 + $0x30] sm:$0xf0]  ;;  %v3021_v0 = vld [vmem:[#allocation7 + $0x344] sm:$0xf] }
  0x73   :  { %1450 = vmatpush.bf16.msra.mxu2 %v2520_v3  ;;  %v2236_v62 = vor.u32 %v2921_v59, %v2233_v61  ;;  %v2377_v3 = vld [vmem:[#allocation7 + $0x150] sm:$0xf0]  ;;  %v2985_v59 = vld [vmem:[#allocation7 + $0x224] sm:$0xf] }
  0x74   :  { %1463 = vmatpush.bf16.msra.mxu3 %v2648_v52  ;;  %v2681_v41 = vld [vmem:[#allocation7 + $0x3b0] sm:$0xf0]  ;;  %v3017_v16 = vld [vmem:[#allocation7 + $0x324] sm:$0xf] }
  0x75   :  { %1425 = vmatpush.bf16.msra.mxu0 %v2248_v4  ;;  %v2380_v4 = vor.u32 %v2957_v1, %v2377_v3  ;;  %v2521_v43 = vld [vmem:[#allocation7 + $0x270] sm:$0xf0]  ;;  %v2335_v3 = vld [vmem:[#allocation7 + $0xe8] sm:$0xf]  ;;  %v3013_v27 = vld [vmem:[#allocation7 + $0x304] sm:$0xf] }
  0x76   :  { %1438 = vmatpush.bf16.msra.mxu1 %v2376_v7  ;;  %v2472_v7 = vor.u32 %v2983_v6, %v2471_v5  ;;  %v2665_v47 = vld [vmem:[#allocation7 + $0x390] sm:$0xf0]  ;;  %v203_v6 = vperm.slane %v3349_v45, 1 }
  0x77   :  { %1451 = vmatpush.bf16.msra.mxu2 %v2504_v46  ;;  %v3029_v46 = vld [vmem:[#allocation7 + $0x384] sm:$0xf]  ;;  %v2505_v50 = vld [vmem:[#allocation7 + $0x250] sm:$0xf0] }
  0x78   :  { %1464 = vmatpush.bf16.msra.mxu3 %v2632_v2  ;;  %v2508_v52 = vor.u32 %v2989_v49, %v2505_v50  ;;  %v2633_v1 = vld [vmem:[#allocation7 + $0x350] sm:$0xf0]  ;;  %v2415_v49 = vld [vmem:[#allocation7 + $0x188] sm:$0xf]  ;;  %v2968_v50 = vld [vmem:[#allocation7 + $0x194] sm:$0xf0] }
  0x79   :  { %1426 = vmatpush.bf16.msra.mxu0 %v2232_v10  ;;  %v3009_v10 = vld [vmem:[#allocation7 + $0x2e4] sm:$0xf]  ;;  %v2636_v5 = vor.u32 %v3021_v0, %v2633_v1  ;;  %v2473_v8 = vld [vmem:[#allocation7 + $0x210] sm:$0xf0] }
  0x7a   :  { %1439 = vmatpush.bf16.msra.mxu1 %v2360_v14  ;;  %v2588_v13 = vor.u32 %v3009_v10, %v2585_v12  ;;  %v2615_v14 = vld [vmem:[#allocation7 + $0x320] sm:$0xf]  ;;  %v2319_v12 = vld [vmem:[#allocation7 + $0xc8] sm:$0xf] }
  0x7b   :  { %1452 = vmatpush.bf16.msra.mxu2 %v2488_v60  ;;  %v2616_v17 = vor.u32 %v3019_v15, %v2615_v14  ;;  %v2489_v60 = vld [vmem:[#allocation7 + $0x230] sm:$0xf0]  ;;  %v2944_v15 = vld [vmem:[#allocation7 + $0xd4] sm:$0xf0] }
  0x7c   :  { %v2492_v63 = vor.u32 %v2985_v59, %v2489_v60  ;;  %v2964_v59 = vld [vmem:[#allocation7 + $0x174] sm:$0xf0]  ;;  %v2239_v60 = vld [vmem:[#allocation7 + $0x28] sm:$0xf] }
  0x7d   :  { %1427 = vmatpush.bf16.msra.mxu0 %v2216_v20  ;;  %v3005_v20 = vld [vmem:[#allocation7 + $0x2c4] sm:$0xf]  ;;  %1465 = vmatpush.bf16.msra.mxu3 %v2616_v17  ;;  %v2617_v17 = vld [vmem:[#allocation7 + $0x330] sm:$0xf0] }
  0x7e   :  { %1440 = vmatpush.bf16.msra.mxu1 %v2344_v22 }
  0x7f   :  { %1453 = vmatpush.bf16.msra.mxu2 %v2472_v7  ;;  %v2981_v7 = vld [vmem:[#allocation7 + $0x204] sm:$0xf] }
  0x80   :  { %v2476_v10 = vor.u32 %v2981_v7, %v2473_v8  ;;  %v2591_v7 = vld [vmem:[#allocation7 + $0x2e8] sm:$0xf] }
  0x81   :  { %1472 = vmatpush.bf16.msrb.mxu0 %v2332_v21  ;;  %v2569_v21 = vld [vmem:[#allocation7 + $0x2d0] sm:$0xf0] }
  0x82   :  { %1485 = vmatpush.bf16.msrb.mxu1 %v2460_v25  ;;  %v2572_v22 = vor.u32 %v3005_v20, %v2569_v21  ;;  %v2600_v25 = vor.u32 %v3015_v24, %v2599_v23  ;;  %v2620_v21 = vor.u32 %v3017_v16, %v2617_v17  ;;  %v2367_v17 = vld [vmem:[#allocation7 + $0x128] sm:$0xf] }
  0x83   :  { %1498 = vmatpush.bf16.msrb.mxu2 %v2588_v13 }
  0x84   :  { %1466 = vmatpush.bf16.msra.mxu3 %v2600_v25  ;;  %v2320_v25 = vor.u32 %v2944_v15, %v2319_v12  ;;  %v205_v12 = vperm.slane %v3349_v45, 3 }
  0x85   :  { %1473 = vmatpush.bf16.msrb.mxu0 %v2316_v28  ;;  %v3041_v28 = vld [vmem:[#allocation7 + $0x3e4] sm:$0xf] }
  0x86   :  { %1486 = vmatpush.bf16.msrb.mxu1 %v2444_v31  ;;  %v2716_v31 = vor.u32 %v3041_v28, %v2713_v30  ;;  %v2601_v28 = vld [vmem:[#allocation7 + $0x310] sm:$0xf0]  ;;  %v2940_v30 = vld [vmem:[#allocation7 + $0xb4] sm:$0xf0] }
  0x87   :  { %1499 = vmatpush.bf16.msrb.mxu2 %v2572_v22  ;;  %v2463_v22 = vld [vmem:[#allocation7 + $0x1e8] sm:$0xf] }
  0x88   :  { %1511 = vmatpush.bf16.msrb.mxu3 %v2716_v31  ;;  %v2604_v31 = vor.u32 %v3013_v27, %v2601_v28 }
  0x89   :  { %1474 = vmatpush.bf16.msrb.mxu0 %v2300_v34  ;;  %v2556_v34 = vor.u32 %v3001_v32, %v2553_v33  ;;  %v2464_v33 = vor.u32 %v2980_v26, %v2463_v22  ;;  %v2321_v26 = vld [vmem:[#allocation7 + $0xd8] sm:$0xf0] }
  0x8a   :  { %1487 = vmatpush.bf16.msrb.mxu1 %v2428_v37  ;;  %v2700_v37 = vor.u32 %v3037_v35, %v2697_v36  ;;  %v2447_v36 = vld [vmem:[#allocation7 + $0x1c8] sm:$0xf] }
  0x8b   :  { %1500 = vmatpush.bf16.msrb.mxu2 %v2556_v34 }
  0x8c   :  { %1512 = vmatpush.bf16.msrb.mxu3 %v2700_v37  ;;  %v2976_v37 = vld [vmem:[#allocation7 + $0x1d4] sm:$0xf0] }
  0x8d   :  { %1475 = vmatpush.bf16.msrb.mxu0 %v2284_v55  ;;  %v2540_v55 = vor.u32 %v2997_v38, %v2537_v39  ;;  %v2287_v39 = vld [vmem:[#allocation7 + $0x88] sm:$0xf] }
  0x8e   :  { %1488 = vmatpush.bf16.msrb.mxu1 %v2412_v42  ;;  %v2684_v42 = vor.u32 %v3033_v40, %v2681_v41  ;;  %v2448_v41 = vor.u32 %v2976_v37, %v2447_v36 }
  0x8f   :  { %1501 = vmatpush.bf16.msrb.mxu2 %v2540_v55  ;;  %v2936_v55 = vld [vmem:[#allocation7 + $0x94] sm:$0xf0] }
  0x90   :  { %1513 = vmatpush.bf16.msrb.mxu3 %v2684_v42  ;;  %v2288_v42 = vor.u32 %v2936_v55, %v2287_v39  ;;  %v2978_v39 = vld [vmem:[#allocation7 + $0x1ec] sm:$0xf]  ;;  %v2465_v55 = vld [vmem:[#allocation7 + $0x1f8] sm:$0xf0] }
  0x91   :  { %1476 = vmatpush.bf16.msrb.mxu0 %v2268_v56  ;;  %v2993_v56 = vld [vmem:[#allocation7 + $0x264] sm:$0xf] }
  0x92   :  { %1489 = vmatpush.bf16.msrb.mxu1 %v2396_v54  ;;  %v2524_v44 = vor.u32 %v2993_v56, %v2521_v43  ;;  %v2649_v54 = vld [vmem:[#allocation7 + $0x370] sm:$0xf0]  ;;  %v2431_v56 = vld [vmem:[#allocation7 + $0x1a8] sm:$0xf]  ;;  %v2972_v43 = vld [vmem:[#allocation7 + $0x1b4] sm:$0xf0] }
  0x93   :  { %v2652_v57 = vor.u32 %v3025_v53, %v2649_v54  ;;  %v2416_v53 = vor.u32 %v2968_v50, %v2415_v49  ;;  %v204_v54 = vperm.slane %v3349_v45, 2  ;;  %v3040_v49 = vld [vmem:[#allocation7 + $0x3d4] sm:$0xf0] }
  0x94   :  { %1502 = vmatpush.bf16.msrb.mxu2 %v2524_v44  ;;  %v2271_v44 = vld [vmem:[#allocation7 + $0x68] sm:$0xf] }
  0x95   :  { %1477 = vmatpush.bf16.msrb.mxu0 %v2252_v48  ;;  %v2668_v48 = vor.u32 %v3029_v46, %v2665_v47  ;;  %v2932_v46 = vld [vmem:[#allocation7 + $0x74] sm:$0xf0]  ;;  %v2432_v47 = vor.u32 %v2972_v43, %v2431_v56  ;;  %v2305_v56 = vld [vmem:[#allocation7 + $0xb8] sm:$0xf0] }
  0x96   :  { %1490 = vmatpush.bf16.msrb.mxu1 %v2380_v4  ;;  %v2948_v4 = vld [vmem:[#allocation7 + $0xf4] sm:$0xf0] }
  0x97   :  { %1514 = vmatpush.bf16.msrb.mxu3 %v2668_v48  ;;  %v2272_v48 = vor.u32 %v2932_v46, %v2271_v44 }
  0x98   :  { %1503 = vmatpush.bf16.msrb.mxu2 %v2508_v52  ;;  %v2928_v52 = vld [vmem:[#allocation7 + $0x54] sm:$0xf0] }
  0x99   :  { %1478 = vmatpush.bf16.msrb.mxu0 %v2236_v62 }
  0x9a   :  { %1491 = vmatpush.bf16.msrb.mxu1 %v2364_v19 }
  0x9b   :  { %1515 = vmatpush.bf16.msrb.mxu3 %v2652_v57 }
  0x9c   :  { %1504 = vmatpush.bf16.msrb.mxu2 %v2492_v63 }
  0x9d   :  { %1479 = vmatpush.bf16.msrb.mxu0 %v2220_v11  ;;  %v2336_v11 = vor.u32 %v2948_v4, %v2335_v3  ;;  %v2383_v3 = vld [vmem:[#allocation7 + $0x148] sm:$0xf]  ;;  %v2960_v4 = vld [vmem:[#allocation7 + $0x154] sm:$0xf0] }
  0x9e   :  { %1492 = vmatpush.bf16.msrb.mxu1 %v2348_v29  ;;  %v2303_v29 = vld [vmem:[#allocation7 + $0xa8] sm:$0xf] }
  0x9f   :  { %1516 = vmatpush.bf16.msrb.mxu3 %v2636_v5  ;;  %v2304_v35 = vor.u32 %v2940_v30, %v2303_v29  ;;  %v2223_v5 = vld [vmem:[#allocation7 + $0x8] sm:$0xf] }
  0xa0   :  { %1505 = vmatpush.bf16.msrb.mxu2 %v2476_v10  ;;  %v2946_v10 = vld [vmem:[#allocation7 + $0xec] sm:$0xf]  ;;  %v2351_v30 = vld [vmem:[#allocation7 + $0x108] sm:$0xf] }
  0xa3   :  { %1517 = vmatpush.bf16.msrb.mxu3 %v2620_v21  ;;  %v2575_v21 = vld [vmem:[#allocation7 + $0x2c8] sm:$0xf] }
  0xa7   :  { %1518 = vmatpush.bf16.msrb.mxu3 %v2604_v31 }
  0xbd   :  { %v539_v58 = vpop.f32.mrf.mxu0 }
  0xbe   :  { %v540_v61 = vadd.f32 %v539_v58, %v202_v51  ;;  %v552_v62 = vpop.f32.mrf.mxu1  ;;  %v2255_v51 = vld [vmem:[#allocation7 + $0x48] sm:$0xf] }
  0xbf   :  { %v2256_v57 = vor.u32 %v2928_v52, %v2255_v51  ;;  %v2399_v58 = vld [vmem:[#allocation7 + $0x168] sm:$0xf] }
  0xc0   :  { %v553_v2 = vadd.f32 %v552_v62, %v540_v61  ;;  %v2924_v61 = vld [vmem:[#allocation7 + $0x34] sm:$0xf0]  ;;  %v2400_v63 = vor.u32 %v2964_v59, %v2399_v58 }
  0xc1   :  { %v3000_v59 = vld [vmem:[#allocation7 + $0x294] sm:$0xf0] }
  0xc2   :  { %v634_v9 = vmax.f32 %v553_v2, 0.0  ;;  %v2240_v2 = vor.u32 %v2924_v61, %v2239_v60  ;;  %v2934_v60 = vld [vmem:[#allocation7 + $0x8c] sm:$0xf]  ;;  %v2289_v61 = vld [vmem:[#allocation7 + $0x98] sm:$0xf0] }
  0xc4   :  { %v3353_v13 = vpack.c.bf16 %v634_v9, %v634_v9  ;;  %v3012_v9 = vld [vmem:[#allocation7 + $0x2f4] sm:$0xf0] }
  0xc5   :  { %v565_v14 = vpop.f32.mrf.mxu2  ;;  %v541_v20 = vpop.f32.mrf.mxu0 }
  0xc6   :  { %v566_v18 = vadd.f32 %v565_v14, %v203_v6  ;;  %v578_v19 = vpop.f32.mrf.mxu3  ;;  %1428 = vmatmul.bf16.vlgmr.msra.gmra.mxu0 %v3353_v13  ;;  %v554_v23 = vpop.f32.mrf.mxu1  ;;  %v2920_v6 = vld [vmem:[#allocation7 + $0x14] sm:$0xf0]  ;;  %v2384_v14 = vor.u32 %v2960_v4, %v2383_v3  ;;  %v2292_v3 = vor.u32 %v2934_v60, %v2289_v61 }
  0xc7   :  { %1524 = vmatpush.bf16.msra.mxu0 %v2336_v11  ;;  %v2337_v11 = vld [vmem:[#allocation7 + $0xf8] sm:$0xf0]  ;;  %v2224_v16 = vor.u32 %v2920_v6, %v2223_v5  ;;  %v3036_v4 = vld [vmem:[#allocation7 + $0x3b4] sm:$0xf0]  ;;  %v2970_v5 = vld [vmem:[#allocation7 + $0x1ac] sm:$0xf] }
  0xc8   :  { %v579_v24 = vadd.f32 %v578_v19, %v566_v18  ;;  %v2956_v18 = vld [vmem:[#allocation7 + $0x134] sm:$0xf0]  ;;  %v2592_v19 = vor.u32 %v3012_v9, %v2591_v7  ;;  %v2340_v20 = vor.u32 %v2946_v10, %v2337_v11  ;;  %v2433_v6 = vld [vmem:[#allocation7 + $0x1b8] sm:$0xf0]  ;;  %v2930_v7 = vld [vmem:[#allocation7 + $0x6c] sm:$0xf] }
  0xc9   :  { %v2368_v45 = vor.u32 %v2956_v18, %v2367_v17  ;;  %v2527_v9 = vld [vmem:[#allocation7 + $0x268] sm:$0xf]  ;;  %v2996_v10 = vld [vmem:[#allocation7 + $0x274] sm:$0xf0]  ;;  %v2966_v17 = vld [vmem:[#allocation7 + $0x18c] sm:$0xf] }
  0xca   :  { %v635_v32 = vmax.f32 %v579_v24, 0.0  ;;  %v3008_v24 = vld [vmem:[#allocation7 + $0x2d4] sm:$0xf0]  ;;  %v2417_v18 = vld [vmem:[#allocation7 + $0x198] sm:$0xf0] }
  0xcb   :  { %1525 = vmatpush.bf16.msra.mxu0 %v2320_v25  ;;  %v2942_v25 = vld [vmem:[#allocation7 + $0xcc] sm:$0xf]  ;;  %v2576_v37 = vor.u32 %v3008_v24, %v2575_v21  ;;  %v2257_v21 = vld [vmem:[#allocation7 + $0x58] sm:$0xf0]  ;;  %v2992_v24 = vld [vmem:[#allocation7 + $0x254] sm:$0xf0] }
  0xcc   :  { %v3356_v34 = vpack.c.bf16 %v635_v32, %v635_v32  ;;  %v2952_v32 = vld [vmem:[#allocation7 + $0x114] sm:$0xf0] }
  0xcd   :  { %v567_v38 = vpop.f32.mrf.mxu2  ;;  %v2352_v44 = vor.u32 %v2952_v32, %v2351_v30  ;;  %v2401_v30 = vld [vmem:[#allocation7 + $0x178] sm:$0xf0]  ;;  %v2922_v32 = vld [vmem:[#allocation7 + $0x2c] sm:$0xf] }
  0xce   :  { %1441 = vmatmul.bf16.vlgmr.msra.gmra.mxu1 %v3356_v34  ;;  %v580_v40 = vpop.f32.mrf.mxu3  ;;  %v2324_v38 = vor.u32 %v2942_v25, %v2321_v26  ;;  %v2420_v26 = vor.u32 %v2966_v17, %v2417_v18  ;;  %v2998_v18 = vld [vmem:[#allocation7 + $0x28c] sm:$0xf] }
  0xcf   :  { %1537 = vmatpush.bf16.msra.mxu1 %v2464_v33  ;;  %1526 = vmatpush.bf16.msra.mxu0 %v2304_v35  ;;  %v2719_v33 = vld [vmem:[#allocation7 + $0x3e8] sm:$0xf]  ;;  %v3044_v35 = vld [vmem:[#allocation7 + $0x3f4] sm:$0xf0] }
  0xd0   :  { %v2559_v40 = vld [vmem:[#allocation7 + $0x2a8] sm:$0xf]  ;;  %v2720_v46 = vor.u32 %v3044_v35, %v2719_v33  ;;  %v2241_v33 = vld [vmem:[#allocation7 + $0x38] sm:$0xf0] }
  0xd1   :  { %v2495_v35 = vld [vmem:[#allocation7 + $0x228] sm:$0xf] }
  0xd3   :  { %1538 = vmatpush.bf16.msra.mxu1 %v2448_v41  ;;  %1527 = vmatpush.bf16.msra.mxu0 %v2288_v42  ;;  %v3004_v41 = vld [vmem:[#allocation7 + $0x2b4] sm:$0xf0]  ;;  %v2938_v42 = vld [vmem:[#allocation7 + $0xac] sm:$0xf] }
  0xd4   :  { %v2560_v51 = vor.u32 %v3004_v41, %v2559_v40  ;;  %v2308_v52 = vor.u32 %v2938_v42, %v2305_v56  ;;  %v3024_v40 = vld [vmem:[#allocation7 + $0x354] sm:$0xf0]  ;;  %v2958_v41 = vld [vmem:[#allocation7 + $0x14c] sm:$0xf]  ;;  %v2385_v42 = vld [vmem:[#allocation7 + $0x158] sm:$0xf0] }
  0xd6   :  { %1480 = vmatmul.bf16.vlgmr.msrb.gmra.mxu0 %v3353_v13 }
  0xd7   :  { %1539 = vmatpush.bf16.msra.mxu1 %v2432_v47  ;;  %1528 = vmatpush.bf16.msra.mxu0 %v2272_v48  ;;  %v2468_v47 = vor.u32 %v2978_v39, %v2465_v55  ;;  %v2703_v48 = vld [vmem:[#allocation7 + $0x3c8] sm:$0xf]  ;;  %v2244_v55 = vor.u32 %v2922_v32, %v2241_v33  ;;  %v3026_v32 = vld [vmem:[#allocation7 + $0x36c] sm:$0xf]  ;;  %v2657_v33 = vld [vmem:[#allocation7 + $0x378] sm:$0xf0] }
  0xd8   :  { %v2639_v39 = vld [vmem:[#allocation7 + $0x348] sm:$0xf] }
  0xdb   :  { %1540 = vmatpush.bf16.msra.mxu1 %v2416_v53  ;;  %1529 = vmatpush.bf16.msra.mxu0 %v2256_v57  ;;  %v2974_v53 = vld [vmem:[#allocation7 + $0x1cc] sm:$0xf]  ;;  %v2543_v57 = vld [vmem:[#allocation7 + $0x288] sm:$0xf] }
  0xdd   :  { %v591_v62 = vpop.f32.mrf.mxu0 }
  0xde   :  { %v592_v0 = vadd.f32 %v591_v62, %v204_v54  ;;  %v604_v1 = vpop.f32.mrf.mxu1  ;;  %1493 = vmatmul.bf16.vlgmr.msrb.gmra.mxu1 %v3356_v34  ;;  %v2449_v54 = vld [vmem:[#allocation7 + $0x1d8] sm:$0xf0] }
  0xdf   :  { %1541 = vmatpush.bf16.msra.mxu1 %v2400_v63  ;;  %1530 = vmatpush.bf16.msra.mxu0 %v2240_v2  ;;  %v2704_v63 = vor.u32 %v3040_v49, %v2703_v48  ;;  %v2544_v2 = vor.u32 %v3000_v59, %v2543_v57  ;;  %v2640_v48 = vor.u32 %v3024_v40, %v2639_v39  ;;  %v3020_v57 = vld [vmem:[#allocation7 + $0x334] sm:$0xf0]  ;;  %v2369_v59 = vld [vmem:[#allocation7 + $0x138] sm:$0xf0]  ;;  %v2982_v40 = vld [vmem:[#allocation7 + $0x20c] sm:$0xf] }
  0xe0   :  { %v605_v8 = vadd.f32 %v604_v1, %v592_v0  ;;  %v2452_v0 = vor.u32 %v2974_v53, %v2449_v54  ;;  %v2687_v1 = vld [vmem:[#allocation7 + $0x3a8] sm:$0xf]  ;;  %v2388_v49 = vor.u32 %v2958_v41, %v2385_v42  ;;  %v2641_v39 = vld [vmem:[#allocation7 + $0x358] sm:$0xf0] }
  0xe1   :  { %v2688_v11 = vor.u32 %v3036_v4, %v2687_v1  ;;  %v2623_v53 = vld [vmem:[#allocation7 + $0x328] sm:$0xf]  ;;  %v2577_v1 = vld [vmem:[#allocation7 + $0x2d8] sm:$0xf0]  ;;  %v2950_v4 = vld [vmem:[#allocation7 + $0x10c] sm:$0xf] }
  0xe2   :  { %v636_v15 = vmax.f32 %v605_v8, 0.0  ;;  %v2273_v8 = vld [vmem:[#allocation7 + $0x78] sm:$0xf0] }
  0xe3   :  { %1542 = vmatpush.bf16.msra.mxu1 %v2384_v14  ;;  %1531 = vmatpush.bf16.msra.mxu0 %v2224_v16  ;;  %v2671_v14 = vld [vmem:[#allocation7 + $0x388] sm:$0xf]  ;;  %v3032_v16 = vld [vmem:[#allocation7 + $0x394] sm:$0xf0]  ;;  %v2481_v41 = vld [vmem:[#allocation7 + $0x218] sm:$0xf0] }
  0xe4   :  { %v3363_v22 = vpack.c.bf16 %v636_v15, %v636_v15  ;;  %v2276_v15 = vor.u32 %v2930_v7, %v2273_v8  ;;  %v2672_v25 = vor.u32 %v3032_v16, %v2671_v14  ;;  %v2721_v7 = vld [vmem:[#allocation7 + $0x3f8] sm:$0xf0] }
  0xe5   :  { %v617_v23 = vpop.f32.mrf.mxu2  ;;  %v593_v29 = vpop.f32.mrf.mxu0  ;;  %v2705_v16 = vld [vmem:[#allocation7 + $0x3d8] sm:$0xf0] }
  0xe6   :  { %v618_v27 = vadd.f32 %v617_v23, %v205_v12  ;;  %v630_v28 = vpop.f32.mrf.mxu3  ;;  %v606_v31 = vpop.f32.mrf.mxu1  ;;  %1454 = vmatmul.bf16.vlgmr.msra.gmra.mxu2 %v3363_v22  ;;  %1532 = vmatmul.bf16.vlgmr.msra.gmra.mxu0 %v3353_v13  ;;  %v2436_v12 = vor.u32 %v2970_v5, %v2433_v6  ;;  %v2511_v23 = vld [vmem:[#allocation7 + $0x248] sm:$0xf]  ;;  %v3028_v29 = vld [vmem:[#allocation7 + $0x374] sm:$0xf0]  ;;  %v2353_v5 = vld [vmem:[#allocation7 + $0x118] sm:$0xf0] }
  0xe7   :  { %1550 = vmatpush.bf16.msra.mxu2 %v2592_v19  ;;  %1576 = vmatpush.bf16.msrb.mxu0 %v2340_v20  ;;  %v2528_v19 = vor.u32 %v2996_v10, %v2527_v9  ;;  %v2926_v20 = vld [vmem:[#allocation7 + $0x4c] sm:$0xf]  ;;  %v2512_v31 = vor.u32 %v2992_v24, %v2511_v23  ;;  %v2356_v10 = vor.u32 %v2950_v4, %v2353_v5  ;;  %v2689_v23 = vld [vmem:[#allocation7 + $0x3b8] sm:$0xf0] }
  0xe8   :  { %v631_v36 = vadd.f32 %v630_v28, %v618_v27  ;;  %1543 = vmatpush.bf16.msra.mxu1 %v2368_v45  ;;  %v2655_v27 = vld [vmem:[#allocation7 + $0x368] sm:$0xf]  ;;  %v2260_v28 = vor.u32 %v2926_v20, %v2257_v21  ;;  %v2962_v45 = vld [vmem:[#allocation7 + $0x16c] sm:$0xf]  ;;  %v3056_v4 = vld [vmem:[#allocation10 + $0x58] sm:$0xff] }
  0xe9   :  { %v3042_v6 = vld [vmem:[#allocation7 + $0x3ec] sm:$0xf]  ;;  %v3068_v5 = vld [vmem:[#allocation10 + $0xb8] sm:$0xff] }
  0xea   :  { %v637_v43 = vmax.f32 %v631_v36, 0.0  ;;  %v2988_v36 = vld [vmem:[#allocation7 + $0x234] sm:$0xf0]  ;;  %v2724_v14 = vor.u32 %v3042_v6, %v2721_v7  ;;  %v3034_v21 = vld [vmem:[#allocation7 + $0x3ac] sm:$0xf] }
  0xeb   :  { %1551 = vmatpush.bf16.msra.mxu2 %v2576_v37  ;;  %1577 = vmatpush.bf16.msrb.mxu0 %v2324_v38  ;;  %v2656_v37 = vor.u32 %v3028_v29, %v2655_v27  ;;  %v2404_v38 = vor.u32 %v2962_v45, %v2401_v30  ;;  %v2496_v56 = vor.u32 %v2988_v36, %v2495_v35  ;;  %v3030_v27 = vld [vmem:[#allocation7 + $0x38c] sm:$0xf]  ;;  %v2513_v30 = vld [vmem:[#allocation7 + $0x258] sm:$0xf0]  ;;  %v3055_v6 = vld [vmem:[#allocation10 + $0x50] sm:$0xff] }
  0xec   :  { %v3367_v50 = vpack.c.bf16 %v637_v43, %v637_v43  ;;  %1544 = vmatpush.bf16.msra.mxu1 %v2352_v44  ;;  %v2918_v43 = vld [vmem:[#allocation7 + $0xc] sm:$0xf]  ;;  %v2225_v44 = vld [vmem:[#allocation7 + $0x18] sm:$0xf0]  ;;  %v3067_v7 = vld [vmem:[#allocation10 + $0xb0] sm:$0xff] }
  0xed   :  { %v619_v58 = vpop.f32.mrf.mxu2  ;;  %v2228_v54 = vor.u32 %v2918_v43, %v2225_v44  ;;  %v2990_v45 = vld [vmem:[#allocation7 + $0x24c] sm:$0xf]  ;;  %v2497_v36 = vld [vmem:[#allocation7 + $0x238] sm:$0xf0]  ;;  %v2484_v44 = vor.u32 %v2982_v40, %v2481_v41  ;;  %v3073_v41 = vld [vmem:[#allocation10 + $0xe0] sm:$0xff] }
  0xee   :  { %v632_v62 = vpop.f32.mrf.mxu3  ;;  %1467 = vmatmul.bf16.vlgmr.msra.gmra.mxu3 %v3367_v50  ;;  %v2954_v58 = vld [vmem:[#allocation7 + $0x12c] sm:$0xf]  ;;  %v2625_v43 = vld [vmem:[#allocation7 + $0x338] sm:$0xf0] }
  0xef   :  { %1563 = vmatpush.bf16.msra.mxu3 %v2720_v46  ;;  %1552 = vmatpush.bf16.msra.mxu2 %v2560_v51  ;;  %v2479_v46 = vld [vmem:[#allocation7 + $0x208] sm:$0xf]  ;;  %v3010_v51 = vld [vmem:[#allocation7 + $0x2ec] sm:$0xf]  ;;  %v2624_v62 = vor.u32 %v3020_v57, %v2623_v53 }
  0xf0   :  { %1589 = vmatpush.bf16.msrb.mxu1 %v2468_v47  ;;  %1578 = vmatpush.bf16.msrb.mxu0 %v2308_v52  ;;  %v2984_v47 = vld [vmem:[#allocation7 + $0x214] sm:$0xf0]  ;;  %v2593_v52 = vld [vmem:[#allocation7 + $0x2f8] sm:$0xf0]  ;;  %v2986_v35 = vld [vmem:[#allocation7 + $0x22c] sm:$0xf] }
  0xf1   :  { %1545 = vmatmul.bf16.vlgmr.msra.gmra.mxu1 %v3356_v34  ;;  %v2480_v60 = vor.u32 %v2984_v47, %v2479_v46  ;;  %v2596_v61 = vor.u32 %v3010_v51, %v2593_v52  ;;  %v3014_v47 = vld [vmem:[#allocation7 + $0x30c] sm:$0xf]  ;;  %v3052_v51 = vld [vmem:[#allocation10 + $0x38] sm:$0xff]  ;;  %v3051_v52 = vld [vmem:[#allocation10 + $0x30] sm:$0xff] }
  0xf2   :  { %v3050_v53 = vld [vmem:[#allocation10 + $0x28] sm:$0xff] }
  0xf3   :  { %1564 = vmatpush.bf16.msra.mxu3 %v2704_v63  ;;  %1553 = vmatpush.bf16.msra.mxu2 %v2544_v2  ;;  %v2372_v63 = vor.u32 %v2954_v58, %v2369_v59  ;;  %v2607_v2 = vld [vmem:[#allocation7 + $0x308] sm:$0xf]  ;;  %v3048_v58 = vld [vmem:[#allocation10 + $0x18] sm:$0xff] }
  0xf4   :  { %1590 = vmatpush.bf16.msrb.mxu1 %v2452_v0  ;;  %1579 = vmatpush.bf16.msrb.mxu0 %v2292_v3  ;;  %v3006_v0 = vld [vmem:[#allocation7 + $0x2cc] sm:$0xf]  ;;  %v3016_v3 = vld [vmem:[#allocation7 + $0x314] sm:$0xf0]  ;;  %v3060_v59 = vld [vmem:[#allocation10 + $0x78] sm:$0xff] }
  0xf5   :  { %v2580_v8 = vor.u32 %v3006_v0, %v2577_v1  ;;  %v2608_v9 = vor.u32 %v3016_v3, %v2607_v2  ;;  %v3045_v0 = vld [vmem:[#allocation10] sm:$0xff] }
  0xf6   :  { %1506 = vmatmul.bf16.vlgmr.msrb.gmra.mxu2 %v3363_v22  ;;  %v3057_v1 = vld [vmem:[#allocation10 + $0x60] sm:$0xff] }
  0xf7   :  { %1565 = vmatpush.bf16.msra.mxu3 %v2688_v11  ;;  %1554 = vmatpush.bf16.msra.mxu2 %v2528_v19  ;;  %v3002_v11 = vld [vmem:[#allocation7 + $0x2ac] sm:$0xf]  ;;  %v2545_v19 = vld [vmem:[#allocation7 + $0x298] sm:$0xf0] }
  0xf8   :  { %1591 = vmatpush.bf16.msrb.mxu1 %v2436_v12  ;;  %1580 = vmatpush.bf16.msrb.mxu0 %v2276_v15  ;;  %v2561_v12 = vld [vmem:[#allocation7 + $0x2b8] sm:$0xf0]  ;;  %v3038_v15 = vld [vmem:[#allocation7 + $0x3cc] sm:$0xf]  ;;  %v2548_v24 = vor.u32 %v2998_v18, %v2545_v19 }
  0xf9   :  { %v2564_v17 = vor.u32 %v3002_v11, %v2561_v12  ;;  %v2708_v20 = vor.u32 %v3038_v15, %v2705_v16  ;;  %v3066_v11 = vld [vmem:[#allocation10 + $0xa8] sm:$0xff]  ;;  %v3379_v12 = vld [vmem:[#allocation9] sm:$0xf]  ;;  %v3065_v15 = vld [vmem:[#allocation10 + $0xa0] sm:$0xff] }
  0xfa   :  { %v772_v16 = vperm.slane %v3379_v12, 0  ;;  %v3064_v19 = vld [vmem:[#allocation10 + $0x98] sm:$0xff] }
  0xfb   :  { %1566 = vmatpush.bf16.msra.mxu3 %v2672_v25  ;;  %1555 = vmatpush.bf16.msra.mxu2 %v2512_v31  ;;  %v2529_v25 = vld [vmem:[#allocation7 + $0x278] sm:$0xf0] }
  0xfc   :  { %1592 = vmatpush.bf16.msrb.mxu1 %v2420_v26  ;;  %1581 = vmatpush.bf16.msrb.mxu0 %v2260_v28  ;;  %v2692_v26 = vor.u32 %v3034_v21, %v2689_v23  ;;  %v2673_v28 = vld [vmem:[#allocation7 + $0x398] sm:$0xf0]  ;;  %v3063_v23 = vld [vmem:[#allocation10 + $0x90] sm:$0xff] }
  0xfd   :  { %v2676_v31 = vor.u32 %v3030_v27, %v2673_v28  ;;  %v3062_v27 = vld [vmem:[#allocation10 + $0x88] sm:$0xff] }
  0xfe   :  { %1519 = vmatmul.bf16.vlgmr.msrb.gmra.mxu3 %v3367_v50 }
  0xff   :  { %1567 = vmatpush.bf16.msra.mxu3 %v2656_v37  ;;  %1556 = vmatpush.bf16.msra.mxu2 %v2496_v56  ;;  %v2660_v37 = vor.u32 %v3026_v32, %v2657_v33  ;;  %v3018_v56 = vld [vmem:[#allocation7 + $0x32c] sm:$0xf]  ;;  %v3076_v32 = vld [vmem:[#allocation10 + $0xf8] sm:$0xff] }
 0x100   :  { %1593 = vmatpush.bf16.msrb.mxu1 %v2404_v38  ;;  %1582 = vmatpush.bf16.msrb.mxu0 %v2244_v55  ;;  %v3022_v38 = vld [vmem:[#allocation7 + $0x34c] sm:$0xf]  ;;  %v2500_v55 = vor.u32 %v2986_v35, %v2497_v36  ;;  %v2628_v46 = vor.u32 %v3018_v56, %v2625_v43  ;;  %v773_v35 = vperm.slane %v3379_v12, 1  ;;  %v3075_v36 = vld [vmem:[#allocation10 + $0xf0] sm:$0xff] }
 0x101   :  { %v2644_v42 = vor.u32 %v3022_v38, %v2641_v39  ;;  %v3074_v38 = vld [vmem:[#allocation10 + $0xe8] sm:$0xff] }
 0x103   :  { %1568 = vmatpush.bf16.msra.mxu3 %v2640_v48  ;;  %1557 = vmatpush.bf16.msra.mxu2 %v2480_v60  ;;  %v2609_v48 = vld [vmem:[#allocation7 + $0x318] sm:$0xf0]  ;;  %v3047_v60 = vld [vmem:[#allocation10 + $0x10] sm:$0xff] }
 0x104   :  { %1594 = vmatpush.bf16.msrb.mxu1 %v2388_v49  ;;  %1583 = vmatpush.bf16.msrb.mxu0 %v2228_v54  ;;  %v2612_v49 = vor.u32 %v3014_v47, %v2609_v48  ;;  %v3049_v54 = vld [vmem:[#allocation10 + $0x20] sm:$0xff] }
 0x106   :  { %1558 = vmatmul.bf16.vlgmr.msra.gmra.mxu2 %v3363_v22 }
 0x107   :  { %1602 = vmatpush.bf16.msrb.mxu2 %v2596_v61  ;;  %1569 = vmatpush.bf16.msra.mxu3 %v2624_v62  ;;  %v3059_v61 = vld [vmem:[#allocation10 + $0x70] sm:$0xff] }
 0x108   :  { %1595 = vmatpush.bf16.msrb.mxu1 %v2372_v63  ;;  %1584 = vmatmul.bf16.vlgmr.msrb.gmra.mxu0 %v3353_v13  ;;  %v2994_v13 = vld [vmem:[#allocation7 + $0x26c] sm:$0xf] }
 0x109   :  { %v2532_v29 = vor.u32 %v2994_v13, %v2529_v25  ;;  %1896 = vmatpush.bf16.msra.mxu0 %v3052_v51  ;;  %v3058_v63 = vld [vmem:[#allocation10 + $0x68] sm:$0xff]  ;;  %v3071_v51 = vld [vmem:[#allocation10 + $0xd0] sm:$0xff] }
 0x10b   :  { %1603 = vmatpush.bf16.msrb.mxu2 %v2580_v8  ;;  %1570 = vmatpush.bf16.msra.mxu3 %v2608_v9 }
 0x10c   :  { %1596 = vmatpush.bf16.msrb.mxu1 %v2356_v10  ;;  %v3054_v10 = vld [vmem:[#allocation10 + $0x48] sm:$0xff] }
 0x10d   :  { %1897 = vmatpush.bf16.msra.mxu0 %v3051_v52  ;;  %v774_v52 = vperm.slane %v3379_v12, 2 }
 0x10e   :  { %1571 = vmatmul.bf16.vlgmr.msra.gmra.mxu3 %v3367_v50 }
 0x10f   :  { %1615 = vmatpush.bf16.msrb.mxu3 %v2724_v14  ;;  %1597 = vmatmul.bf16.vlgmr.msrb.gmra.mxu1 %v3356_v34  ;;  %v2516_v34 = vor.u32 %v2990_v45, %v2513_v30  ;;  %v3053_v14 = vld [vmem:[#allocation10 + $0x40] sm:$0xff] }
 0x110   :  { %1604 = vmatpush.bf16.msrb.mxu2 %v2564_v17  ;;  %1909 = vmatpush.bf16.msra.mxu1 %v3060_v59 }
 0x111   :  { %1898 = vmatpush.bf16.msra.mxu0 %v3050_v53 }
 0x113   :  { %1616 = vmatpush.bf16.msrb.mxu3 %v2708_v20 }
 0x114   :  { %1605 = vmatpush.bf16.msrb.mxu2 %v2548_v24  ;;  %1910 = vmatpush.bf16.msra.mxu1 %v3059_v61 }
 0x115   :  { %1899 = vmatpush.bf16.msra.mxu0 %v3049_v54 }
 0x117   :  { %1617 = vmatpush.bf16.msrb.mxu3 %v2692_v26 }
 0x118   :  { %1606 = vmatpush.bf16.msrb.mxu2 %v2532_v29  ;;  %1911 = vmatpush.bf16.msra.mxu1 %v3058_v63 }
 0x119   :  { %1900 = vmatpush.bf16.msra.mxu0 %v3048_v58  ;;  %v3070_v58 = vld [vmem:[#allocation10 + $0xc8] sm:$0xff] }
 0x11b   :  { %1618 = vmatpush.bf16.msrb.mxu3 %v2676_v31  ;;  %v3061_v31 = vld [vmem:[#allocation10 + $0x80] sm:$0xff] }
 0x11c   :  { %1607 = vmatpush.bf16.msrb.mxu2 %v2516_v34  ;;  %1912 = vmatpush.bf16.msra.mxu1 %v3057_v1 }
 0x11d   :  { %1901 = vmatpush.bf16.msra.mxu0 %v3047_v60 }
 0x11f   :  { %1619 = vmatpush.bf16.msrb.mxu3 %v2660_v37 }
 0x120   :  { %1608 = vmatpush.bf16.msrb.mxu2 %v2500_v55  ;;  %1913 = vmatpush.bf16.msra.mxu1 %v3056_v4 }
 0x123   :  { %1620 = vmatpush.bf16.msrb.mxu3 %v2644_v42 }
 0x124   :  { %1609 = vmatpush.bf16.msrb.mxu2 %v2484_v44  ;;  %1914 = vmatpush.bf16.msra.mxu1 %v3055_v6  ;;  %v3072_v44 = vld [vmem:[#allocation10 + $0xd8] sm:$0xff] }
 0x127   :  { %1621 = vmatpush.bf16.msrb.mxu3 %v2628_v46  ;;  %1610 = vmatmul.bf16.vlgmr.msrb.gmra.mxu2 %v3363_v22 }
 0x128   :  { %1922 = vmatpush.bf16.msra.mxu2 %v3068_v5  ;;  %1915 = vmatpush.bf16.msra.mxu1 %v3054_v10  ;;  %v775_v5 = vperm.slane %v3379_v12, 3 }
 0x12b   :  { %1622 = vmatpush.bf16.msrb.mxu3 %v2612_v49 }
 0x12c   :  { %1923 = vmatpush.bf16.msra.mxu2 %v3067_v7  ;;  %1916 = vmatpush.bf16.msra.mxu1 %v3053_v14 }
 0x12e   :  { %1623 = vmatmul.bf16.vlgmr.msrb.gmra.mxu3 %v3367_v50  ;;  %v3046_v50 = vld [vmem:[#allocation10 + $0x8] sm:$0xff] }
 0x12f   :  { %1902 = vmatpush.bf16.msra.mxu0 %v3046_v50  ;;  %1935 = vmatpush.bf16.msra.mxu3 %v3076_v32 }
 0x130   :  { %1924 = vmatpush.bf16.msra.mxu2 %v3066_v11 }
 0x133   :  { %1903 = vmatpush.bf16.msra.mxu0 %v3045_v0  ;;  %1936 = vmatpush.bf16.msra.mxu3 %v3075_v36 }
 0x134   :  { %1925 = vmatpush.bf16.msra.mxu2 %v3065_v15 }
 0x137   :  { %1937 = vmatpush.bf16.msra.mxu3 %v3074_v38 }
 0x138   :  { %1926 = vmatpush.bf16.msra.mxu2 %v3064_v19 }
 0x13b   :  { %1938 = vmatpush.bf16.msra.mxu3 %v3073_v41 }
 0x13c   :  { %1927 = vmatpush.bf16.msra.mxu2 %v3063_v23 }
 0x13f   :  { %1939 = vmatpush.bf16.msra.mxu3 %v3072_v44 }
 0x140   :  { %1928 = vmatpush.bf16.msra.mxu2 %v3062_v27 }
 0x143   :  { %v1429_v57 = vpop.f32.mrf.mxu0  ;;  %1940 = vmatpush.bf16.msra.mxu3 %v3071_v51 }
 0x144   :  { %v1430_v20 = vadd.f32 %v1429_v57, %v772_v16  ;;  %1929 = vmatpush.bf16.msra.mxu2 %v3061_v31 }
 0x147   :  { %1941 = vmatpush.bf16.msra.mxu3 %v3070_v58 }
 0x14b   :  { %v1442_v62 = vpop.f32.mrf.mxu1  ;;  %v1431_v22 = vpop.f32.mrf.mxu0 }
 0x14c   :  { %v1443_v24 = vadd.f32 %v1442_v62, %v1430_v20  ;;  %v3069_v62 = vld [vmem:[#allocation10 + $0xc0] sm:$0xff] }
 0x14d   :  { %1942 = vmatpush.bf16.msra.mxu3 %v3069_v62 }
 0x153   :  { %v1444_v2 = vpop.f32.mrf.mxu1  ;;  %v1481_v3 = vpop.f32.mrf.mxu0 }
 0x154   :  { %v1482_v55 = vadd.f32 %v1481_v3, %v773_v35 }
 0x15b   :  { %v1494_v8 = vpop.f32.mrf.mxu1  ;;  %v1483_v9 = vpop.f32.mrf.mxu0 }
 0x15c   :  { %v1495_v40 = vadd.f32 %v1494_v8, %v1482_v55 }
 0x163   :  { %v1496_v17 = vpop.f32.mrf.mxu1  ;;  %v1533_v18 = vpop.f32.mrf.mxu0 }
 0x164   :  { %v1534_v59 = vadd.f32 %v1533_v18, %v774_v52 }
 0x169   :  { %v1455_v21 = vpop.f32.mrf.mxu2 }
 0x16a   :  { %v1456_v26 = vadd.f32 %v1455_v21, %v1443_v24 }
 0x16b   :  { %v1535_v25 = vpop.f32.mrf.mxu0 }
 0x16e   :  { %v1546_v13 = vpop.f32.mrf.mxu1 }
 0x16f   :  { %v1547_v61 = vadd.f32 %v1546_v13, %v1534_v59  ;;  %v3088_v13 = vld [vmem:[#allocation12] ss:$0 sm:$0xff] }
 0x171   :  { %v1468_v28 = vpop.f32.mrf.mxu3  ;;  %v1457_v45 = vpop.f32.mrf.mxu2 }
 0x172   :  { %v1469_v29 = vadd.f32 %v1468_v28, %v1456_v26 }
 0x174   :  { %v1628_v30 = vmax.f32 %v1469_v29, 0.0 }
 0x176   :  { %v1632_v33 = vpack.c.bf16 %v1628_v30, %v1628_v30  ;;  %v1548_v34 = vpop.f32.mrf.mxu1 }
 0x178   :  { %1904 = vmatmul.bf16.vlgmr.msra.gmra.mxu0 %v1632_v33 }
 0x179   :  { %v1470_v37 = vpop.f32.mrf.mxu3  ;;  %v1507_v39 = vpop.f32.mrf.mxu2 }
 0x17a   :  { %v1508_v42 = vadd.f32 %v1507_v39, %v1495_v40 }
 0x181   :  { %v1520_v56 = vpop.f32.mrf.mxu3  ;;  %v1509_v46 = vpop.f32.mrf.mxu2 }
 0x182   :  { %v1521_v43 = vadd.f32 %v1520_v56, %v1508_v42 }
 0x184   :  { %v1629_v47 = vmax.f32 %v1521_v43, 0.0 }
 0x185   :  { %v1585_v48 = vpop.f32.mrf.mxu0 }
 0x186   :  { %v1633_v49 = vpack.c.bf16 %v1629_v47, %v1629_v47  ;;  %v1586_v7 = vadd.f32 %v1585_v48, %v775_v5 }
 0x188   :  { %1917 = vmatmul.bf16.vlgmr.msra.gmra.mxu1 %v1633_v49 }
 0x189   :  { %v1522_v53 = vpop.f32.mrf.mxu3  ;;  %v1559_v57 = vpop.f32.mrf.mxu2 }
 0x18a   :  { %v1560_v22 = vadd.f32 %v1559_v57, %v1547_v61 }
 0x18c   :  { %v1598_v54 = vpop.f32.mrf.mxu1 }
 0x18d   :  { %v1587_v60 = vpop.f32.mrf.mxu0  ;;  %v1599_v8 = vadd.f32 %v1598_v54, %v1586_v7 }
 0x191   :  { %v1572_v50 = vpop.f32.mrf.mxu3  ;;  %v1561_v1 = vpop.f32.mrf.mxu2 }
 0x192   :  { %v1573_v63 = vadd.f32 %v1572_v50, %v1560_v22 }
 0x194   :  { %v1600_v0 = vpop.f32.mrf.mxu1  ;;  %v1630_v2 = vmax.f32 %v1573_v63, 0.0 }
 0x196   :  { %v1634_v3 = vpack.c.bf16 %v1630_v2, %v1630_v2 }
 0x198   :  { %1930 = vmatmul.bf16.vlgmr.msra.gmra.mxu2 %v1634_v3 }
 0x199   :  { %v1574_v4 = vpop.f32.mrf.mxu3 }
 0x1aa   :  { %v1611_v6 = vpop.f32.mrf.mxu2 }
 0x1ab   :  { %v1612_v9 = vadd.f32 %v1611_v6, %v1599_v8 }
 0x1b1   :  { %v1624_v10 = vpop.f32.mrf.mxu3 }
 0x1b2   :  { %v1625_v11 = vadd.f32 %v1624_v10, %v1612_v9  ;;  %v1613_v14 = vpop.f32.mrf.mxu2 }
 0x1b4   :  { %v1631_v15 = vmax.f32 %v1625_v11, 0.0 }
 0x1b6   :  { %v1635_v16 = vpack.c.bf16 %v1631_v15, %v1631_v15 }
 0x1b8   :  { %1943 = vmatmul.bf16.vlgmr.msra.gmra.mxu3 %v1635_v16 }
 0x1b9   :  { %v1626_v17 = vpop.f32.mrf.mxu3 }
 0x1f5   :  { %v1905_v18 = vpop.f32.mrf.mxu0 }
 0x1f6   :  { %v1906_v25 = vadd.f32 %v3088_v13, %v1905_v18 }
 0x1fd   :  { %v1907_v19 = vpop.f32.mrf.mxu0 }
 0x205   :  { %v1918_v20 = vpop.f32.mrf.mxu1 }
 0x206   :  { %v1919_v12 = vadd.f32 %v1918_v20, %v1906_v25 }
 0x20d   :  { %v1920_v21 = vpop.f32.mrf.mxu1 }
 0x21b   :  { %v1931_v23 = vpop.f32.mrf.mxu2 }
 0x21c   :  { %v1932_v26 = vadd.f32 %v1931_v23, %v1919_v12 }
 0x223   :  { %v1933_v24 = vpop.f32.mrf.mxu2 }
 0x23b   :  { %v1944_v27 = vpop.f32.mrf.mxu3 }
 0x23c   :  { %v1945_v28 = vadd.f32 %v1944_v27, %v1932_v26 }
 0x23e   :  { %1948 = vst [vmem:[%s3395_s7] sm:$0xf] %v1945_v28 }
 0x243   :  { %v1946_v29 = vpop.f32.mrf.mxu3 }
 0x244   :  { %1953 = vsyncpa [#allocation3], 1 }
 0x245   :  { %1954 = vsyncpa [#allocation5], 1 }
 0x246   :  { %1955 = vsyncpa [#allocation8], 1 }
 0x247   :  { %1956 = vsyncpa [#allocation11], 1 }

// kernel: _lambda_.3
= control target key start
LH: loop header
LB: loop body
LE: loop exit
PB: predicated region body
PF: predicated region fallthrough
CT: control target
= control target key end

     0   :  { %vm1253_vm0 = vcmask 1040384   ;;  %v4903_v14 = vmov 0   ;;  %vm1249_vm1 = vcmask 138240   ;;  %vm1984_vm2 = vcmask 130048   ;;  %s7752_s2 = inlined_call_operand.vmem [shape: bf16[145,2688], index: 2, kind: input, shape index: {}]   ;;  %s7753_s0 = inlined_call_operand.vmem [shape: f32[4,145], index: 0, kind: input, shape index: {}]   ;;  %s7754_s4 = inlined_call_operand.vmem [shape: bf16[16,896], index: 4, kind: input, shape index: {}]   ;;  %s7755_s1 = inlined_call_operand.vmem [shape: f32[48,16], index: 1, kind: input, shape index: {}]   ;;  %s7756_s3 = inlined_call_operand.vmem [shape: f32[1,2688], index: 3, kind: input, shape index: {}]   ;;  %s7757_s5 = inlined_call_operand.vmem [shape: f32[4,2688], index: 5, kind: output, shape index: {}]  }
   0x1   :  { %v4459_v0 = vld [vmem:[%s7752_s2 + $0x498] sm:$0xf]  ;;  %v4863_v1 = vld [vmem:[%s7752_s2 + $0x4e8] sm:$0xf0]  ;;  %v4853_v2 = vld [vmem:[%s7752_s2 + $0x49c] sm:$0xf] }
   0x2   :  { %v4460_v3 = vor.u32 %v4863_v1, %v4459_v0  ;;  %v4461_v4 = vld [vmem:[%s7752_s2 + $0x4ec] sm:$0xf0]  ;;  %v4842_v6 = vld [vmem:[%s7752_s2 + $0x440] sm:$0xf0]  ;;  %v4955_v8 = vld [vmem:[%s7752_s2 + $0x5e8] sm:$0x11] }
   0x3   :  { %v4375_v5 = vld [vmem:[%s7752_s2 + $0x3f0] sm:$0xf]  ;;  %v4464_v7 = vor.u32 %v4853_v2, %v4461_v4  ;;  %v4832_v9 = vld [vmem:[%s7752_s2 + $0x3f4] sm:$0xf]  ;;  %v829_v11 = vunpack.c.l.b16 %v4955_v8  ;;  %v4377_v12 = vld [vmem:[%s7752_s2 + $0x444] sm:$0xf0] }
   0x4   :  { %1319 = vmatpush.bf16.msra.mxu0 %v4460_v3  ;;  %v4376_v10 = vor.u32 %v4842_v6, %v4375_v5  ;;  %v4967_v13 = vld [vmem:[%s7752_s2 + $0x5f0] sm:$0x11]  ;;  %v4970_v15 = vsel %vm1253_vm0, 65535, %v4903_v14  ;;  %v4380_v16 = vor.u32 %v4832_v9, %v4377_v12  ;;  %v4291_v18 = vld [vmem:[%s7752_s2 + $0x348] sm:$0xf]  ;;  %v24_v55 = vld [vmem:[%s7753_s0] sm:$0xff] }
   0x5   :  { %1345 = vmatpush.bf16.msra.mxu2 %v4464_v7  ;;  %v831_v17 = vunpack.c.l.b16 %v4967_v13  ;;  %v4821_v19 = vld [vmem:[%s7752_s2 + $0x398] sm:$0xf0]  ;;  %v1039_v20 = vpack.c.b16 %v829_v11, %v829_v11  ;;  %v4543_v21 = vld [vmem:[%s7752_s2 + $0x540] sm:$0xf]  ;;  %v4811_v22 = vld [vmem:[%s7752_s2 + $0x34c] sm:$0xf] }
   0x6   :  { %v4293_v23 = vld [vmem:[%s7752_s2 + $0x39c] sm:$0xf0]  ;;  %v4884_v25 = vld [vmem:[%s7752_s2 + $0x590] sm:$0xf0]  ;;  %v4551_v26 = vld [vmem:[%s7752_s2 + $0x548] sm:$0xf]  ;;  %v4292_v29 = vor.u32 %v4821_v19, %v4291_v18  ;;  %v830_v19 = vunpack.c.h.b16 %v4955_v8 }
   0x7   :  { %v1041_v24 = vpack.c.b16 %v831_v17, %v831_v17  ;;  %v4885_v27 = vld [vmem:[%s7752_s2 + $0x598] sm:$0xf0]  ;;  %v1257_v28 = vand.u32 %v4970_v15, %v1039_v20  ;;  %v4467_v30 = vld [vmem:[%s7752_s2 + $0x4a0] sm:$0xf]  ;;  %v4864_v31 = vld [vmem:[%s7752_s2 + $0x4f0] sm:$0xf0]  ;;  %v4296_v34 = vor.u32 %v4811_v22, %v4293_v23  ;;  %v4544_v38 = vor.u32 %v4884_v25, %v4543_v21 }
   0x8   :  { %1320 = vmatpush.bf16.msra.mxu0 %v4376_v10  ;;  %v4854_v32 = vld [vmem:[%s7752_s2 + $0x4a4] sm:$0xf]  ;;  %v4469_v35 = vld [vmem:[%s7752_s2 + $0x4f4] sm:$0xf0]  ;;  %v4207_v36 = vld [vmem:[%s7752_s2 + $0x2a0] sm:$0xf]  ;;  %v4552_v41 = vor.u32 %v4885_v27, %v4551_v26  ;;  %v4468_v42 = vor.u32 %v4864_v31, %v4467_v30 }
   0x9   :  { %1346 = vmatpush.bf16.msra.mxu2 %v4380_v16  ;;  %v1263_v33 = vand.u32 %v4970_v15, %v1041_v24  ;;  %v4800_v37 = vld [vmem:[%s7752_s2 + $0x2f0] sm:$0xf0]  ;;  %1338 = vmatpush.bf16.msra.mxu1 %v1257_v28  ;;  %v4790_v39 = vld [vmem:[%s7752_s2 + $0x2a4] sm:$0xf]  ;;  %v4209_v40 = vld [vmem:[%s7752_s2 + $0x2f4] sm:$0xf0]  ;;  %v4472_v43 = vor.u32 %v4854_v32, %v4469_v35  ;;  %v832_v16 = vunpack.c.h.b16 %v4967_v13  ;;  %v1040_v32 = vpack.c.b16 %v830_v19, %v830_v19 }
   0xa   :  { %v4208_v44 = vor.u32 %v4800_v37, %v4207_v36  ;;  %v4383_v45 = vld [vmem:[%s7752_s2 + $0x3f8] sm:$0xf]  ;;  %v4843_v46 = vld [vmem:[%s7752_s2 + $0x448] sm:$0xf0]  ;;  %v4833_v47 = vld [vmem:[%s7752_s2 + $0x3fc] sm:$0xf]  ;;  %v4212_v48 = vor.u32 %v4790_v39, %v4209_v40 }
   0xb   :  { %1390 = vmatpush.bf16.msra.mxu3 %v1263_v33  ;;  %v4385_v49 = vld [vmem:[%s7752_s2 + $0x44c] sm:$0xf0]  ;;  %v4123_v50 = vld [vmem:[%s7752_s2 + $0x1f8] sm:$0xf]  ;;  %v4779_v51 = vld [vmem:[%s7752_s2 + $0x248] sm:$0xf0]  ;;  %v4384_v54 = vor.u32 %v4843_v46, %v4383_v45  ;;  %v1260_v46 = vand.u32 %v4970_v15, %v1040_v32 }
   0xc   :  { %1321 = vmatpush.bf16.msra.mxu0 %v4292_v29  ;;  %v4769_v52 = vld [vmem:[%s7752_s2 + $0x1fc] sm:$0xf]  ;;  %v4125_v53 = vld [vmem:[%s7752_s2 + $0x24c] sm:$0xf0]  ;;  %v4388_v56 = vor.u32 %v4833_v47, %v4385_v49  ;;  %v4124_v57 = vor.u32 %v4779_v51, %v4123_v50  ;;  %v4822_v59 = vld [vmem:[%s7752_s2 + $0x3a0] sm:$0xf0]  ;;  %v1042_v29 = vpack.c.b16 %v832_v16, %v832_v16 }
   0xd   :  { %1347 = vmatpush.bf16.msra.mxu2 %v4296_v34  ;;  %1339 = vmatpush.bf16.msra.mxu1 %v4544_v38  ;;  %v4299_v58 = vld [vmem:[%s7752_s2 + $0x350] sm:$0xf]  ;;  %v4812_v60 = vld [vmem:[%s7752_s2 + $0x354] sm:$0xf]  ;;  %v4128_v61 = vor.u32 %v4769_v52, %v4125_v53  ;;  %v4301_v62 = vld [vmem:[%s7752_s2 + $0x3a4] sm:$0xf0] }
   0xe   :  { %v4039_v63 = vld [vmem:[%s7752_s2 + $0x150] sm:$0xf]  ;;  %v4758_v0 = vld [vmem:[%s7752_s2 + $0x1a0] sm:$0xf0]  ;;  %v4748_v1 = vld [vmem:[%s7752_s2 + $0x154] sm:$0xf]  ;;  %v4300_v3 = vor.u32 %v4822_v59, %v4299_v58  ;;  %v4304_v4 = vor.u32 %v4812_v60, %v4301_v62 }
   0xf   :  { %1391 = vmatpush.bf16.msra.mxu3 %v4552_v41  ;;  %v4041_v2 = vld [vmem:[%s7752_s2 + $0x1a4] sm:$0xf0]  ;;  %26 = vst [vmem:[#allocation1] ss:$2 sm:$0xff] %v24_v55  ;;  %v4040_v5 = vor.u32 %v4758_v0, %v4039_v63  ;;  %v4801_v7 = vld [vmem:[%s7752_s2 + $0x2f8] sm:$0xf0] }
  0x10   :  { %1322 = vmatpush.bf16.msra.mxu0 %v4208_v44  ;;  %v4215_v6 = vld [vmem:[%s7752_s2 + $0x2a8] sm:$0xf]  ;;  %v4791_v9 = vld [vmem:[%s7752_s2 + $0x2ac] sm:$0xf]  ;;  %v4044_v10 = vor.u32 %v4748_v1, %v4041_v2  ;;  %v4217_v11 = vld [vmem:[%s7752_s2 + $0x2fc] sm:$0xf0] }
  0x11   :  { %1371 = vmatpush.bf16.msrb.mxu1 %v4468_v42  ;;  %1348 = vmatpush.bf16.msra.mxu2 %v4212_v48  ;;  %v3955_v12 = vld [vmem:[%s7752_s2 + $0xa8] sm:$0xf]  ;;  %v4737_v14 = vld [vmem:[%s7752_s2 + $0xf8] sm:$0xf0]  ;;  %v4727_v17 = vld [vmem:[%s7752_s2 + $0xac] sm:$0xf]  ;;  %v4216_v20 = vor.u32 %v4801_v7, %v4215_v6  ;;  %v4220_v22 = vor.u32 %v4791_v9, %v4217_v11 }
  0x12   :  { %v3957_v18 = vld [vmem:[%s7752_s2 + $0xfc] sm:$0xf0]  ;;  %v3956_v13 = vor.u32 %v4737_v14, %v3955_v12  ;;  %v4780_v23 = vld [vmem:[%s7752_s2 + $0x250] sm:$0xf0]  ;;  %v4770_v24 = vld [vmem:[%s7752_s2 + $0x204] sm:$0xf] }
  0x13   :  { %1397 = vmatpush.bf16.msrb.mxu3 %v4472_v43  ;;  %v4131_v21 = vld [vmem:[%s7752_s2 + $0x200] sm:$0xf]  ;;  %v4133_v8 = vld [vmem:[%s7752_s2 + $0x254] sm:$0xf0]  ;;  %v3960_v25 = vor.u32 %v4727_v17, %v3957_v18  ;;  %v4716_v27 = vld [vmem:[%s7752_s2 + $0x50] sm:$0xf0]  ;;  %v1266_v43 = vand.u32 %v4970_v15, %v1042_v29 }
  0x14   :  { %1323 = vmatpush.bf16.msra.mxu0 %v4124_v57  ;;  %v3871_v26 = vld [vmem:[%s7752_s2] sm:$0xf]  ;;  %v4706_v28 = vld [vmem:[%s7752_s2 + $0x4] sm:$0xf]  ;;  %v3873_v31 = vld [vmem:[%s7752_s2 + $0x54] sm:$0xf0]  ;;  %v4132_v33 = vor.u32 %v4780_v23, %v4131_v21  ;;  %v4136_v37 = vor.u32 %v4770_v24, %v4133_v8 }
  0x15   :  { %1372 = vmatpush.bf16.msrb.mxu1 %v4384_v54  ;;  %1349 = vmatpush.bf16.msra.mxu2 %v4128_v61  ;;  %v4047_v35 = vld [vmem:[%s7752_s2 + $0x158] sm:$0xf]  ;;  %v4759_v36 = vld [vmem:[%s7752_s2 + $0x1a8] sm:$0xf0]  ;;  %v3872_v38 = vor.u32 %v4716_v27, %v3871_v26  ;;  %v4749_v39 = vld [vmem:[%s7752_s2 + $0x15c] sm:$0xf]  ;;  %v3876_v41 = vor.u32 %v4706_v28, %v3873_v31 }
  0x16   :  { %v28_v30 = vld.sshfl [vmem:[#allocation1 + $0x8] sm:$0xff pattern:$0x75316420]  ;;  %v27_v40 = vld.sshfl [vmem:[#allocation1] sm:$0xff pattern:$0x75316420]  ;;  %v4048_v50 = vor.u32 %v4759_v36, %v4047_v35 }
  0x17   :  { %1398 = vmatpush.bf16.msrb.mxu3 %v4388_v56  ;;  %v5124_v34 = vpack.c.bf16 %v28_v30, %v28_v30  ;;  %v4049_v42 = vld [vmem:[%s7752_s2 + $0x1ac] sm:$0xf0]  ;;  %v4874_v44 = vld [vmem:[%s7752_s2 + $0x544] sm:$0xf]  ;;  %v4545_v45 = vld [vmem:[%s7752_s2 + $0x594] sm:$0xf0]  ;;  %v5161_v51 = vpack.c.bf16 %v27_v40, %v27_v40 }
  0x18   :  { %1324 = vmatpush.bf16.msra.mxu0 %v4040_v5  ;;  %v4875_v47 = vld [vmem:[%s7752_s2 + $0x54c] sm:$0xf]  ;;  %v4553_v48 = vld [vmem:[%s7752_s2 + $0x59c] sm:$0xf0]  ;;  %v5159_v49 = vld [vmem:[%s7752_s2 + $0x5f8] sm:$0x11]  ;;  %v4052_v55 = vor.u32 %v4749_v39, %v4049_v42  ;;  %v4548_v63 = vor.u32 %v4874_v44, %v4545_v45 }
  0x19   :  { %1373 = vmatpush.bf16.msrb.mxu1 %v4300_v3  ;;  %1350 = vmatpush.bf16.msra.mxu2 %v4044_v10  ;;  %v3963_v52 = vld [vmem:[%s7752_s2 + $0xb0] sm:$0xf]  ;;  %v4855_v53 = vld [vmem:[%s7752_s2 + $0x4ac] sm:$0xf]  ;;  %v4477_v54 = vld [vmem:[%s7752_s2 + $0x4fc] sm:$0xf0]  ;;  %v834_v59 = vunpack.c.h.b16 %v5159_v49  ;;  %v4556_v62 = vor.u32 %v4875_v47, %v4553_v48 }
  0x1a   :  { %4625 = vmatmul.msk.bf16.vlgmr.msra.gmra.mxu1 %vm1249_vm1, %v5124_v34  ;;  %4627 = vmatmul.msk.bf16.vlgmr.msra.gmra.mxu3 %vm1249_vm1, %v5124_v34  ;;  %v4738_v56 = vld [vmem:[%s7752_s2 + $0x100] sm:$0xf0]  ;;  %v4475_v57 = vld [vmem:[%s7752_s2 + $0x4a8] sm:$0xf]  ;;  %v4865_v58 = vld [vmem:[%s7752_s2 + $0x4f8] sm:$0xf0]  ;;  %v4480_v0 = vor.u32 %v4855_v53, %v4477_v54 }
  0x1b   :  { %1399 = vmatpush.bf16.msrb.mxu3 %v4304_v4  ;;  %v4728_v60 = vld [vmem:[%s7752_s2 + $0xb4] sm:$0xf]  ;;  %v3965_v61 = vld [vmem:[%s7752_s2 + $0x104] sm:$0xf0]  ;;  %v3964_v1 = vor.u32 %v4738_v56, %v3963_v52  ;;  %v4476_v2 = vor.u32 %v4865_v58, %v4475_v57  ;;  %v4834_v4 = vld [vmem:[%s7752_s2 + $0x404] sm:$0xf]  ;;  %v1044_v11 = vpack.c.b16 %v834_v59, %v834_v59 }
  0x1c   :  { %1325 = vmatpush.bf16.msra.mxu0 %v3956_v13  ;;  %v3879_v3 = vld [vmem:[%s7752_s2 + $0x8] sm:$0xf]  ;;  %v4393_v5 = vld [vmem:[%s7752_s2 + $0x454] sm:$0xf0]  ;;  %v3968_v6 = vor.u32 %v4728_v60, %v3965_v61  ;;  %v4717_v7 = vld [vmem:[%s7752_s2 + $0x58] sm:$0xf0] }
  0x1d   :  { %1374 = vmatpush.bf16.msrb.mxu1 %v4216_v20  ;;  %1351 = vmatpush.bf16.msra.mxu2 %v3960_v25  ;;  %v4391_v9 = vld [vmem:[%s7752_s2 + $0x400] sm:$0xf]  ;;  %v4844_v10 = vld [vmem:[%s7752_s2 + $0x450] sm:$0xf0]  ;;  %v4707_v12 = vld [vmem:[%s7752_s2 + $0xc] sm:$0xf]  ;;  %v4396_v16 = vor.u32 %v4834_v4, %v4393_v5  ;;  %v3880_v19 = vor.u32 %v4717_v7, %v3879_v3  ;;  %v1272_v23 = vand.u32 %v4970_v15, %v1044_v11 }
  0x1e   :  { %v3881_v14 = vld [vmem:[%s7752_s2 + $0x5c] sm:$0xf0]  ;;  %v4483_v17 = vld [vmem:[%s7752_s2 + $0x4b0] sm:$0xf]  ;;  %v4866_v18 = vld [vmem:[%s7752_s2 + $0x500] sm:$0xf0]  ;;  %v4392_v20 = vor.u32 %v4844_v10, %v4391_v9 }
  0x1f   :  { %1400 = vmatpush.bf16.msrb.mxu3 %v4220_v22  ;;  %v4813_v21 = vld [vmem:[%s7752_s2 + $0x35c] sm:$0xf]  ;;  %v4309_v22 = vld [vmem:[%s7752_s2 + $0x3ac] sm:$0xf0]  ;;  %v3884_v13 = vor.u32 %v4707_v12, %v3881_v14  ;;  %v4307_v24 = vld [vmem:[%s7752_s2 + $0x358] sm:$0xf]  ;;  %v4484_v25 = vor.u32 %v4866_v18, %v4483_v17 }
  0x20   :  { %1326 = vmatpush.bf16.msra.mxu0 %v3872_v38  ;;  %v4823_v8 = vld [vmem:[%s7752_s2 + $0x3a8] sm:$0xf0]  ;;  %v4876_v26 = vld [vmem:[%s7752_s2 + $0x554] sm:$0xf]  ;;  %v4561_v27 = vld [vmem:[%s7752_s2 + $0x5a4] sm:$0xf0]  ;;  %v4312_v29 = vor.u32 %v4813_v21, %v4309_v22 }
  0x21   :  { %1375 = vmatpush.bf16.msrb.mxu1 %v4132_v33  ;;  %1352 = vmatpush.bf16.msra.mxu2 %v3876_v41  ;;  %v4399_v28 = vld [vmem:[%s7752_s2 + $0x408] sm:$0xf]  ;;  %v4845_v30 = vld [vmem:[%s7752_s2 + $0x458] sm:$0xf0]  ;;  %v4856_v31 = vld [vmem:[%s7752_s2 + $0x4b4] sm:$0xf]  ;;  %v4308_v33 = vor.u32 %v4823_v8, %v4307_v24 }
  0x22   :  { %v4485_v32 = vld [vmem:[%s7752_s2 + $0x504] sm:$0xf0]  ;;  %v4792_v35 = vld [vmem:[%s7752_s2 + $0x2b4] sm:$0xf]  ;;  %v4223_v38 = vld [vmem:[%s7752_s2 + $0x2b0] sm:$0xf]  ;;  %v4400_v40 = vor.u32 %v4845_v30, %v4399_v28 }
  0x23   :  { %1401 = vmatpush.bf16.msrb.mxu3 %v4136_v37  ;;  %1327 = vmatmul.bf16.vlgmr.msra.gmra.mxu0 %v5161_v51  ;;  %v4225_v36 = vld [vmem:[%s7752_s2 + $0x304] sm:$0xf0]  ;;  %v4564_v37 = vor.u32 %v4876_v26, %v4561_v27  ;;  %v4802_v39 = vld [vmem:[%s7752_s2 + $0x300] sm:$0xf0]  ;;  %v4488_v41 = vor.u32 %v4856_v31, %v4485_v32  ;;  %v4315_v42 = vld [vmem:[%s7752_s2 + $0x360] sm:$0xf] }
  0x24   :  { %1416 = vmatpush.bf16.msrb.mxu0 %v1266_v43  ;;  %1353 = vmatmul.bf16.vlgmr.msra.gmra.mxu2 %v5161_v51  ;;  %v4228_v43 = vor.u32 %v4792_v35, %v4225_v36  ;;  %v4824_v44 = vld [vmem:[%s7752_s2 + $0x3b0] sm:$0xf0]  ;;  %v4835_v45 = vld [vmem:[%s7752_s2 + $0x40c] sm:$0xf]  ;;  %v4224_v47 = vor.u32 %v4802_v39, %v4223_v38  ;;  %v4139_v52 = vld [vmem:[%s7752_s2 + $0x208] sm:$0xf] }
  0x25   :  { %1364 = vmatpush.bf16.msrb.mxu2 %v1260_v46  ;;  %1376 = vmatpush.bf16.msrb.mxu1 %v4048_v50  ;;  %v4401_v46 = vld [vmem:[%s7752_s2 + $0x45c] sm:$0xf0]  ;;  %v4771_v48 = vld [vmem:[%s7752_s2 + $0x20c] sm:$0xf]  ;;  %v4781_v53 = vld [vmem:[%s7752_s2 + $0x258] sm:$0xf0]  ;;  %v4316_v54 = vor.u32 %v4824_v44, %v4315_v42 }
  0x26   :  { %v4141_v50 = vld [vmem:[%s7752_s2 + $0x25c] sm:$0xf0]  ;;  %v4231_v56 = vld [vmem:[%s7752_s2 + $0x2b8] sm:$0xf]  ;;  %v4803_v58 = vld [vmem:[%s7752_s2 + $0x308] sm:$0xf0]  ;;  %v4140_v61 = vor.u32 %v4781_v53, %v4139_v52 }
  0x27   :  { %1402 = vmatpush.bf16.msrb.mxu3 %v4052_v55  ;;  %v4404_v55 = vor.u32 %v4835_v45, %v4401_v46  ;;  %v4144_v57 = vor.u32 %v4771_v48, %v4141_v50  ;;  %v4814_v59 = vld [vmem:[%s7752_s2 + $0x364] sm:$0xf]  ;;  %v4317_v60 = vld [vmem:[%s7752_s2 + $0x3b4] sm:$0xf0]  ;;  %v4232_v3 = vor.u32 %v4803_v58, %v4231_v56  ;;  %v4147_v5 = vld [vmem:[%s7752_s2 + $0x210] sm:$0xf] }
  0x28   :  { %1417 = vmatpush.bf16.msrb.mxu0 %v4556_v62  ;;  %v4750_v62 = vld [vmem:[%s7752_s2 + $0x164] sm:$0xf]  ;;  %v4320_v4 = vor.u32 %v4814_v59, %v4317_v60  ;;  %v4793_v9 = vld [vmem:[%s7752_s2 + $0x2bc] sm:$0xf]  ;;  %v4233_v10 = vld [vmem:[%s7752_s2 + $0x30c] sm:$0xf0] }
  0x29   :  { %1365 = vmatpush.bf16.msrb.mxu2 %v4548_v63  ;;  %1377 = vmatpush.bf16.msrb.mxu1 %v3964_v1  ;;  %v4057_v63 = vld [vmem:[%s7752_s2 + $0x1b4] sm:$0xf0]  ;;  %v4760_v1 = vld [vmem:[%s7752_s2 + $0x1b0] sm:$0xf0]  ;;  %v4782_v7 = vld [vmem:[%s7752_s2 + $0x260] sm:$0xf0]  ;;  %v4236_v21 = vor.u32 %v4793_v9, %v4233_v10 }
  0x2a   :  { %v4729_v12 = vld [vmem:[%s7752_s2 + $0xbc] sm:$0xf]  ;;  %v3973_v14 = vld [vmem:[%s7752_s2 + $0x10c] sm:$0xf0]  ;;  %v3971_v17 = vld [vmem:[%s7752_s2 + $0xb8] sm:$0xf] }
  0x2b   :  { %1403 = vmatpush.bf16.msrb.mxu3 %v3968_v6  ;;  %v4060_v6 = vor.u32 %v4750_v62, %v4057_v63  ;;  %v4739_v18 = vld [vmem:[%s7752_s2 + $0x108] sm:$0xf0]  ;;  %v4063_v22 = vld [vmem:[%s7752_s2 + $0x168] sm:$0xf]  ;;  %v4772_v24 = vld [vmem:[%s7752_s2 + $0x214] sm:$0xf] }
  0x2c   :  { %1449 = vmatpush.bf16.msra.mxu0 %v4480_v0  ;;  %v4055_v0 = vld [vmem:[%s7752_s2 + $0x160] sm:$0xf]  ;;  %v3972_v8 = vor.u32 %v4739_v18, %v3971_v17  ;;  %v3889_v26 = vld [vmem:[%s7752_s2 + $0x64] sm:$0xf0]  ;;  %v4718_v30 = vld [vmem:[%s7752_s2 + $0x60] sm:$0xf0] }
  0x2d   :  { %1423 = vmatpush.bf16.msra.mxu2 %v4476_v2  ;;  %1378 = vmatpush.bf16.msrb.mxu1 %v3880_v19  ;;  %v5320_v2 = vld [vmem:[%s7752_s2 + $0x600] sm:$0x11]  ;;  %v4056_v11 = vor.u32 %v4760_v1, %v4055_v0  ;;  %v833_v19 = vunpack.c.l.b16 %v5159_v49  ;;  %v4149_v49 = vld [vmem:[%s7752_s2 + $0x264] sm:$0xf0]  ;;  %v4751_v38 = vld [vmem:[%s7752_s2 + $0x16c] sm:$0xf] }
  0x2e   :  { %v235_v28 = vld [vmem:[%s7752_s2 + $0x608] sm:$0x11]  ;;  %v3979_v35 = vld [vmem:[%s7752_s2 + $0xc0] sm:$0xf]  ;;  %v3895_v44 = vld [vmem:[%s7752_s2 + $0x18] sm:$0xf] }
  0x2f   :  { %1404 = vmatpush.bf16.msrb.mxu3 %v3884_v13  ;;  %v3976_v13 = vor.u32 %v4729_v12, %v3973_v14  ;;  %v1043_v31 = vpack.c.b16 %v833_v19, %v833_v19  ;;  %v4065_v39 = vld [vmem:[%s7752_s2 + $0x1bc] sm:$0xf0]  ;;  %v4877_v45 = vld [vmem:[%s7752_s2 + $0x55c] sm:$0xf]  ;;  %v4569_v46 = vld [vmem:[%s7752_s2 + $0x5ac] sm:$0xf0]  ;;  %v838_v60 = vunpack.c.h.b16 %v235_v28 }
  0x30   :  { %1450 = vmatpush.bf16.msra.mxu0 %v4396_v16  ;;  %1379 = vmatmul.bf16.vlgmr.msrb.gmra.mxu1 %v5161_v51  ;;  %v836_v16 = vunpack.c.h.b16 %v5320_v2  ;;  %v4068_v52 = vor.u32 %v4751_v38, %v4065_v39  ;;  %v4493_v53 = vld [vmem:[%s7752_s2 + $0x50c] sm:$0xf0]  ;;  %v4719_v56 = vld [vmem:[%s7752_s2 + $0x68] sm:$0xf0]  ;;  %v3981_v58 = vld [vmem:[%s7752_s2 + $0x114] sm:$0xf0]  ;;  %v4572_v62 = vor.u32 %v4877_v45, %v4569_v46 }
  0x31   :  { %1424 = vmatpush.bf16.msra.mxu2 %v4392_v20  ;;  %1468 = vmatpush.bf16.msra.mxu1 %v1272_v23  ;;  %v4148_v20 = vor.u32 %v4782_v7, %v4147_v5  ;;  %v4761_v23 = vld [vmem:[%s7752_s2 + $0x1b8] sm:$0xf0]  ;;  %v1269_v48 = vand.u32 %v4970_v15, %v1043_v31  ;;  %v3896_v1 = vor.u32 %v4719_v56, %v3895_v44  ;;  %v3897_v7 = vld [vmem:[%s7752_s2 + $0x6c] sm:$0xf0]  ;;  %v4888_v12 = vld [vmem:[%s7752_s2 + $0x5b0] sm:$0xf0] }
  0x32   :  { %1405 = vmatmul.bf16.vlgmr.msrb.gmra.mxu3 %v5161_v51  ;;  %v1046_v27 = vpack.c.b16 %v836_v16, %v836_v16  ;;  %v4064_v32 = vor.u32 %v4761_v23, %v4063_v22  ;;  %v1048_v9 = vpack.c.b16 %v838_v60, %v838_v60  ;;  %v4499_v14 = vld [vmem:[%s7752_s2 + $0x4c0] sm:$0xf]  ;;  %v4868_v17 = vld [vmem:[%s7752_s2 + $0x510] sm:$0xf0]  ;;  %v4567_v18 = vld [vmem:[%s7752_s2 + $0x558] sm:$0xf] }
  0x33   :  { %1475 = vmatpush.bf16.msra.mxu3 %v4484_v25  ;;  %4628 = vmatmul.msk.bf16.vlgmr.msrb.gmra.mxu0 %vm1249_vm1, %v5124_v34  ;;  %v4708_v25 = vld [vmem:[%s7752_s2 + $0x14] sm:$0xf]  ;;  %v4887_v19 = vld [vmem:[%s7752_s2 + $0x5a8] sm:$0xf0]  ;;  %v4325_v22 = vld [vmem:[%s7752_s2 + $0x3bc] sm:$0xf0] }
  0x34   :  { %1451 = vmatpush.bf16.msra.mxu0 %v4312_v29  ;;  %4626 = vmatmul.msk.bf16.vlgmr.msrb.gmra.mxu2 %vm1249_vm1, %v5124_v34  ;;  %v3887_v29 = vld [vmem:[%s7752_s2 + $0x10] sm:$0xf]  ;;  %v3892_v36 = vor.u32 %v4708_v25, %v3889_v26  ;;  %v1284_v23 = vand.u32 %v4970_v15, %v1048_v9  ;;  %v4415_v25 = vld [vmem:[%s7752_s2 + $0x418] sm:$0xf]  ;;  %v4568_v26 = vor.u32 %v4887_v19, %v4567_v18  ;;  %v4794_v31 = vld [vmem:[%s7752_s2 + $0x2c4] sm:$0xf] }
  0x35   :  { %1425 = vmatpush.bf16.msra.mxu2 %v4308_v33  ;;  %1469 = vmatpush.bf16.msra.mxu1 %v4564_v37  ;;  %v4152_v33 = vor.u32 %v4772_v24, %v4149_v49  ;;  %v4740_v37 = vld [vmem:[%s7752_s2 + $0x110] sm:$0xf0]  ;;  %v3888_v42 = vor.u32 %v4718_v30, %v3887_v29  ;;  %v4500_v24 = vor.u32 %v4868_v17, %v4499_v14  ;;  %v4878_v49 = vld [vmem:[%s7752_s2 + $0x564] sm:$0xf]  ;;  %v4501_v30 = vld [vmem:[%s7752_s2 + $0x514] sm:$0xf0] }
  0x36   :  { %v3980_v50 = vor.u32 %v4740_v37, %v3979_v35  ;;  %v4858_v29 = vld [vmem:[%s7752_s2 + $0x4c4] sm:$0xf]  ;;  %v4331_v37 = vld [vmem:[%s7752_s2 + $0x370] sm:$0xf]  ;;  %v4773_v44 = vld [vmem:[%s7752_s2 + $0x21c] sm:$0xf] }
  0x37   :  { %1476 = vmatpush.bf16.msra.mxu3 %v4400_v40  ;;  %v837_v40 = vunpack.c.l.b16 %v235_v28  ;;  %v4847_v28 = vld [vmem:[%s7752_s2 + $0x468] sm:$0xf0]  ;;  %v4826_v38 = vld [vmem:[%s7752_s2 + $0x3c0] sm:$0xf0]  ;;  %v4157_v45 = vld [vmem:[%s7752_s2 + $0x26c] sm:$0xf0] }
  0x38   :  { %1452 = vmatpush.bf16.msra.mxu0 %v4228_v43  ;;  %v1278_v43 = vand.u32 %v4970_v15, %v1046_v27  ;;  %v4416_v35 = vor.u32 %v4847_v28, %v4415_v25  ;;  %v4332_v46 = vor.u32 %v4826_v38, %v4331_v37  ;;  %v4816_v56 = vld [vmem:[%s7752_s2 + $0x374] sm:$0xf]  ;;  %v3989_v9 = vld [vmem:[%s7752_s2 + $0x11c] sm:$0xf0]  ;;  %v4079_v14 = vld [vmem:[%s7752_s2 + $0x178] sm:$0xf] }
  0x39   :  { %1501 = vmatpush.bf16.msrb.mxu1 %v4488_v41  ;;  %1426 = vmatpush.bf16.msra.mxu2 %v4224_v47  ;;  %v835_v41 = vunpack.c.l.b16 %v5320_v2  ;;  %v4857_v47 = vld [vmem:[%s7752_s2 + $0x4bc] sm:$0xf]  ;;  %v1047_v59 = vpack.c.b16 %v837_v40, %v837_v40  ;;  %v4491_v40 = vld [vmem:[%s7752_s2 + $0x4b8] sm:$0xf]  ;;  %v4763_v17 = vld [vmem:[%s7752_s2 + $0x1c8] sm:$0xf0] }
  0x3a   :  { %v4496_v63 = vor.u32 %v4857_v47, %v4493_v53  ;;  %v4805_v53 = vld [vmem:[%s7752_s2 + $0x318] sm:$0xf0]  ;;  %v4239_v18 = vld [vmem:[%s7752_s2 + $0x2c0] sm:$0xf]  ;;  %v4804_v19 = vld [vmem:[%s7752_s2 + $0x310] sm:$0xf0] }
  0x3b   :  { %1477 = vmatpush.bf16.msra.mxu3 %v4316_v54  ;;  %v4559_v54 = vld [vmem:[%s7752_s2 + $0x550] sm:$0xf]  ;;  %v1281_v5 = vand.u32 %v4970_v15, %v1047_v59  ;;  %v4073_v59 = vld [vmem:[%s7752_s2 + $0x1c4] sm:$0xf0]  ;;  %v4240_v25 = vor.u32 %v4804_v19, %v4239_v18  ;;  %v4742_v28 = vld [vmem:[%s7752_s2 + $0x120] sm:$0xf0] }
  0x3c   :  { %1453 = vmatpush.bf16.msra.mxu0 %v4144_v57  ;;  %v4730_v57 = vld [vmem:[%s7752_s2 + $0xc4] sm:$0xf]  ;;  %v4817_v19 = vld [vmem:[%s7752_s2 + $0x37c] sm:$0xf]  ;;  %vm2323_vm3 = vcmask 1042434   ;;  %vm2325_vm4 = vcmask 1041408  }
  0x3d   :  { %1502 = vmatpush.bf16.msrb.mxu1 %v4404_v55  ;;  %1427 = vmatpush.bf16.msra.mxu2 %v4140_v61  ;;  %v4886_v55 = vld [vmem:[%s7752_s2 + $0x5a0] sm:$0xf0]  ;;  %v1045_v61 = vpack.c.b16 %v835_v41, %v835_v41  ;;  %v3984_v2 = vor.u32 %v4730_v57, %v3981_v58  ;;  %v4867_v41 = vld [vmem:[%s7752_s2 + $0x508] sm:$0xf0]  ;;  %v4333_v57 = vld [vmem:[%s7752_s2 + $0x3c4] sm:$0xf0] }
  0x3e   :  { %v4560_v0 = vor.u32 %v4886_v55, %v4559_v54  ;;  %v4492_v47 = vor.u32 %v4867_v41, %v4491_v40  ;;  %v4407_v54 = vld [vmem:[%s7752_s2 + $0x410] sm:$0xf]  ;;  %v4846_v55 = vld [vmem:[%s7752_s2 + $0x460] sm:$0xf0]  ;;  %v4752_v58 = vld [vmem:[%s7752_s2 + $0x174] sm:$0xf] }
  0x3f   :  { %1478 = vmatpush.bf16.msra.mxu3 %v4232_v3  ;;  %v4836_v3 = vld [vmem:[%s7752_s2 + $0x414] sm:$0xf]  ;;  %v1275_v10 = vand.u32 %v4970_v15, %v1045_v61  ;;  %v4408_v61 = vor.u32 %v4846_v55, %v4407_v54  ;;  %v4879_v40 = vld [vmem:[%s7752_s2 + $0x56c] sm:$0xf]  ;;  %v4585_v41 = vld [vmem:[%s7752_s2 + $0x5bc] sm:$0xf0] }
  0x40   :  { %1454 = vmatpush.bf16.msra.mxu0 %v4060_v6  ;;  %4630 = vmatmul.msk.bf16.vlgmr.msra.gmra.mxu1 %vm1249_vm1, %v5124_v34  ;;  %v4709_v6 = vld [vmem:[%s7752_s2 + $0x1c] sm:$0xf]  ;;  %v4509_v54 = vld [vmem:[%s7752_s2 + $0x51c] sm:$0xf0]  ;;  %vm2327_vm5 = vcmask 1044484   ;;  %vm2329_vm6 = vcmask 1045508  }
  0x41   :  { %1503 = vmatpush.bf16.msrb.mxu1 %v4320_v4  ;;  %1428 = vmatpush.bf16.msra.mxu2 %v4056_v11  ;;  %v4409_v4 = vld [vmem:[%s7752_s2 + $0x464] sm:$0xf0]  ;;  %v4575_v11 = vld [vmem:[%s7752_s2 + $0x560] sm:$0xf]  ;;  %vm2331_vm7 = vcmask 1043456  }
  0x42   :  { %v4412_v16 = vor.u32 %v4836_v3, %v4409_v4  ;;  %v4825_v3 = vld [vmem:[%s7752_s2 + $0x3b8] sm:$0xf0]  ;;  %v4076_v4 = vor.u32 %v4752_v58, %v4073_v59  ;;  %v3987_v59 = vld [vmem:[%s7752_s2 + $0xc8] sm:$0xf] }
  0x43   :  { %1479 = vmatpush.bf16.msra.mxu3 %v4148_v20  ;;  %v3900_v20 = vor.u32 %v4709_v6, %v3897_v7  ;;  %v4249_v6 = vld [vmem:[%s7752_s2 + $0x31c] sm:$0xf0]  ;;  %v4731_v7 = vld [vmem:[%s7752_s2 + $0xcc] sm:$0xf] }
  0x44   :  { %1455 = vmatpush.bf16.msra.mxu0 %v3976_v13  ;;  %v4576_v13 = vor.u32 %v4888_v12, %v4575_v11 }
  0x45   :  { %1504 = vmatpush.bf16.msrb.mxu1 %v4236_v21  ;;  %1429 = vmatpush.bf16.msra.mxu2 %v3972_v8  ;;  %v4815_v21 = vld [vmem:[%s7752_s2 + $0x36c] sm:$0xf]  ;;  %v4577_v8 = vld [vmem:[%s7752_s2 + $0x5b4] sm:$0xf0] }
  0x46   :  { %v4328_v27 = vor.u32 %v4815_v21, %v4325_v22  ;;  %v4774_v21 = vld [vmem:[%s7752_s2 + $0x224] sm:$0xf]  ;;  %v4165_v22 = vld [vmem:[%s7752_s2 + $0x274] sm:$0xf0] }
  0x47   :  { %1480 = vmatpush.bf16.msra.mxu3 %v4064_v32  ;;  %v4241_v32 = vld [vmem:[%s7752_s2 + $0x314] sm:$0xf0] }
  0x48   :  { %1456 = vmatpush.bf16.msra.mxu0 %v3892_v36  ;;  %v4504_v36 = vor.u32 %v4858_v29, %v4501_v30  ;;  %v4244_v39 = vor.u32 %v4794_v31, %v4241_v32  ;;  %v4155_v29 = vld [vmem:[%s7752_s2 + $0x218] sm:$0xf]  ;;  %v4783_v30 = vld [vmem:[%s7752_s2 + $0x268] sm:$0xf0] }
  0x49   :  { %1505 = vmatpush.bf16.msrb.mxu1 %v4152_v33  ;;  %1430 = vmatpush.bf16.msra.mxu2 %v3888_v42  ;;  %v4580_v33 = vor.u32 %v4878_v49, %v4577_v8  ;;  %v4837_v42 = vld [vmem:[%s7752_s2 + $0x41c] sm:$0xf]  ;;  %v4080_v8 = vor.u32 %v4763_v17, %v4079_v14  ;;  %v4156_v38 = vor.u32 %v4783_v30, %v4155_v29  ;;  %v4720_v14 = vld [vmem:[%s7752_s2 + $0x70] sm:$0xf0] }
  0x4a   :  { %v4889_v30 = vld [vmem:[%s7752_s2 + $0x5b8] sm:$0xf0] }
  0x4b   :  { %1481 = vmatpush.bf16.msra.mxu3 %v3980_v50  ;;  %1457 = vmatmul.bf16.vlgmr.msra.gmra.mxu0 %v5161_v51 }
  0x4c   :  { %1520 = vmatpush.bf16.msrb.mxu0 %v1278_v43  ;;  %1431 = vmatmul.bf16.vlgmr.msra.gmra.mxu2 %v5161_v51  ;;  %v4417_v43 = vld [vmem:[%s7752_s2 + $0x46c] sm:$0xf0] }
  0x4d   :  { %1442 = vmatpush.bf16.msrb.mxu2 %v1269_v48  ;;  %1506 = vmatpush.bf16.msrb.mxu1 %v4068_v52  ;;  %v4247_v48 = vld [vmem:[%s7752_s2 + $0x2c8] sm:$0xf]  ;;  %v4420_v50 = vor.u32 %v4837_v42, %v4417_v43  ;;  %v4160_v52 = vor.u32 %v4773_v44, %v4157_v45  ;;  %v4721_v43 = vld [vmem:[%s7752_s2 + $0x78] sm:$0xf0]  ;;  %v4071_v44 = vld [vmem:[%s7752_s2 + $0x170] sm:$0xf] }
  0x4e   :  { %v4248_v60 = vor.u32 %v4805_v53, %v4247_v48  ;;  %v4762_v45 = vld [vmem:[%s7752_s2 + $0x1c0] sm:$0xf0]  ;;  %v3997_v48 = vld [vmem:[%s7752_s2 + $0x124] sm:$0xf0]  ;;  %v4859_v53 = vld [vmem:[%s7752_s2 + $0x4cc] sm:$0xf] }
  0x4f   :  { %1482 = vmatpush.bf16.msra.mxu3 %v3896_v1  ;;  %v4784_v1 = vld [vmem:[%s7752_s2 + $0x270] sm:$0xf0] }
  0x50   :  { %1521 = vmatpush.bf16.msrb.mxu0 %v4572_v62  ;;  %v4163_v62 = vld [vmem:[%s7752_s2 + $0x220] sm:$0xf] }
  0x51   :  { %1443 = vmatpush.bf16.msrb.mxu2 %v4560_v0  ;;  %1507 = vmatpush.bf16.msrb.mxu1 %v3984_v2  ;;  %v4336_v0 = vor.u32 %v4816_v56, %v4333_v57  ;;  %v4323_v2 = vld [vmem:[%s7752_s2 + $0x368] sm:$0xf]  ;;  %v4164_v11 = vor.u32 %v4784_v1, %v4163_v62  ;;  %v4072_v56 = vor.u32 %v4762_v45, %v4071_v44  ;;  %v3913_v1 = vld [vmem:[%s7752_s2 + $0x7c] sm:$0xf0]  ;;  %v4775_v45 = vld [vmem:[%s7752_s2 + $0x22c] sm:$0xf] }
  0x52   :  { %1483 = vmatmul.bf16.vlgmr.msra.gmra.mxu3 %v5161_v51  ;;  %v4324_v12 = vor.u32 %v4825_v3, %v4323_v2  ;;  %v4591_v2 = vld [vmem:[%s7752_s2 + $0x570] sm:$0xf]  ;;  %v4890_v3 = vld [vmem:[%s7752_s2 + $0x5c0] sm:$0xf0] }
  0x53   :  { %1546 = vmatpush.bf16.msrb.mxu3 %v1281_v5  ;;  %v4795_v5 = vld [vmem:[%s7752_s2 + $0x2cc] sm:$0xf] }
  0x54   :  { %1553 = vmatpush.bf16.msra.mxu0 %v4496_v63  ;;  %v5547_v63 = vld [vmem:[%s7752_s2 + $0x610] sm:$0x11] }
  0x55   :  { %1494 = vmatpush.bf16.msra.mxu2 %v1275_v10  ;;  %1508 = vmatpush.bf16.msrb.mxu1 %v3900_v20  ;;  %v840_v10 = vunpack.c.h.b16 %v5547_v63  ;;  %v3992_v20 = vor.u32 %v4731_v7, %v3989_v9  ;;  %v839_v62 = vunpack.c.l.b16 %v5547_v63  ;;  %v4425_v63 = vld [vmem:[%s7752_s2 + $0x474] sm:$0xf0]  ;;  %v4515_v7 = vld [vmem:[%s7752_s2 + $0x4d0] sm:$0xf]  ;;  %v4870_v9 = vld [vmem:[%s7752_s2 + $0x520] sm:$0xf0] }
  0x57   :  { %1547 = vmatpush.bf16.msrb.mxu3 %v4576_v13  ;;  %v237_v13 = vld [vmem:[%s7752_s2 + $0x618] sm:$0x11]  ;;  %v1050_v49 = vpack.c.b16 %v840_v10, %v840_v10 }
  0x58   :  { %1554 = vmatpush.bf16.msra.mxu0 %v4412_v16  ;;  %1509 = vmatmul.bf16.vlgmr.msrb.gmra.mxu1 %v5161_v51  ;;  %v4252_v16 = vor.u32 %v4795_v5, %v4249_v6  ;;  %v841_v31 = vunpack.c.l.b16 %v237_v13  ;;  %v4838_v5 = vld [vmem:[%s7752_s2 + $0x424] sm:$0xf] }
  0x59   :  { %1572 = vmatpush.bf16.msra.mxu1 %v1284_v23  ;;  %1495 = vmatpush.bf16.msra.mxu2 %v4568_v26  ;;  %v4710_v23 = vld [vmem:[%s7752_s2 + $0x24] sm:$0xf]  ;;  %v3995_v26 = vld [vmem:[%s7752_s2 + $0xd0] sm:$0xf]  ;;  %v4428_v17 = vor.u32 %v4838_v5, %v4425_v63 }
  0x5a   :  { %v3996_v37 = vor.u32 %v4742_v28, %v3995_v26  ;;  %v4265_v5 = vld [vmem:[%s7752_s2 + $0x32c] sm:$0xf0]  ;;  %v5804_v63 = vld [vmem:[%s7752_s2 + $0x620] sm:$0x11] }
  0x5b   :  { %1579 = vmatpush.bf16.msra.mxu3 %v4500_v24  ;;  %4632 = vmatmul.msk.bf16.vlgmr.msrb.gmra.mxu0 %vm1249_vm1, %v5124_v34  ;;  %v3905_v24 = vld [vmem:[%s7752_s2 + $0x74] sm:$0xf0] }
  0x5c   :  { %1555 = vmatpush.bf16.msra.mxu0 %v4328_v27  ;;  %4629 = vmatmul.msk.bf16.vlgmr.msrb.gmra.mxu2 %vm1249_vm1, %v5124_v34  ;;  %v4168_v27 = vor.u32 %v4774_v21, %v4165_v22  ;;  %v3908_v32 = vor.u32 %v4710_v23, %v3905_v24  ;;  %v4516_v21 = vor.u32 %v4870_v9, %v4515_v7  ;;  %v4880_v22 = vld [vmem:[%s7752_s2 + $0x574] sm:$0xf]  ;;  %v4431_v23 = vld [vmem:[%s7752_s2 + $0x428] sm:$0xf]  ;;  %v4733_v9 = vld [vmem:[%s7752_s2 + $0xdc] sm:$0xf] }
  0x5d   :  { %1573 = vmatpush.bf16.msra.mxu1 %v4580_v33  ;;  %1527 = vmatpush.bf16.msrb.mxu2 %v4492_v47  ;;  %v4753_v33 = vld [vmem:[%s7752_s2 + $0x17c] sm:$0xf]  ;;  %v4732_v47 = vld [vmem:[%s7752_s2 + $0xd4] sm:$0xf] }
  0x5e   :  { %v4000_v57 = vor.u32 %v4732_v47, %v3997_v48 }
  0x5f   :  { %1580 = vmatpush.bf16.msra.mxu3 %v4416_v35  ;;  %v4081_v35 = vld [vmem:[%s7752_s2 + $0x1cc] sm:$0xf0] }
  0x60   :  { %1556 = vmatpush.bf16.msra.mxu0 %v4244_v39  ;;  %v3911_v39 = vld [vmem:[%s7752_s2 + $0x28] sm:$0xf]  ;;  %v4084_v42 = vor.u32 %v4753_v33, %v4081_v35 }
  0x61   :  { %1605 = vmatpush.bf16.msrb.mxu1 %v4504_v36  ;;  %1528 = vmatpush.bf16.msrb.mxu2 %v4408_v61  ;;  %v1290_v36 = vand.u32 %v4970_v15, %v1050_v49  ;;  %v3912_v55 = vor.u32 %v4721_v43, %v3911_v39  ;;  %v4711_v61 = vld [vmem:[%s7752_s2 + $0x2c] sm:$0xf]  ;;  %v4849_v49 = vld [vmem:[%s7752_s2 + $0x478] sm:$0xf0]  ;;  %v4828_v39 = vld [vmem:[%s7752_s2 + $0x3d0] sm:$0xf0] }
  0x62   :  { %4633 = vmatmul.msk.bf16.vlgmr.msrb.gmra.mxu3 %vm1249_vm1, %v5124_v34  ;;  %v3916_v10 = vor.u32 %v4711_v61, %v3913_v1  ;;  %v4432_v33 = vor.u32 %v4849_v49, %v4431_v23  ;;  %v4339_v1 = vld [vmem:[%s7752_s2 + $0x378] sm:$0xf]  ;;  %v3921_v49 = vld [vmem:[%s7752_s2 + $0x84] sm:$0xf0] }
  0x63   :  { %1581 = vmatpush.bf16.msra.mxu3 %v4332_v46  ;;  %v1051_v46 = vpack.c.b16 %v841_v31, %v841_v31  ;;  %v4796_v31 = vld [vmem:[%s7752_s2 + $0x2d4] sm:$0xf] }
  0x64   :  { %1557 = vmatpush.bf16.msra.mxu0 %v4160_v52  ;;  %v4588_v52 = vor.u32 %v4879_v40, %v4585_v41  ;;  %v4839_v40 = vld [vmem:[%s7752_s2 + $0x42c] sm:$0xf]  ;;  %v4433_v41 = vld [vmem:[%s7752_s2 + $0x47c] sm:$0xf0] }
  0x65   :  { %1606 = vmatpush.bf16.msrb.mxu1 %v4420_v50  ;;  %1529 = vmatpush.bf16.msrb.mxu2 %v4324_v12  ;;  %v842_v50 = vunpack.c.h.b16 %v237_v13  ;;  %v1293_v58 = vand.u32 %v4970_v15, %v1051_v46  ;;  %v3903_v12 = vld [vmem:[%s7752_s2 + $0x20] sm:$0xf]  ;;  %v4593_v13 = vld [vmem:[%s7752_s2 + $0x5c4] sm:$0xf0]  ;;  %v4436_v48 = vor.u32 %v4839_v40, %v4433_v41  ;;  %v4764_v41 = vld [vmem:[%s7752_s2 + $0x1d0] sm:$0xf0] }
  0x66   :  { %v3904_v24 = vor.u32 %v4720_v14, %v3903_v12  ;;  %v4596_v29 = vor.u32 %v4880_v22, %v4593_v13  ;;  %v4173_v46 = vld [vmem:[%s7752_s2 + $0x27c] sm:$0xf0]  ;;  %v4095_v14 = vld [vmem:[%s7752_s2 + $0x188] sm:$0xf] }
  0x67   :  { %1582 = vmatpush.bf16.msra.mxu3 %v4248_v60  ;;  %v4741_v60 = vld [vmem:[%s7752_s2 + $0x118] sm:$0xf0]  ;;  %v239_v22 = vld [vmem:[%s7752_s2 + $0x628] sm:$0x11]  ;;  %v4087_v40 = vld [vmem:[%s7752_s2 + $0x180] sm:$0xf] }
  0x68   :  { %1558 = vmatpush.bf16.msra.mxu0 %v4076_v4  ;;  %4634 = vmatmul.msk.bf16.vlgmr.msra.gmra.mxu1 %vm1249_vm1, %v5124_v34  ;;  %v1052_v4 = vpack.c.b16 %v842_v50, %v842_v50  ;;  %v3988_v6 = vor.u32 %v4741_v60, %v3987_v59  ;;  %v4263_v50 = vld [vmem:[%s7752_s2 + $0x2d8] sm:$0xf]  ;;  %v4754_v59 = vld [vmem:[%s7752_s2 + $0x184] sm:$0xf] }
  0x69   :  { %1607 = vmatpush.bf16.msrb.mxu1 %v4336_v0  ;;  %1530 = vmatpush.bf16.msrb.mxu2 %v4240_v25  ;;  %v4512_v0 = vor.u32 %v4859_v53, %v4509_v54  ;;  %v4517_v25 = vld [vmem:[%s7752_s2 + $0x524] sm:$0xf0]  ;;  %v4848_v53 = vld [vmem:[%s7752_s2 + $0x470] sm:$0xf0]  ;;  %v4807_v54 = vld [vmem:[%s7752_s2 + $0x328] sm:$0xf0] }
  0x6a   :  { %v1296_v18 = vand.u32 %v4970_v15, %v1052_v4  ;;  %v4089_v60 = vld [vmem:[%s7752_s2 + $0x1d4] sm:$0xf0]  ;;  %v4264_v61 = vor.u32 %v4807_v54, %v4263_v50  ;;  %v4797_v4 = vld [vmem:[%s7752_s2 + $0x2dc] sm:$0xf]  ;;  %v4601_v50 = vld [vmem:[%s7752_s2 + $0x5cc] sm:$0xf0] }
  0x6b   :  { %1583 = vmatpush.bf16.msra.mxu3 %v4164_v11  ;;  %v4592_v11 = vor.u32 %v4890_v3, %v4591_v2  ;;  %v4827_v2 = vld [vmem:[%s7752_s2 + $0x3c8] sm:$0xf0]  ;;  %v4786_v3 = vld [vmem:[%s7752_s2 + $0x280] sm:$0xf0]  ;;  %v4268_v12 = vor.u32 %v4797_v4, %v4265_v5  ;;  %v4525_v54 = vld [vmem:[%s7752_s2 + $0x52c] sm:$0xf0] }
  0x6c   :  { %1559 = vmatpush.bf16.msra.mxu0 %v3992_v20  ;;  %4631 = vmatmul.msk.bf16.vlgmr.msra.gmra.mxu2 %vm1249_vm1, %v5124_v34  ;;  %v4341_v20 = vld [vmem:[%s7752_s2 + $0x3cc] sm:$0xf0]  ;;  %v4340_v7 = vor.u32 %v4827_v2, %v4339_v1  ;;  %v4892_v4 = vld [vmem:[%s7752_s2 + $0x5d0] sm:$0xf0] }
  0x6d   :  { %1608 = vmatpush.bf16.msrb.mxu1 %v4252_v16  ;;  %1531 = vmatpush.bf16.msrb.mxu2 %v4156_v38  ;;  %v1049_v16 = vpack.c.b16 %v839_v62, %v839_v62  ;;  %v4344_v28 = vor.u32 %v4817_v19, %v4341_v20  ;;  %v4869_v38 = vld [vmem:[%s7752_s2 + $0x518] sm:$0xf0]  ;;  %v4776_v19 = vld [vmem:[%s7752_s2 + $0x234] sm:$0xf]  ;;  %v4181_v20 = vld [vmem:[%s7752_s2 + $0x284] sm:$0xf0] }
  0x6e   :  { %v4840_v5 = vld [vmem:[%s7752_s2 + $0x434] sm:$0xf] }
  0x6f   :  { %1584 = vmatpush.bf16.msra.mxu3 %v4080_v8  ;;  %v4860_v8 = vld [vmem:[%s7752_s2 + $0x4d4] sm:$0xf]  ;;  %v1287_v26 = vand.u32 %v4970_v15, %v1049_v16  ;;  %v4255_v16 = vld [vmem:[%s7752_s2 + $0x2d0] sm:$0xf] }
  0x70   :  { %1560 = vmatpush.bf16.msra.mxu0 %v3908_v32  ;;  %v4257_v32 = vld [vmem:[%s7752_s2 + $0x324] sm:$0xf0]  ;;  %v4520_v35 = vor.u32 %v4860_v8, %v4517_v25  ;;  %v4184_v25 = vor.u32 %v4776_v19, %v4181_v20  ;;  %v4819_v20 = vld [vmem:[%s7752_s2 + $0x38c] sm:$0xf] }
  0x71   :  { %1609 = vmatpush.bf16.msrb.mxu1 %v4168_v27  ;;  %1532 = vmatpush.bf16.msrb.mxu2 %v4072_v56  ;;  %v4583_v27 = vld [vmem:[%s7752_s2 + $0x568] sm:$0xf]  ;;  %v4260_v43 = vor.u32 %v4796_v31, %v4257_v32  ;;  %v4349_v56 = vld [vmem:[%s7752_s2 + $0x3d4] sm:$0xf0]  ;;  %v4097_v31 = vld [vmem:[%s7752_s2 + $0x1dc] sm:$0xf0] }
  0x73   :  { %1585 = vmatpush.bf16.msra.mxu3 %v3996_v37  ;;  %1561 = vmatmul.bf16.vlgmr.msra.gmra.mxu0 %v5161_v51  ;;  %v4507_v37 = vld [vmem:[%s7752_s2 + $0x4c8] sm:$0xf] }
  0x74   :  { %1624 = vmatpush.bf16.msrb.mxu0 %v1290_v36  ;;  %v4347_v36 = vld [vmem:[%s7752_s2 + $0x380] sm:$0xf]  ;;  %v4508_v44 = vor.u32 %v4869_v38, %v4507_v37 }
  0x75   :  { %1610 = vmatpush.bf16.msrb.mxu1 %v4084_v42  ;;  %1533 = vmatpush.bf16.msrb.mxu2 %v3988_v6  ;;  %v4584_v42 = vor.u32 %v4889_v30, %v4583_v27  ;;  %v4348_v47 = vor.u32 %v4828_v39, %v4347_v36  ;;  %v4092_v6 = vor.u32 %v4754_v59, %v4089_v60  ;;  %v4171_v27 = vld [vmem:[%s7752_s2 + $0x228] sm:$0xf]  ;;  %v4755_v30 = vld [vmem:[%s7752_s2 + $0x18c] sm:$0xf]  ;;  %v3927_v39 = vld [vmem:[%s7752_s2 + $0x38] sm:$0xf]  ;;  %v843_v59 = vunpack.c.l.b16 %v5804_v63 }
  0x76   :  { %v4100_v38 = vor.u32 %v4755_v30, %v4097_v31 }
  0x77   :  { %1586 = vmatpush.bf16.msra.mxu3 %v3912_v55  ;;  %v4818_v55 = vld [vmem:[%s7752_s2 + $0x384] sm:$0xf] }
  0x78   :  { %1625 = vmatpush.bf16.msrb.mxu0 %v4588_v52  ;;  %v4423_v52 = vld [vmem:[%s7752_s2 + $0x420] sm:$0xf]  ;;  %v4352_v62 = vor.u32 %v4818_v55, %v4349_v56 }
  0x79   :  { %1611 = vmatpush.bf16.msrb.mxu1 %v4000_v57  ;;  %1534 = vmatpush.bf16.msrb.mxu2 %v3904_v24  ;;  %v4176_v57 = vor.u32 %v4775_v45, %v4173_v46  ;;  %v4712_v24 = vld [vmem:[%s7752_s2 + $0x34] sm:$0xf]  ;;  %v4013_v45 = vld [vmem:[%s7752_s2 + $0x134] sm:$0xf0] }
  0x7a   :  { %1587 = vmatmul.bf16.vlgmr.msra.gmra.mxu3 %v5161_v51 }
  0x7b   :  { %1650 = vmatpush.bf16.msrb.mxu3 %v1293_v58  ;;  %v4424_v58 = vor.u32 %v4848_v53, %v4423_v52  ;;  %v4088_v52 = vor.u32 %v4764_v41, %v4087_v40  ;;  %v4861_v53 = vld [vmem:[%s7752_s2 + $0x4dc] sm:$0xf] }
  0x7c   :  { %1657 = vmatpush.bf16.msra.mxu0 %v4512_v0  ;;  %1535 = vmatmul.bf16.vlgmr.msrb.gmra.mxu2 %v5161_v51  ;;  %v4179_v0 = vld [vmem:[%s7752_s2 + $0x230] sm:$0xf]  ;;  %v4528_v2 = vor.u32 %v4861_v53, %v4525_v54  ;;  %v4841_v41 = vld [vmem:[%s7752_s2 + $0x43c] sm:$0xf]  ;;  %v4279_v53 = vld [vmem:[%s7752_s2 + $0x2e8] sm:$0xf] }
  0x7d   :  { %1612 = vmatpush.bf16.msrb.mxu1 %v3916_v10  ;;  %1598 = vmatpush.bf16.msra.mxu2 %v1287_v26  ;;  %v4005_v10 = vld [vmem:[%s7752_s2 + $0x12c] sm:$0xf0]  ;;  %v4011_v26 = vld [vmem:[%s7752_s2 + $0xe0] sm:$0xf]  ;;  %v4809_v54 = vld [vmem:[%s7752_s2 + $0x338] sm:$0xf0] }
  0x7e   :  { %v4008_v13 = vor.u32 %v4733_v9, %v4005_v10  ;;  %v4872_v9 = vld [vmem:[%s7752_s2 + $0x530] sm:$0xf0] }
  0x7f   :  { %1651 = vmatpush.bf16.msrb.mxu3 %v4592_v11  ;;  %v4180_v11 = vor.u32 %v4786_v3, %v4179_v0  ;;  %v3929_v0 = vld [vmem:[%s7752_s2 + $0x8c] sm:$0xf0]  ;;  %v4607_v3 = vld [vmem:[%s7752_s2 + $0x580] sm:$0xf] }
  0x80   :  { %1658 = vmatpush.bf16.msra.mxu0 %v4428_v17  ;;  %1613 = vmatmul.bf16.vlgmr.msrb.gmra.mxu1 %v5161_v51  ;;  %v4806_v17 = vld [vmem:[%s7752_s2 + $0x320] sm:$0xf0] }
  0x81   :  { %1676 = vmatpush.bf16.msra.mxu1 %v1296_v18  ;;  %1599 = vmatpush.bf16.msra.mxu2 %v4584_v42  ;;  %v4765_v18 = vld [vmem:[%s7752_s2 + $0x1d8] sm:$0xf0]  ;;  %v4256_v23 = vor.u32 %v4806_v17, %v4255_v16  ;;  %v4608_v16 = vor.u32 %v4892_v4, %v4607_v3  ;;  %v4195_v3 = vld [vmem:[%s7752_s2 + $0x240] sm:$0xf]  ;;  %v4788_v4 = vld [vmem:[%s7752_s2 + $0x290] sm:$0xf0] }
  0x82   :  { %v4096_v8 = vor.u32 %v4765_v18, %v4095_v14  ;;  %v1053_v14 = vpack.c.b16 %v843_v59, %v843_v59 }
  0x83   :  { %1683 = vmatpush.bf16.msra.mxu3 %v4516_v21  ;;  %4636 = vmatmul.msk.bf16.vlgmr.msrb.gmra.mxu0 %vm1249_vm1, %v5124_v34  ;;  %v844_v21 = vunpack.c.h.b16 %v5804_v63 }
  0x84   :  { %1659 = vmatpush.bf16.msra.mxu0 %v4344_v28  ;;  %v4785_v28 = vld [vmem:[%s7752_s2 + $0x278] sm:$0xf0] }
  0x85   :  { %1677 = vmatpush.bf16.msra.mxu1 %v4596_v29  ;;  %1631 = vmatpush.bf16.msrb.mxu2 %v4508_v44  ;;  %v4744_v29 = vld [vmem:[%s7752_s2 + $0x130] sm:$0xf0]  ;;  %v1054_v32 = vpack.c.b16 %v844_v21, %v844_v21  ;;  %v4172_v36 = vor.u32 %v4785_v28, %v4171_v27  ;;  %v4734_v44 = vld [vmem:[%s7752_s2 + $0xe4] sm:$0xf]  ;;  %v4599_v28 = vld [vmem:[%s7752_s2 + $0x578] sm:$0xf] }
  0x86   :  { %v4012_v37 = vor.u32 %v4744_v29, %v4011_v26  ;;  %v4016_v56 = vor.u32 %v4734_v44, %v4013_v45  ;;  %v4882_v21 = vld [vmem:[%s7752_s2 + $0x584] sm:$0xf]  ;;  %v4533_v26 = vld [vmem:[%s7752_s2 + $0x534] sm:$0xf0]  ;;  %v4891_v29 = vld [vmem:[%s7752_s2 + $0x5c8] sm:$0xf0] }
  0x87   :  { %1684 = vmatpush.bf16.msra.mxu3 %v4432_v33  ;;  %v845_v33 = vunpack.c.l.b16 %v239_v22  ;;  %v1302_v42 = vand.u32 %v4970_v15, %v1054_v32  ;;  %v4798_v32 = vld [vmem:[%s7752_s2 + $0x2e4] sm:$0xf]  ;;  %v4600_v40 = vor.u32 %v4891_v29, %v4599_v28  ;;  %v4187_v29 = vld [vmem:[%s7752_s2 + $0x238] sm:$0xf] }
  0x88   :  { %1660 = vmatpush.bf16.msra.mxu0 %v4260_v43  ;;  %v4723_v43 = vld [vmem:[%s7752_s2 + $0x88] sm:$0xf0]  ;;  %v4714_v28 = vld [vmem:[%s7752_s2 + $0x44] sm:$0xf] }
  0x89   :  { %1709 = vmatpush.bf16.msrb.mxu1 %v4520_v35  ;;  %1632 = vmatpush.bf16.msrb.mxu2 %v4424_v58  ;;  %v3924_v35 = vor.u32 %v4712_v24, %v3921_v49  ;;  %v1055_v46 = vpack.c.b16 %v845_v33, %v845_v33  ;;  %v3928_v55 = vor.u32 %v4723_v43, %v3927_v39  ;;  %v4743_v58 = vld [vmem:[%s7752_s2 + $0x128] sm:$0xf0]  ;;  %v4447_v24 = vld [vmem:[%s7752_s2 + $0x438] sm:$0xf]  ;;  %v4830_v39 = vld [vmem:[%s7752_s2 + $0x3e0] sm:$0xf0] }
  0x8a   :  { %4637 = vmatmul.msk.bf16.vlgmr.msrb.gmra.mxu3 %vm1249_vm1, %v5124_v34  ;;  %v4851_v49 = vld [vmem:[%s7752_s2 + $0x488] sm:$0xf0]  ;;  %v4523_v33 = vld [vmem:[%s7752_s2 + $0x4d8] sm:$0xf] }
  0x8b   :  { %1685 = vmatpush.bf16.msra.mxu3 %v4348_v47  ;;  %v846_v47 = vunpack.c.h.b16 %v239_v22  ;;  %v4609_v22 = vld [vmem:[%s7752_s2 + $0x5d4] sm:$0xf0]  ;;  %v4448_v31 = vor.u32 %v4851_v49, %v4447_v24  ;;  %v4778_v24 = vld [vmem:[%s7752_s2 + $0x244] sm:$0xf] }
  0x8c   :  { %1661 = vmatpush.bf16.msra.mxu0 %v4176_v57  ;;  %4635 = vmatmul.msk.bf16.vlgmr.msra.gmra.mxu2 %vm1249_vm1, %v5124_v34  ;;  %v4003_v57 = vld [vmem:[%s7752_s2 + $0xd8] sm:$0xf]  ;;  %v4612_v27 = vor.u32 %v4882_v21, %v4609_v22 }
  0x8d   :  { %1710 = vmatpush.bf16.msrb.mxu1 %v4436_v48  ;;  %1633 = vmatpush.bf16.msrb.mxu2 %v4340_v7  ;;  %v4881_v48 = vld [vmem:[%s7752_s2 + $0x57c] sm:$0xf]  ;;  %v1056_v1 = vpack.c.b16 %v846_v47, %v846_v47  ;;  %v4004_v63 = vor.u32 %v4743_v58, %v4003_v57  ;;  %v4531_v7 = vld [vmem:[%s7752_s2 + $0x4e0] sm:$0xf]  ;;  %v4439_v47 = vld [vmem:[%s7752_s2 + $0x430] sm:$0xf] }
  0x8e   :  { %v4604_v60 = vor.u32 %v4881_v48, %v4601_v50  ;;  %v4532_v19 = vor.u32 %v4872_v9, %v4531_v7  ;;  %v4850_v48 = vld [vmem:[%s7752_s2 + $0x480] sm:$0xf0]  ;;  %v4365_v57 = vld [vmem:[%s7752_s2 + $0x3e4] sm:$0xf0]  ;;  %v4197_v49 = vld [vmem:[%s7752_s2 + $0x294] sm:$0xf0] }
  0x8f   :  { %1686 = vmatpush.bf16.msra.mxu3 %v4264_v61  ;;  %v1305_v61 = vand.u32 %v4970_v15, %v1055_v46  ;;  %v1308_v17 = vand.u32 %v4970_v15, %v1056_v1  ;;  %v4777_v46 = vld [vmem:[%s7752_s2 + $0x23c] sm:$0xf]  ;;  %v4440_v58 = vor.u32 %v4850_v48, %v4439_v47  ;;  %v3943_v48 = vld [vmem:[%s7752_s2 + $0x48] sm:$0xf] }
  0x90   :  { %1662 = vmatpush.bf16.msra.mxu0 %v4092_v6  ;;  %4638 = vmatmul.msk.bf16.vlgmr.msra.gmra.mxu1 %vm1249_vm1, %v5124_v34  ;;  %v4441_v6 = vld [vmem:[%s7752_s2 + $0x484] sm:$0xf0] }
  0x91   :  { %1711 = vmatpush.bf16.msrb.mxu1 %v4352_v62  ;;  %1634 = vmatpush.bf16.msrb.mxu2 %v4256_v23  ;;  %v4713_v62 = vld [vmem:[%s7752_s2 + $0x3c] sm:$0xf]  ;;  %v4444_v18 = vor.u32 %v4840_v5, %v4441_v6  ;;  %v4357_v23 = vld [vmem:[%s7752_s2 + $0x3dc] sm:$0xf0]  ;;  %v4799_v5 = vld [vmem:[%s7752_s2 + $0x2ec] sm:$0xf] }
  0x92   :  { %v3932_v10 = vor.u32 %v4713_v62, %v3929_v0  ;;  %v4360_v30 = vor.u32 %v4819_v20, %v4357_v23  ;;  %v4355_v62 = vld [vmem:[%s7752_s2 + $0x388] sm:$0xf]  ;;  %v4829_v0 = vld [vmem:[%s7752_s2 + $0x3d8] sm:$0xf0]  ;;  %v6046_v6 = vld [vmem:[%s7752_s2 + $0x630] sm:$0x11] }
  0x93   :  { %1687 = vmatpush.bf16.msra.mxu3 %v4180_v11  ;;  %v3919_v11 = vld [vmem:[%s7752_s2 + $0x30] sm:$0xf]  ;;  %v4356_v7 = vor.u32 %v4829_v0, %v4355_v62  ;;  %v4767_v20 = vld [vmem:[%s7752_s2 + $0x1e8] sm:$0xf0]  ;;  %v4019_v0 = vld [vmem:[%s7752_s2 + $0xe8] sm:$0xf] }
  0x94   :  { %1663 = vmatpush.bf16.msra.mxu0 %v4008_v13 }
  0x95   :  { %1712 = vmatpush.bf16.msrb.mxu1 %v4268_v12  ;;  %1635 = vmatpush.bf16.msrb.mxu2 %v4172_v36  ;;  %v4722_v12 = vld [vmem:[%s7752_s2 + $0x80] sm:$0xf0] }
  0x96   :  { %v3920_v13 = vor.u32 %v4722_v12, %v3919_v11  ;;  %v4735_v11 = vld [vmem:[%s7752_s2 + $0xec] sm:$0xf] }
  0x97   :  { %1688 = vmatpush.bf16.msra.mxu3 %v4096_v8  ;;  %v1299_v8 = vand.u32 %v4970_v15, %v1053_v14  ;;  %v4271_v14 = vld [vmem:[%s7752_s2 + $0x2e0] sm:$0xf] }
  0x98   :  { %1664 = vmatpush.bf16.msra.mxu0 %v3924_v35  ;;  %v4871_v35 = vld [vmem:[%s7752_s2 + $0x528] sm:$0xf0] }
  0x99   :  { %1713 = vmatpush.bf16.msrb.mxu1 %v4184_v25  ;;  %1636 = vmatpush.bf16.msrb.mxu2 %v4088_v52  ;;  %v4862_v25 = vld [vmem:[%s7752_s2 + $0x4e4] sm:$0xf]  ;;  %v4524_v43 = vor.u32 %v4871_v35, %v4523_v33  ;;  %v4189_v52 = vld [vmem:[%s7752_s2 + $0x28c] sm:$0xf0] }
  0x9a   :  { %v4536_v36 = vor.u32 %v4862_v25, %v4533_v26  ;;  %v4192_v59 = vor.u32 %v4777_v46, %v4189_v52  ;;  %v4027_v33 = vld [vmem:[%s7752_s2 + $0xf0] sm:$0xf]  ;;  %v4746_v35 = vld [vmem:[%s7752_s2 + $0x140] sm:$0xf0] }
  0x9b   :  { %1689 = vmatpush.bf16.msra.mxu3 %v4012_v37  ;;  %1665 = vmatmul.bf16.vlgmr.msra.gmra.mxu0 %v5161_v51  ;;  %v4273_v37 = vld [vmem:[%s7752_s2 + $0x334] sm:$0xf0]  ;;  %v4766_v46 = vld [vmem:[%s7752_s2 + $0x1e0] sm:$0xf0] }
  0x9c   :  { %1728 = vmatpush.bf16.msrb.mxu0 %v1302_v42  ;;  %v4449_v42 = vld [vmem:[%s7752_s2 + $0x48c] sm:$0xf0]  ;;  %v4276_v44 = vor.u32 %v4798_v32, %v4273_v37  ;;  %v3937_v32 = vld [vmem:[%s7752_s2 + $0x94] sm:$0xf0] }
  0x9d   :  { %1714 = vmatpush.bf16.msrb.mxu1 %v4100_v38  ;;  %1637 = vmatpush.bf16.msrb.mxu2 %v4004_v63  ;;  %v4363_v38 = vld [vmem:[%s7752_s2 + $0x390] sm:$0xf]  ;;  %v4452_v50 = vor.u32 %v4841_v41, %v4449_v42  ;;  %v4281_v63 = vld [vmem:[%s7752_s2 + $0x33c] sm:$0xf0]  ;;  %v1393_v22 = vpop.f32.mrf.mxu3  ;;  %v3940_v42 = vor.u32 %v4714_v28, %v3937_v32  ;;  %v4615_v32 = vld [vmem:[%s7752_s2 + $0x588] sm:$0xf] }
  0x9e   :  { %v4364_v45 = vor.u32 %v4830_v39, %v4363_v38  ;;  %v4757_v38 = vld [vmem:[%s7752_s2 + $0x19c] sm:$0xf]  ;;  %v4113_v39 = vld [vmem:[%s7752_s2 + $0x1ec] sm:$0xf0] }
  0x9f   :  { %1690 = vmatpush.bf16.msra.mxu3 %v3928_v55  ;;  %v1341_v55 = vpop.f32.mrf.mxu1  ;;  %v4116_v47 = vor.u32 %v4757_v38, %v4113_v39 }
  0xa0   :  { %1729 = vmatpush.bf16.msrb.mxu0 %v4604_v60  ;;  %v4280_v60 = vor.u32 %v4809_v54, %v4279_v53  ;;  %v1328_v12 = vpop.f32.mrf.mxu0 }
  0xa1   :  { %1715 = vmatpush.bf16.msrb.mxu1 %v4016_v56  ;;  %1638 = vmatpush.bf16.msrb.mxu2 %v3920_v13  ;;  %v4820_v56 = vld [vmem:[%s7752_s2 + $0x394] sm:$0xf]  ;;  %v6068_v21 = vadd.f32 %v1341_v55, %v1328_v12  ;;  %v848_v13 = vunpack.c.h.b16 %v6046_v6  ;;  %v4895_v12 = vld [vmem:[%s7754_s4 + $0x4] sm:$0xf] }
  0xa2   :  { %1691 = vmatmul.bf16.vlgmr.msra.gmra.mxu3 %v5161_v51  ;;  %v4368_v1 = vor.u32 %v4820_v56, %v4365_v57  ;;  %v4736_v55 = vld [vmem:[%s7752_s2 + $0xf4] sm:$0xf]  ;;  %v4029_v56 = vld [vmem:[%s7752_s2 + $0x144] sm:$0xf0] }
  0xa3   :  { %1754 = vmatpush.bf16.msrb.mxu3 %v1305_v61  ;;  %v4756_v61 = vld [vmem:[%s7752_s2 + $0x194] sm:$0xf]  ;;  %v1058_v37 = vpack.c.b16 %v848_v13, %v848_v13 }
  0xa4   :  { %1761 = vmatpush.bf16.msra.mxu0 %v4528_v2  ;;  %1639 = vmatmul.bf16.vlgmr.msrb.gmra.mxu2 %v5161_v51  ;;  %v4105_v2 = vld [vmem:[%s7752_s2 + $0x1e4] sm:$0xf0] }
  0xa5   :  { %1716 = vmatpush.bf16.msrb.mxu1 %v3932_v10  ;;  %1702 = vmatpush.bf16.msra.mxu2 %v1299_v8  ;;  %v4108_v9 = vor.u32 %v4756_v61, %v4105_v2  ;;  %v4196_v10 = vor.u32 %v4788_v4, %v4195_v3  ;;  %v241_v8 = vld [vmem:[%s7752_s2 + $0x638] sm:$0x1]  ;;  %v1395_v52 = vpop.f32.mrf.mxu3  ;;  %v1314_v54 = vand.u32 %v4970_v15, %v1058_v37  ;;  %v4715_v2 = vld [vmem:[%s7752_s2 + $0x4c] sm:$0xf]  ;;  %v847_v3 = vunpack.c.l.b16 %v6046_v6  ;;  %v4623_v6 = vld [vmem:[%s7752_s2 + $0x590] sm:$0xf] }
  0xa6   :  { %v4032_v4 = vor.u32 %v4736_v55, %v4029_v56  ;;  %v4901_v55 = vld [vmem:[%s7754_s4 + $0x30] sm:$0xf0]  ;;  %v4371_v56 = vld [vmem:[%s7752_s2 + $0x398] sm:$0xf] }
  0xa7   :  { %1755 = vmatpush.bf16.msrb.mxu3 %v4608_v16  ;;  %v4808_v16 = vld [vmem:[%s7752_s2 + $0x330] sm:$0xf0]  ;;  %v1343_v23 = vpop.f32.mrf.mxu1  ;;  %v1057_v13 = vpack.c.b16 %v847_v3, %v847_v3 }
  0xa8   :  { %1762 = vmatpush.bf16.msra.mxu0 %v4444_v18  ;;  %1717 = vmatmul.bf16.vlgmr.msrb.gmra.mxu1 %v5161_v51  ;;  %v4021_v18 = vld [vmem:[%s7752_s2 + $0x13c] sm:$0xf0]  ;;  %v4272_v25 = vor.u32 %v4808_v16, %v4271_v14 }
  0xa9   :  { %1780 = vmatpush.bf16.msra.mxu1 %v1308_v17  ;;  %1703 = vmatpush.bf16.msra.mxu2 %v4600_v40  ;;  %v4284_v17 = vor.u32 %v4799_v5, %v4281_v63  ;;  %v4024_v26 = vor.u32 %v4735_v11, %v4021_v18  ;;  %v6106_v40 = vpop.f32.mrf.mxu2  ;;  %v3945_v63 = vld [vmem:[%s7752_s2 + $0x9c] sm:$0xf0]  ;;  %v4899_v18 = vld [vmem:[%s7754_s4 + $0x20] sm:$0xf0] }
  0xab   :  { %1787 = vmatpush.bf16.msra.mxu3 %v4532_v19  ;;  %4640 = vmatmul.msk.bf16.vlgmr.msrb.gmra.mxu0 %vm1249_vm1, %v5124_v34  ;;  %v4111_v19 = vld [vmem:[%s7752_s2 + $0x198] sm:$0xf] }
  0xac   :  { %1763 = vmatpush.bf16.msra.mxu0 %v4360_v30  ;;  %v4787_v30 = vld [vmem:[%s7752_s2 + $0x288] sm:$0xf0] }
  0xad   :  { %1781 = vmatpush.bf16.msra.mxu1 %v4612_v27  ;;  %1735 = vmatpush.bf16.msrb.mxu2 %v4524_v43  ;;  %v4112_v27 = vor.u32 %v4767_v20, %v4111_v19  ;;  %v4188_v41 = vor.u32 %v4787_v30, %v4187_v29  ;;  %v4028_v43 = vor.u32 %v4746_v35, %v4027_v33  ;;  %v4650_v19 = vld [vmem:[%s7754_s4 + $0x1c] sm:$0xf0]  ;;  %v4893_v33 = vld [vmem:[%s7752_s2 + $0x5d8] sm:$0xf0]  ;;  %v4539_v35 = vld [vmem:[%s7752_s2 + $0x4e8] sm:$0xf] }
  0xae   :  { %v3935_v20 = vld [vmem:[%s7752_s2 + $0x40] sm:$0xf]  ;;  %v4616_v38 = vor.u32 %v4893_v33, %v4615_v32 }
  0xaf   :  { %1788 = vmatpush.bf16.msra.mxu3 %v4448_v31  ;;  %v4200_v31 = vor.u32 %v4778_v24, %v4197_v49  ;;  %v1380_v57 = vpop.f32.mrf.mxu1  ;;  %v3948_v49 = vor.u32 %v4715_v2, %v3945_v63  ;;  %v4810_v2 = vld [vmem:[%s7752_s2 + $0x340] sm:$0xf0] }
  0xb0   :  { %1764 = vmatpush.bf16.msra.mxu0 %v4276_v44  ;;  %v1330_v44 = vpop.f32.mrf.mxu0  ;;  %v6135_v62 = vadd.f32 %v1393_v22, %v1380_v57  ;;  %v4724_v22 = vld [vmem:[%s7752_s2 + $0x90] sm:$0xf0]  ;;  %v4831_v57 = vld [vmem:[%s7752_s2 + $0x3e8] sm:$0xf0] }
  0xb1   :  { %1813 = vmatpush.bf16.msrb.mxu1 %v4536_v36  ;;  %1736 = vmatpush.bf16.msrb.mxu2 %v4440_v58  ;;  %v849_v36 = vunpack.c.l.b16 %v241_v8  ;;  %v1356_v14 = vpop.f32.mrf.mxu2  ;;  %v3936_v28 = vor.u32 %v4724_v22, %v3935_v20  ;;  %v4900_v44 = vld [vmem:[%s7754_s4 + $0x28] sm:$0xf0] }
  0xb2   :  { %4641 = vmatmul.msk.bf16.vlgmr.msrb.gmra.mxu3 %vm1249_vm1, %v5124_v34  ;;  %v4768_v14 = vld [vmem:[%s7752_s2 + $0x1f0] sm:$0xf0] }
  0xb3   :  { %1789 = vmatpush.bf16.msra.mxu3 %v4364_v45  ;;  %v4103_v45 = vld [vmem:[%s7752_s2 + $0x190] sm:$0xf]  ;;  %v1059_v53 = vpack.c.b16 %v849_v36, %v849_v36  ;;  %v4873_v36 = vld [vmem:[%s7752_s2 + $0x538] sm:$0xf0] }
  0xb4   :  { %1765 = vmatpush.bf16.msra.mxu0 %v4192_v59  ;;  %4639 = vmatmul.msk.bf16.vlgmr.msra.gmra.mxu2 %vm1249_vm1, %v5124_v34  ;;  %v4104_v58 = vor.u32 %v4766_v46, %v4103_v45  ;;  %v4883_v59 = vld [vmem:[%s7752_s2 + $0x58c] sm:$0xf]  ;;  %v4455_v46 = vld [vmem:[%s7752_s2 + $0x440] sm:$0xf] }
  0xb5   :  { %1814 = vmatpush.bf16.msrb.mxu1 %v4452_v50  ;;  %1737 = vmatpush.bf16.msrb.mxu2 %v4356_v7  ;;  %v4725_v50 = vld [vmem:[%s7752_s2 + $0x98] sm:$0xf0]  ;;  %v1317_v5 = vand.u32 %v4970_v15, %v1059_v53  ;;  %v4648_v7 = vld [vmem:[%s7754_s4] sm:$0xf] }
  0xb6   :  { %v3944_v61 = vor.u32 %v4725_v50, %v3943_v48 }
  0xb7   :  { %1790 = vmatpush.bf16.msra.mxu3 %v4280_v60  ;;  %v4617_v60 = vld [vmem:[%s7752_s2 + $0x5dc] sm:$0xf0]  ;;  %v1382_v30 = vpop.f32.mrf.mxu1 }
  0xb8   :  { %1766 = vmatpush.bf16.msra.mxu0 %v4108_v9  ;;  %4642 = vmatmul.msk.bf16.vlgmr.msra.gmra.mxu1 %vm1249_vm1, %v5124_v34  ;;  %v4898_v9 = vld [vmem:[%s7754_s4 + $0x18] sm:$0xf0]  ;;  %v4620_v11 = vor.u32 %v4883_v59, %v4617_v60  ;;  %v1419_v23 = vpop.f32.mrf.mxu0  ;;  %v4372_v60 = vor.u32 %v4831_v57, %v4371_v56 }
  0xb9   :  { %1815 = vmatpush.bf16.msrb.mxu1 %v4368_v1  ;;  %1738 = vmatpush.bf16.msrb.mxu2 %v4272_v25  ;;  %v4745_v1 = vld [vmem:[%s7752_s2 + $0x138] sm:$0xf0]  ;;  %v4649_v24 = vor.u32 %v4898_v9, %v4648_v7  ;;  %v1406_v25 = vpop.f32.mrf.mxu3  ;;  %v4203_v9 = vld [vmem:[%s7752_s2 + $0x248] sm:$0xf] }
  0xba   :  { %v4020_v16 = vor.u32 %v4745_v1, %v4019_v0  ;;  %v6183_v29 = vadd.f32 %v1419_v23, %v1406_v25  ;;  %v1932_v0 = vld [vmem:[%s7755_s1 + $0x8] sm:$0xff]  ;;  %v4287_v1 = vld [vmem:[%s7752_s2 + $0x2f0] sm:$0xf] }
  0xbb   :  { %1791 = vmatpush.bf16.msra.mxu3 %v4196_v10  ;;  %v4894_v10 = vld [vmem:[%s7752_s2 + $0x5e0] sm:$0xf0]  ;;  %v4288_v7 = vor.u32 %v4810_v2, %v4287_v1  ;;  %v1933_v23 = vld [vmem:[%s7755_s1 + $0x10] sm:$0xff] }
  0xbc   :  { %1767 = vmatpush.bf16.msra.mxu0 %v4024_v26  ;;  %v4624_v8 = vor.u32 %v4894_v10, %v4623_v6  ;;  %v4789_v6 = vld [vmem:[%s7752_s2 + $0x298] sm:$0xf0] }
  0xbd   :  { %1816 = vmatpush.bf16.msrb.mxu1 %v4284_v17  ;;  %1739 = vmatpush.bf16.msrb.mxu2 %v4188_v41  ;;  %v4656_v17 = vld [vmem:[%s7754_s4 + $0x8] sm:$0xf]  ;;  %v4897_v41 = vld [vmem:[%s7754_s4 + $0x14] sm:$0xf] }
  0xbe   :  { %v4657_v26 = vor.u32 %v4899_v18, %v4656_v17 }
  0xbf   :  { %1792 = vmatpush.bf16.msra.mxu3 %v4112_v27  ;;  %v4653_v27 = vor.u32 %v4895_v12, %v4650_v19  ;;  %v1471_v50 = vpop.f32.mrf.mxu1  ;;  %v4119_v12 = vld [vmem:[%s7752_s2 + $0x1a0] sm:$0xf]  ;;  %v4035_v19 = vld [vmem:[%s7752_s2 + $0xf8] sm:$0xf] }
  0xc0   :  { %1768 = vmatpush.bf16.msra.mxu0 %v3940_v42  ;;  %v1421_v39 = vpop.f32.mrf.mxu0  ;;  %v4540_v42 = vor.u32 %v4873_v36, %v4539_v35  ;;  %v4120_v17 = vor.u32 %v4768_v14, %v4119_v12 }
  0xc1   :  { %1817 = vmatpush.bf16.msrb.mxu1 %v4200_v31  ;;  %1740 = vmatpush.bf16.msrb.mxu2 %v4104_v58  ;;  %v1311_v31 = vand.u32 %v4970_v15, %v1057_v13  ;;  %v1367_v15 = vpop.f32.mrf.mxu2  ;;  %v1408_v45 = vpop.f32.mrf.mxu3 }
  0xc2   :  { %v6200_v37 = vadd.f32 %v1367_v15, %v6106_v40  ;;  %v4666_v40 = vld [vmem:[%s7754_s4 + $0x2c] sm:$0xf0] }
  0xc3   :  { %1793 = vmatpush.bf16.msra.mxu3 %v4028_v43  ;;  %1769 = vmatmul.bf16.vlgmr.msra.gmra.mxu0 %v5161_v51  ;;  %v4664_v43 = vld [vmem:[%s7754_s4 + $0x10] sm:$0xf]  ;;  %v4669_v48 = vor.u32 %v4897_v41, %v4666_v40 }
  0xc4   :  { %1832 = vmatpush.bf16.msrb.mxu0 %v1314_v54  ;;  %v4665_v52 = vor.u32 %v4900_v44, %v4664_v43  ;;  %v4672_v54 = vld [vmem:[%s7754_s4 + $0x18] sm:$0xf]  ;;  %v1935_v43 = vld [vmem:[%s7755_s1 + $0x20] sm:$0xff]  ;;  %v1936_v44 = vld [vmem:[%s7755_s1 + $0x28] sm:$0xff] }
  0xc5   :  { %1818 = vmatpush.bf16.msrb.mxu1 %v4116_v47  ;;  %1741 = vmatpush.bf16.msrb.mxu2 %v4020_v16  ;;  %v4852_v47 = vld [vmem:[%s7752_s2 + $0x490] sm:$0xf0]  ;;  %v4673_v59 = vor.u32 %v4901_v55, %v4672_v54  ;;  %v1939_v40 = vpack.c.bf16 %v1936_v44, %v1935_v43 }
  0xc6   :  { %v4456_v53 = vor.u32 %v4852_v47, %v4455_v46 }
  0xc7   :  { %1794 = vmatpush.bf16.msra.mxu3 %v3944_v61  ;;  %v1931_v61 = vld [vmem:[%s7755_s1] sm:$0xff] }
  0xc8   :  { %1833 = vmatpush.bf16.msrb.mxu0 %v4620_v11  ;;  %v1458_v3 = vpop.f32.mrf.mxu0  ;;  %v4204_v11 = vor.u32 %v4789_v6, %v4203_v9 }
  0xc9   :  { %1819 = vmatpush.bf16.msrb.mxu1 %v4032_v4  ;;  %1742 = vmatpush.bf16.msrb.mxu2 %v3936_v28  ;;  %v1369_v58 = vpop.f32.mrf.mxu2  ;;  %v1473_v4 = vpop.f32.mrf.mxu1  ;;  %v6251_v63 = vadd.f32 %v1471_v50, %v1458_v3 }
  0xca   :  { %1795 = vmatmul.bf16.vlgmr.msra.gmra.mxu3 %v5161_v51 }
  0xcb   :  { %1858 = vmatpush.bf16.msrb.mxu3 %v1317_v5  ;;  %v6249_v5 = vpack.c.bf16 %v1932_v0, %v1931_v61 }
  0xcc   :  { %2001 = vmatpush.bf16.msra.mxu0 %v4649_v24  ;;  %1743 = vmatmul.bf16.vlgmr.msrb.gmra.mxu2 %v5161_v51  ;;  %v1934_v24 = vld [vmem:[%s7755_s1 + $0x18] sm:$0xff] }
  0xcd   :  { %1820 = vmatpush.bf16.msrb.mxu1 %v3948_v49  ;;  %1806 = vmatpush.bf16.msra.mxu2 %v1311_v31  ;;  %v3951_v49 = vld [vmem:[%s7752_s2 + $0x50] sm:$0xf]  ;;  %v1938_v28 = vpack.c.bf16 %v1934_v24, %v1933_v23 }
  0xcf   :  { %1859 = vmatpush.bf16.msrb.mxu3 %v4624_v8  ;;  %v4726_v8 = vld [vmem:[%s7752_s2 + $0xa0] sm:$0xf0] }
  0xd0   :  { %1821 = vmatmul.bf16.vlgmr.msrb.gmra.mxu1 %v5161_v51  ;;  %v1460_v16 = vpop.f32.mrf.mxu0  ;;  %v3952_v31 = vor.u32 %v4726_v8, %v3951_v49 }
  0xd1   :  { %2025 = vmatpush.bf16.msra.mxu1 %v4653_v27  ;;  %1807 = vmatpush.bf16.msra.mxu2 %v4616_v38  ;;  %v1432_v10 = vpop.f32.mrf.mxu2  ;;  %v4658_v27 = vld [vmem:[%s7754_s4 + $0x24] sm:$0xf0] }
  0xd3   :  { %2049 = vmatpush.bf16.msra.mxu3 %v4657_v26  ;;  %4644 = vmatmul.msk.bf16.vlgmr.msrb.gmra.mxu0 %vm1249_vm1, %v5124_v34  ;;  %v4896_v26 = vld [vmem:[%s7754_s4 + $0xc] sm:$0xf] }
  0xd4   :  { %2097 = vmatpush.bf16.msrb.mxu0 %v4665_v52  ;;  %v4661_v33 = vor.u32 %v4896_v26, %v4658_v27 }
  0xd5   :  { %2121 = vmatpush.bf16.msrb.mxu1 %v4669_v48  ;;  %1839 = vmatpush.bf16.msrb.mxu2 %v4540_v42  ;;  %v1510_v18 = vpop.f32.mrf.mxu1  ;;  %v1484_v20 = vpop.f32.mrf.mxu3 }
  0xd8   :  { %v1523_v25 = vpop.f32.mrf.mxu0 }
  0xd9   :  { %1840 = vmatpush.bf16.msrb.mxu2 %v4456_v53  ;;  %v1434_v22 = vpop.f32.mrf.mxu2  ;;  %v6297_v30 = vadd.f32 %v1523_v25, %v1510_v18 }
  0xda   :  { %4645 = vmatmul.msk.bf16.vlgmr.msrb.gmra.mxu3 %vm1249_vm1, %v5124_v34 }
  0xdb   :  { %2145 = vmatpush.bf16.msrb.mxu3 %v4673_v59 }
  0xdc   :  { %4643 = vmatmul.msk.bf16.vlgmr.msra.gmra.mxu2 %vm1249_vm1, %v5124_v34  ;;  %v4747_v34 = vld [vmem:[%s7752_s2 + $0x148] sm:$0xf0] }
  0xdd   :  { %1841 = vmatpush.bf16.msrb.mxu2 %v4372_v60  ;;  %v4036_v13 = vor.u32 %v4747_v34, %v4035_v19  ;;  %v1512_v32 = vpop.f32.mrf.mxu1  ;;  %v1486_v35 = vpop.f32.mrf.mxu3 }
  0xe0   :  { %4677 = vmatmul.msk.bf16.vlgmr.msra.gmra.mxu1 %vm1984_vm2, %v6249_v5  ;;  %v1525_v38 = vpop.f32.mrf.mxu0 }
  0xe1   :  { %1842 = vmatpush.bf16.msrb.mxu2 %v4288_v7  ;;  %v1445_v36 = vpop.f32.mrf.mxu2 }
  0xe2   :  { %v6300_v15 = vadd.f32 %v1445_v36, %v1432_v10 }
  0xe3   :  { %4674 = vmatmul.msk.bf16.vlgmr.msra.gmra.mxu0 %vm1984_vm2, %v6249_v5 }
  0xe5   :  { %1843 = vmatpush.bf16.msrb.mxu2 %v4204_v11  ;;  %v1575_v39 = vpop.f32.mrf.mxu1  ;;  %v1549_v41 = vpop.f32.mrf.mxu3 }
  0xe9   :  { %1844 = vmatpush.bf16.msrb.mxu2 %v4120_v17  ;;  %v1447_v42 = vpop.f32.mrf.mxu2 }
  0xea   :  { %4680 = vmatmul.msk.bf16.vlgmr.msra.gmra.mxu3 %vm1984_vm2, %v6249_v5 }
  0xed   :  { %1845 = vmatpush.bf16.msrb.mxu2 %v4036_v13  ;;  %v1551_v47 = vpop.f32.mrf.mxu3 }
  0xf0   :  { %4678 = vmatmul.msk.bf16.gmra.mxu1 %vm1984_vm2, %v1938_v28  ;;  %v1562_v45 = vpop.f32.mrf.mxu0 }
  0xf1   :  { %1846 = vmatpush.bf16.msrb.mxu2 %v3952_v31  ;;  %v6311_v46 = vadd.f32 %v1575_v39, %v1562_v45  ;;  %v1497_v48 = vpop.f32.mrf.mxu2 }
  0xf2   :  { %v6314_v50 = vadd.f32 %v1497_v48, %v1484_v20 }
  0xf3   :  { %4675 = vmatmul.msk.bf16.gmra.mxu0 %vm1984_vm2, %v1938_v28 }
  0xf4   :  { %1847 = vmatmul.bf16.vlgmr.msrb.gmra.mxu2 %v5161_v51  ;;  %v1577_v51 = vpop.f32.mrf.mxu1 }
  0xf5   :  { %2073 = vmatpush.bf16.msra.mxu2 %v4661_v33 }
  0xf8   :  { %v1564_v52 = vpop.f32.mrf.mxu0 }
  0xf9   :  { %v1499_v55 = vpop.f32.mrf.mxu2 }
  0xfa   :  { %4681 = vmatmul.msk.bf16.gmra.mxu3 %vm1984_vm2, %v1938_v28 }
  0xfd   :  { %v1614_v53 = vpop.f32.mrf.mxu1  ;;  %v1588_v54 = vpop.f32.mrf.mxu3 }
 0x100   :  { %4679 = vmatmul.msk.bf16.gmra.mxu1 %vm1984_vm2, %v1939_v40  ;;  %v1627_v56 = vpop.f32.mrf.mxu0 }
 0x101   :  { %v6320_v57 = vadd.f32 %v1627_v56, %v1614_v53  ;;  %v1536_v60 = vpop.f32.mrf.mxu2 }
 0x102   :  { %v6324_v61 = vadd.f32 %v1549_v41, %v1536_v60 }
 0x103   :  { %4676 = vmatmul.msk.bf16.gmra.mxu0 %vm1984_vm2, %v1939_v40 }
 0x104   :  { %4683 = vmatmul.msk.bf16.vlgmr.msra.gmra.mxu2 %vm1984_vm2, %v6249_v5 }
 0x105   :  { %v1616_v58 = vpop.f32.mrf.mxu1  ;;  %v1590_v59 = vpop.f32.mrf.mxu3 }
 0x108   :  { %v1629_v0 = vpop.f32.mrf.mxu0 }
 0x109   :  { %v1538_v3 = vpop.f32.mrf.mxu2 }
 0x10a   :  { %4682 = vmatmul.msk.bf16.gmra.mxu3 %vm1984_vm2, %v1939_v40 }
 0x10d   :  { %v1679_v1 = vpop.f32.mrf.mxu1  ;;  %v1653_v2 = vpop.f32.mrf.mxu3 }
 0x110   :  { %4689 = vmatmul.msk.bf16.vlgmr.msrb.gmra.mxu1 %vm1984_vm2, %v6249_v5 }
 0x111   :  { %v1601_v6 = vpop.f32.mrf.mxu2 }
 0x112   :  { %v6334_v11 = vadd.f32 %v1601_v6, %v1588_v54 }
 0x113   :  { %4686 = vmatmul.msk.bf16.vlgmr.msrb.gmra.mxu0 %vm1984_vm2, %v6249_v5 }
 0x114   :  { %4684 = vmatmul.msk.bf16.gmra.mxu2 %vm1984_vm2, %v1938_v28 }
 0x115   :  { %v1681_v4 = vpop.f32.mrf.mxu1  ;;  %v1655_v9 = vpop.f32.mrf.mxu3 }
 0x118   :  { %v1666_v7 = vpop.f32.mrf.mxu0 }
 0x119   :  { %v6332_v10 = vadd.f32 %v1679_v1, %v1666_v7  ;;  %v1603_v14 = vpop.f32.mrf.mxu2 }
 0x11a   :  { %4692 = vmatmul.msk.bf16.vlgmr.msrb.gmra.mxu3 %vm1984_vm2, %v6249_v5 }
 0x120   :  { %4690 = vmatmul.msk.bf16.gmra.mxu1 %vm1984_vm2, %v1938_v28  ;;  %v1668_v12 = vpop.f32.mrf.mxu0 }
 0x123   :  { %4687 = vmatmul.msk.bf16.gmra.mxu0 %vm1984_vm2, %v1938_v28 }
 0x124   :  { %4685 = vmatmul.msk.bf16.gmra.mxu2 %vm1984_vm2, %v1939_v40 }
 0x125   :  { %v1718_v16 = vpop.f32.mrf.mxu1  ;;  %v6339_v5 = vpop.f32.mrf.mxu3 }
 0x127   :  { %v1640_v34 = vpop.f32.mrf.mxu2 }
 0x128   :  { %v1731_v17 = vpop.f32.mrf.mxu0  ;;  %v6342_v20 = vadd.f32 %v1653_v2, %v1640_v34 }
 0x129   :  { %v1732_v54 = vadd.f32 %v1731_v17, %v1718_v16 }
 0x12a   :  { %4693 = vmatmul.msk.bf16.gmra.mxu3 %vm1984_vm2, %v1938_v28  ;;  %v6353_v28 = vld [vmem:[%s7756_s3] sm:$0xff] }
 0x12b   :  { %v1868_v31 = vperm.slane %v6353_v28, 0  ;;  %v1870_v33 = vperm.slane %v6353_v28, 2  ;;  %v1869_v41 = vperm.slane %v6353_v28, 1  ;;  %v1871_v43 = vperm.slane %v6353_v28, 3 }
 0x12c   :  { %v1873_v44 = vperm.slane %v6353_v28, 5  ;;  %v1875_v47 = vperm.slane %v6353_v28, 7  ;;  %v1872_v12 = vperm.slane %v6353_v28, 4 }
 0x12d   :  { %v1720_v18 = vpop.f32.mrf.mxu1  ;;  %v1694_v19 = vpop.f32.mrf.mxu3  ;;  %v6358_v38 = vadd.f32 %v1868_v31, %v6068_v21  ;;  %v6364_v42 = vadd.f32 %v1870_v33, %v6135_v62  ;;  %v6372_v21 = vadd.f32 %v1869_v41, %v6200_v37  ;;  %v6378_v62 = vld [vmem:[%s7756_s3 + $0x8] sm:$0xff]  ;;  %v6393_v3 = vadd.f32 %v1871_v43, %v6183_v29 }
 0x12e   :  { %v1876_v53 = vperm.slane %v6378_v62, 0  ;;  %v1883_v55 = vperm.slane %v6378_v62, 7  ;;  %v6396_v4 = vadd.f32 %v1873_v44, %v6251_v63  ;;  %v6402_v14 = vadd.f32 %v1875_v47, %v6297_v30 }
 0x12f   :  { %v1642_v24 = vpop.f32.mrf.mxu2  ;;  %7810 = vst [vmem:[#allocation2_spill] sm:$0xff] %v6364_v42  ;;  %v2618_v45 = vrot.slane %v6358_v38, 5  ;;  %v2763_v51 = vrot.slane %v6358_v38, 1  ;;  %v2348_v0 = vrot.slane %v6364_v42, 4  ;;  %v2347_v16 = vrot.slane %v6372_v21, 4 }
 0x130   :  { %4691 = vmatmul.msk.bf16.gmra.mxu1 %vm1984_vm2, %v1939_v40  ;;  %v1733_v22 = vpop.f32.mrf.mxu0  ;;  %v6407_v29 = vadd.f32 %v1876_v53, %v6324_v61  ;;  %v6409_v18 = vadd.f32 %v1883_v55, %v1732_v54  ;;  %v2619_v63 = vrot.slane %v6372_v21, 5  ;;  %v2764_v19 = vrot.slane %v6372_v21, 1 }
 0x131   :  { %v1877_v34 = vperm.slane %v6378_v62, 1  ;;  %v3022_v22 = vrot.slane %v6372_v21, 2  ;;  %v1874_v24 = vperm.slane %v6353_v28, 6  ;;  %v1882_v31 = vperm.slane %v6378_v62, 6 }
 0x132   :  { %v2367_v33 = vrot.slane %v6402_v14, 3  ;;  %v2233_v41 = vrot.slane %v6409_v18, 6  ;;  %v2639_v28 = vrot.slane %v6402_v14, 4  ;;  %v7763_v43 = vrot.slane %v6402_v14, 1 }
 0x133   :  { %4688 = vmatmul.msk.bf16.gmra.mxu0 %vm1984_vm2, %v1939_v40  ;;  %v6430_v44 = vadd.f32 %v1877_v34, %v6311_v46  ;;  %v6436_v55 = vadd.f32 %v1872_v12, %v6300_v15  ;;  %v6453_v9 = vadd.f32 %v1874_v24, %v6314_v50  ;;  %v1880_v54 = vperm.slane %v6378_v62, 4 }
 0x135   :  { %v1783_v13 = vpop.f32.mrf.mxu1  ;;  %v6346_v23 = vpop.f32.mrf.mxu3  ;;  %v7761_v61 = vrot.slane %v6430_v44, 7 }
 0x137   :  { %v1705_v27 = vpop.f32.mrf.mxu2 }
 0x13a   :  { %4694 = vmatmul.msk.bf16.gmra.mxu3 %vm1984_vm2, %v1939_v40  ;;  %v2346_v40 = vrot.slane %v6358_v38, 4 }
 0x13d   :  { %v1785_v49 = vpop.f32.mrf.mxu1  ;;  %v1759_v8 = vpop.f32.mrf.mxu3 }
 0x13e   :  { %v2369_v49 = vrot.slane %v6430_v44, 3 }
 0x13f   :  { %v1707_v36 = vpop.f32.mrf.mxu2 }
 0x140   :  { %v1770_v25 = vpop.f32.mrf.mxu0  ;;  %v2177_v36 = vrot.slane %v6407_v29, 7 }
 0x141   :  { %v6348_v26 = vadd.f32 %v1783_v13, %v1770_v25  ;;  %v1706_v25 = vadd.f32 %v1705_v27, %v6339_v5  ;;  %v2368_v5 = vrot.slane %v6407_v29, 3  ;;  %v2417_v27 = vrot.slane %v6409_v18, 2 }
 0x143   :  { %v6441_v6 = vadd.f32 %v1882_v31, %v1706_v25 }
 0x148   :  { %v1772_v32 = vpop.f32.mrf.mxu0 }
 0x149   :  { %v2176_v32 = vrot.slane %v6402_v14, 7 }
 0x14d   :  { %v1822_v35 = vpop.f32.mrf.mxu1  ;;  %v6360_v39 = vpop.f32.mrf.mxu3 }
 0x14f   :  { %v6387_v60 = vpop.f32.mrf.mxu2 }
 0x150   :  { %v1835_v56 = vpop.f32.mrf.mxu0 }
 0x151   :  { %v6385_v58 = vadd.f32 %v1835_v56, %v1822_v35  ;;  %v1879_v56 = vperm.slane %v6378_v62, 3 }
 0x155   :  { %v1824_v59 = vpop.f32.mrf.mxu1  ;;  %v1798_v7 = vpop.f32.mrf.mxu3 }
 0x157   :  { %v1746_v53 = vpop.f32.mrf.mxu2 }
 0x158   :  { %v1837_v35 = vpop.f32.mrf.mxu0 }
 0x15d   :  { %v2027_v47 = vpop.f32.mrf.mxu1  ;;  %v6439_v35 = vpop.f32.mrf.mxu3 }
 0x15e   :  { %v2191_v59 = vmul.f32 %v2177_v36, %v2027_v47  ;;  %v2247_v7 = vmul.f32 %v2233_v41, %v2027_v47  ;;  %v2382_v46 = vmul.f32 %v2368_v5, %v2027_v47  ;;  %v2431_v34 = vmul.f32 %v2417_v27, %v2027_v47 }
 0x15f   :  { %v2163_v37 = vmul.f32 %v2027_v47, %v6372_v21  ;;  %v2361_v12 = vmul.f32 %v2347_v16, %v2027_v47  ;;  %v2289_v31 = vrot.slane %v2027_v47, 3  ;;  %v1878_v27 = vperm.slane %v6378_v62, 2 }
 0x160   :  { %v2205_v53 = vrot.slane %v2191_v59, 1  ;;  %v2396_v17 = vrot.slane %v2382_v46, 1  ;;  %v2261_v25 = vrot.slane %v2247_v7, 2  ;;  %v2445_v13 = vrot.slane %v2431_v34, 2  ;;  %v2003_v15 = vpop.f32.mrf.mxu0  ;;  %v1809_v34 = vpop.f32.mrf.mxu2 }
 0x161   :  { %v2232_v59 = vrot.slane %v6441_v6, 6  ;;  %v1881_v16 = vperm.slane %v6378_v62, 5  ;;  %v2190_v47 = vmul.f32 %v2176_v32, %v2003_v15  ;;  %v2381_v24 = vmul.f32 %v2367_v33, %v2003_v15 }
 0x162   :  { %v2219_v2 = vadd.f32 %v2205_v53, %v2163_v37  ;;  %v2410_v8 = vadd.f32 %v2396_v17, %v2361_v12  ;;  %v2416_v53 = vrot.slane %v6441_v6, 2  ;;  %v6463_v12 = vadd.f32 %v1879_v56, %v6320_v57 }
 0x163   :  { %v2246_v7 = vmul.f32 %v2232_v59, %v2003_v15  ;;  %v2360_v30 = vmul.f32 %v2346_v40, %v2003_v15  ;;  %v2395_v5 = vrot.slane %v2381_v24, 1  ;;  %v2288_v33 = vrot.slane %v2003_v15, 3 }
 0x164   :  { %v2275_v46 = vadd.f32 %v2261_v25, %v2219_v2  ;;  %v2459_v37 = vadd.f32 %v2445_v13, %v2410_v8  ;;  %v2162_v13 = vmul.f32 %v2003_v15, %v6358_v38  ;;  %v2204_v8 = vrot.slane %v2190_v47, 1 }
 0x165   :  { %v6460_v17 = vpop.f32.mrf.mxu1  ;;  %v1863_v1 = vpop.f32.mrf.mxu3  ;;  %v2430_v52 = vmul.f32 %v2416_v53, %v2003_v15  ;;  %v2260_v56 = vrot.slane %v2246_v7, 2  ;;  %v2640_v62 = vrot.slane %v6407_v29, 4  ;;  %v6476_v40 = vadd.f32 %v1809_v34, %v6360_v39  ;;  %v6482_v15 = vld [vmem:[%s7756_s3 + $0x10] sm:$0x1f] }
 0x166   :  { %v2303_v50 = vadd.f32 %v2289_v31, %v2275_v46  ;;  %v2466_v25 = vadd.f32 %v2459_v37, %v2289_v31  ;;  %v2499_v48 = vmul.f32 %v2177_v36, %v6460_v17  ;;  %v2218_v57 = vadd.f32 %v2204_v8, %v2162_v13 }
 0x167   :  { %v2534_v1 = vmul.f32 %v2233_v41, %v6460_v17  ;;  %v2409_v46 = vadd.f32 %v2395_v5, %v2360_v30  ;;  %v2444_v31 = vrot.slane %v2430_v52, 2  ;;  %v2492_v37 = vmul.f32 %v6460_v17, %v6372_v21 }
 0x168   :  { %2480 = vst [vmem:[#allocation1 + $0x9] sm:$0xff] %v2466_v25  ;;  %v2513_v47 = vrot.slane %v2499_v48, 1  ;;  %v2274_v53 = vadd.f32 %v2260_v56, %v2218_v57  ;;  %v3043_v36 = vrot.slane %v6407_v29, 1  ;;  %v6484_v5 = vpop.f32.mrf.mxu0  ;;  %v1758_v7 = vadd.f32 %v6346_v23, %v6387_v60  ;;  %v1811_v25 = vpop.f32.mrf.mxu2 }
 0x169   :  { %v2458_v41 = vadd.f32 %v2444_v31, %v2409_v46  ;;  %v2548_v52 = vrot.slane %v2534_v1, 2  ;;  %v1884_v39 = vperm.slane %v6482_v15, 0  ;;  %v2316_v34 = vrot.slane %v2303_v50, 7 }
 0x16a   :  { %v2527_v30 = vadd.f32 %v2513_v47, %v2492_v37  ;;  %v2302_v24 = vadd.f32 %v2288_v33, %v2274_v53  ;;  %v7759_v57 = vrot.slane %v6460_v17, 3  ;;  %v2498_v56 = vmul.f32 %v2176_v32, %v6484_v5 }
 0x16b   :  { %v2465_v13 = vadd.f32 %v2458_v41, %v2288_v33  ;;  %v6497_v46 = vadd.f32 %v1878_v27, %v6334_v11  ;;  %v2533_v60 = vmul.f32 %v2232_v59, %v6484_v5  ;;  %v2491_v33 = vmul.f32 %v6484_v5, %v6358_v38 }
 0x16c   :  { %v2562_v8 = vadd.f32 %v2548_v52, %v2527_v30  ;;  %v6500_v23 = vsel %vm1253_vm0, %v2302_v24, %v2316_v34  ;;  %v2512_v31 = vrot.slane %v2498_v56, 1  ;;  %v6509_v47 = vadd.f32 %v1881_v16, %v6332_v10 }
 0x16d   :  { %v6494_v1 = vpop.f32.mrf.mxu1  ;;  %2479 = vst [vmem:[#allocation1] sm:$0xff] %v2465_v13  ;;  %v1885_v11 = vperm.slane %v6482_v15, 1  ;;  %v6512_v27 = vadd.f32 %v1884_v39, %v1758_v7  ;;  %v2547_v30 = vrot.slane %v2533_v60, 2  ;;  %v2820_v52 = vrot.slane %v6409_v18, 7  ;;  %v2051_v25 = vpop.f32.mrf.mxu3 }
 0x16e   :  { %v2785_v59 = vmul.f32 %v6494_v1, %v6407_v29  ;;  %v2590_v53 = vadd.f32 %v7759_v57, %v2562_v8  ;;  %v2526_v41 = vadd.f32 %v2512_v31, %v2491_v33  ;;  %v1887_v34 = vperm.slane %v6482_v15, 3 }
 0x16f   :  { %7811 = vst [vmem:[#allocation3_spill] sm:$0xff] %v6512_v27  ;;  %v7758_v39 = vrot.slane %v6484_v5, 3  ;;  %v2778_v13 = vmul.f32 %v2764_v19, %v6494_v1  ;;  %v2834_v8 = vmul.f32 %v2820_v52, %v6494_v1  ;;  %v6528_v56 = vadd.f32 %v1880_v54, %v6342_v20 }
 0x170   :  { %v2799_v24 = vrot.slane %v2785_v59, 1  ;;  %v2561_v7 = vadd.f32 %v2547_v30, %v2526_v41  ;;  %v2689_v60 = vrot.slane %v6409_v18, 3  ;;  %v7760_v33 = vrot.slane %v6512_v27, 6 }
 0x171   :  { %v2603_v59 = vrot.slane %v2590_v53, 7  ;;  %v2192_v32 = vmul.f32 %v7761_v61, %v2051_v25  ;;  %v2418_v20 = vrot.slane %v6512_v27, 2  ;;  %v2848_v16 = vrot.slane %v2834_v8, 2 }
 0x172   :  { %v2589_v41 = vadd.f32 %v7758_v39, %v2561_v7  ;;  %v2813_v30 = vadd.f32 %v2799_v24, %v2778_v13  ;;  %v2248_v19 = vmul.f32 %v7760_v33, %v2051_v25  ;;  %v2164_v24 = vmul.f32 %v2051_v25, %v6364_v42  ;;  %v6548_v13 = vpop.f32.mrf.mxu0 }
 0x173   :  { %v2206_v7 = vrot.slane %v2192_v32, 1  ;;  %v7764_v10 = vrot.slane %v6494_v1, 3  ;;  %v2383_v37 = vmul.f32 %v2369_v49, %v2051_v25  ;;  %v2819_v50 = vrot.slane %v6441_v6, 7 }
 0x174   :  { %v6545_v53 = vsel %vm1253_vm0, %v2589_v41, %v2603_v59  ;;  %v2862_v39 = vadd.f32 %v2848_v16, %v2813_v30  ;;  %v2262_v57 = vrot.slane %v2248_v19, 2  ;;  %v2432_v59 = vmul.f32 %v2418_v20, %v2051_v25 }
 0x175   :  { %v2220_v2 = vadd.f32 %v2206_v7, %v2164_v24  ;;  %v2362_v8 = vmul.f32 %v2348_v0, %v2051_v25  ;;  %v2397_v41 = vrot.slane %v2383_v37, 1  ;;  %v2784_v32 = vmul.f32 %v6548_v13, %v6402_v14  ;;  %v6560_v49 = vpop.f32.mrf.mxu1 }
 0x176   :  { %v2833_v33 = vmul.f32 %v2819_v50, %v6548_v13  ;;  %v2290_v48 = vrot.slane %v2051_v25, 3  ;;  %v2446_v19 = vrot.slane %v2432_v59, 2  ;;  %v2777_v0 = vmul.f32 %v2763_v51, %v6548_v13 }
 0x177   :  { %v6540_v54 = vpop.f32.mrf.mxu2  ;;  %v2276_v31 = vadd.f32 %v2262_v57, %v2220_v2  ;;  %v2411_v30 = vadd.f32 %v2397_v41, %v2362_v8  ;;  %v2798_v37 = vrot.slane %v2784_v32, 1  ;;  %v2654_v20 = vmul.f32 %v2640_v62, %v6460_v17 }
 0x178   :  { %v2890_v2 = vadd.f32 %v7764_v10, %v2862_v39  ;;  %v7762_v50 = vrot.slane %v6548_v13, 3  ;;  %v2847_v7 = vrot.slane %v2833_v33, 2  ;;  %v3057_v59 = vmul.f32 %v3043_v36, %v6560_v49 }
 0x179   :  { %v6572_v57 = vadd.f32 %v2290_v48, %v2276_v31  ;;  %v2460_v25 = vadd.f32 %v2446_v19, %v2411_v30  ;;  %v2812_v24 = vadd.f32 %v2798_v37, %v2777_v0  ;;  %v6581_v8 = vadd.f32 %v1885_v11, %v6348_v26 }
 0x17a   :  { %v2688_v41 = vrot.slane %v6441_v6, 3  ;;  %v3071_v19 = vrot.slane %v3057_v59, 1  ;;  %v1886_v0 = vperm.slane %v6482_v15, 2  ;;  %v2653_v37 = vmul.f32 %v2639_v28, %v6484_v5 }
 0x17b   :  { %v2467_v32 = vadd.f32 %v2460_v25, %v2290_v48  ;;  %v2861_v30 = vadd.f32 %v2847_v7, %v2812_v24  ;;  %v3036_v26 = vmul.f32 %v3022_v22, %v6560_v49  ;;  %v3092_v11 = vmul.f32 %v6560_v49, %v6409_v18 }
 0x17c   :  { %v2903_v16 = vrot.slane %v2890_v2, 7  ;;  %v2926_v48 = vmul.f32 %v2640_v62, %v6494_v1  ;;  %v6604_v24 = vadd.f32 %v1887_v34, %v6385_v58  ;;  %v2703_v62 = vmul.f32 %v2689_v60, %v6460_v17  ;;  %v6618_v58 = vpop.f32.mrf.mxu0 }
 0x17d   :  { %2481 = vst [vmem:[#allocation1 + $0x12] sm:$0xff] %v2467_v32  ;;  %v2889_v25 = vadd.f32 %v7762_v50, %v2861_v30  ;;  %v3085_v7 = vadd.f32 %v3071_v19, %v3036_v26  ;;  %v2667_v34 = vrot.slane %v2653_v37, 1  ;;  %v3106_v30 = vrot.slane %v3092_v11, 2 }
 0x17e   :  { %v2632_v52 = vmul.f32 %v2618_v45, %v6484_v5  ;;  %v2702_v33 = vmul.f32 %v2688_v41, %v6484_v5  ;;  %v2940_v31 = vrot.slane %v2926_v48, 1  ;;  %v6629_v59 = vadd.f32 %v6439_v35, %v6540_v54  ;;  %v6643_v35 = vpop.f32.mrf.mxu3 }
 0x17f   :  { %v1850_v51 = vpop.f32.mrf.mxu2  ;;  %v6615_v2 = vsel %vm1253_vm0, %v2889_v25, %v2903_v16  ;;  %v3120_v16 = vadd.f32 %v3106_v30, %v3085_v7  ;;  %v7766_v25 = vrot.slane %v6560_v49, 3  ;;  %v3056_v37 = vmul.f32 %v7763_v43, %v6618_v58 }
 0x180   :  { %v2668_v51 = vrot.slane %v2654_v20, 1  ;;  %v2633_v20 = vmul.f32 %v2619_v63, %v6460_v17  ;;  %v2717_v11 = vrot.slane %v2703_v62, 2  ;;  %v2961_v48 = vmul.f32 %v2689_v60, %v6494_v1 }
 0x181   :  { %v2925_v7 = vmul.f32 %v2639_v28, %v6548_v13  ;;  %v7812_v54 = vrot.slane %v6358_v38, 2  ;;  %v3070_v62 = vrot.slane %v3056_v37, 1  ;;  %v3091_v26 = vmul.f32 %v6618_v58, %v6441_v6 }
 0x182   :  { %v2682_v61 = vadd.f32 %v2668_v51, %v2633_v20  ;;  %v2919_v51 = vmul.f32 %v2619_v63, %v6494_v1  ;;  %v2681_v20 = vadd.f32 %v2667_v34, %v2632_v52  ;;  %v6650_v63 = vpop.f32.mrf.mxu1  ;;  %v2716_v28 = vrot.slane %v2702_v33, 2 }
 0x183   :  { %v3035_v30 = vmul.f32 %v7812_v54, %v6618_v58  ;;  %v3148_v52 = vadd.f32 %v7766_v25, %v3120_v16  ;;  %v3105_v32 = vrot.slane %v3091_v26, 2  ;;  %v2975_v43 = vrot.slane %v2961_v48, 2 }
 0x184   :  { %v2731_v19 = vadd.f32 %v2717_v11, %v2682_v61  ;;  %v2954_v50 = vadd.f32 %v2940_v31, %v2919_v51  ;;  %v2939_v54 = vrot.slane %v2925_v7, 1  ;;  %v7813_v37 = vrot.slane %v6430_v44, 7 }
 0x185   :  { %v3084_v34 = vadd.f32 %v3070_v62, %v3035_v30  ;;  %v3329_v61 = vmul.f32 %v3043_v36, %v6650_v63  ;;  %v2730_v31 = vadd.f32 %v2716_v28, %v2681_v20  ;;  %v2960_v11 = vmul.f32 %v2688_v41, %v6548_v13 }
 0x186   :  { %v2500_v10 = vmul.f32 %v7813_v37, %v6643_v35  ;;  %v7765_v33 = vrot.slane %v6618_v58, 3  ;;  %v2989_v39 = vadd.f32 %v2975_v43, %v2954_v50  ;;  %v2918_v26 = vmul.f32 %v2618_v45, %v6548_v13 }
 0x187   :  { %v3119_v51 = vadd.f32 %v3105_v32, %v3084_v34  ;;  %v7814_v16 = vrot.slane %v6407_v29, 5  ;;  %v3343_v7 = vrot.slane %v3329_v61, 1  ;;  %v3161_v30 = vrot.slane %v3148_v52, 7 }
 0x188   :  { %v3322_v41 = vmul.f32 %v3022_v22, %v6650_v63  ;;  %v3364_v43 = vmul.f32 %v6650_v63, %v6409_v18  ;;  %v6680_v45 = vadd.f32 %v1886_v0, %v6476_v40  ;;  %v2953_v50 = vadd.f32 %v2939_v54, %v2918_v26 }
 0x189   :  { %v3212_v48 = vmul.f32 %v7814_v16, %v6560_v49  ;;  %v3147_v36 = vadd.f32 %v7765_v33, %v3119_v51  ;;  %v2514_v32 = vrot.slane %v2500_v10, 1  ;;  %v2974_v62 = vrot.slane %v2960_v11, 2  ;;  %v6697_v11 = vpop.f32.mrf.mxu0 }
 0x18a   :  { %v7815_v28 = vrot.slane %v6409_v18, 4  ;;  %v3357_v22 = vadd.f32 %v3343_v7, %v3322_v41  ;;  %v2493_v61 = vmul.f32 %v6643_v35, %v6364_v42  ;;  %v7816_v40 = vrot.slane %v6512_v27, 6 }
 0x18b   :  { %v6687_v34 = vsel %vm1253_vm0, %v3147_v36, %v3161_v30  ;;  %v3226_v37 = vrot.slane %v3212_v48, 1  ;;  %v7817_v10 = vrot.slane %v6430_v44, 4  ;;  %v7818_v51 = vrot.slane %v6460_v17, 3 }
 0x18c   :  { %v3261_v52 = vmul.f32 %v7815_v28, %v6560_v49  ;;  %v2535_v0 = vmul.f32 %v7816_v40, %v6643_v35  ;;  %v7820_v16 = vrot.slane %v6484_v5, 3  ;;  %v7822_v7 = vrot.slane %v6494_v1, 3 }
 0x18d   :  { %v2655_v54 = vmul.f32 %v7817_v10, %v6643_v35  ;;  %v6701_v26 = vadd.f32 %v2731_v19, %v7818_v51  ;;  %v3378_v36 = vrot.slane %v3364_v43, 2  ;;  %v2988_v41 = vadd.f32 %v2974_v62, %v2953_v50 }
 0x18e   :  { %v6705_v48 = vadd.f32 %v2730_v31, %v7820_v16  ;;  %v6709_v30 = vadd.f32 %v2989_v39, %v7822_v7  ;;  %v7824_v28 = vrot.slane %v6372_v21, 6  ;;  %v2528_v10 = vadd.f32 %v2514_v32, %v2493_v61  ;;  %v6718_v31 = vpop.f32.mrf.mxu3 }
 0x18f   :  { %7819 = vst [vmem:[#allocation4_spill] sm:$0xff] %v6701_v26  ;;  %v7825_v17 = vrot.slane %v6402_v14, 5  ;;  %v3392_v51 = vadd.f32 %v3378_v36, %v3357_v22  ;;  %v7767_v5 = vrot.slane %v6650_v63, 3  ;;  %v7826_v1 = vrot.slane %v6402_v14, 1 }
 0x190   :  { %7821 = vst [vmem:[#allocation5_spill] sm:$0xff] %v6705_v48  ;;  %v3191_v40 = vmul.f32 %v7824_v28, %v6560_v49  ;;  %v3363_v43 = vmul.f32 %v6697_v11, %v6441_v6  ;;  %v3275_v62 = vrot.slane %v3261_v52, 2  ;;  %v2549_v16 = vrot.slane %v2535_v0, 2 }
 0x191   :  { %7823 = vst [vmem:[#allocation6_spill] sm:$0xff] %v6709_v30  ;;  %v3211_v19 = vmul.f32 %v7825_v17, %v6618_v58  ;;  %v3328_v39 = vmul.f32 %v7826_v1, %v6697_v11  ;;  %v2669_v32 = vrot.slane %v2655_v54, 1  ;;  %v7827_v61 = vrot.slane %v6364_v42, 5  ;;  %v6739_v54 = vpop.f32.mrf.mxu1 }
 0x192   :  { %v3240_v50 = vadd.f32 %v3226_v37, %v3191_v40  ;;  %v7828_v22 = vrot.slane %v6512_v27, 3  ;;  %v7829_v28 = vrot.slane %v6358_v38, 2  ;;  %v2563_v60 = vadd.f32 %v2549_v16, %v2528_v10  ;;  %7831 = vst [vmem:[#allocation7_spill] sm:$0xff] %v6739_v54 }
 0x193   :  { %v2634_v7 = vmul.f32 %v7827_v61, %v6643_v35  ;;  %v3342_v1 = vrot.slane %v3328_v39, 1  ;;  %v3225_v33 = vrot.slane %v3211_v19, 1  ;;  %v7830_v52 = vrot.slane %v6407_v29, 6 }
 0x194   :  { %v2704_v36 = vmul.f32 %v7828_v22, %v6643_v35  ;;  %v3321_v17 = vmul.f32 %v7829_v28, %v6697_v11  ;;  %v2786_v0 = vmul.f32 %v6718_v31, %v6430_v44  ;;  %v3420_v40 = vadd.f32 %v7767_v5, %v3392_v51 }
 0x195   :  { %v3484_v37 = vmul.f32 %v7830_v52, %v6650_v63  ;;  %v3377_v22 = vrot.slane %v3363_v43, 2  ;;  %v2577_v39 = vrot.slane %v6643_v35, 3  ;;  %v2683_v10 = vadd.f32 %v2669_v32, %v2634_v7 }
 0x196   :  { %v3356_v61 = vadd.f32 %v3342_v1, %v3321_v17  ;;  %v7832_v19 = vrot.slane %v6358_v38, 6  ;;  %v7833_v28 = vrot.slane %v6441_v6, 4  ;;  %v7834_v30 = vrot.slane %v6548_v13, 3 }
 0x197   :  { %v7836_v17 = vrot.slane %v6407_v29, 2  ;;  %v3289_v32 = vadd.f32 %v3275_v62, %v3240_v50  ;;  %v6759_v7 = vadd.f32 %v2577_v39, %v2563_v60  ;;  %v2718_v1 = vrot.slane %v2704_v36, 2 }
 0x198   :  { %v3190_v16 = vmul.f32 %v7832_v19, %v6618_v58  ;;  %v3260_v52 = vmul.f32 %v7833_v28, %v6618_v58  ;;  %v6754_v51 = vadd.f32 %v2988_v41, %v7834_v30  ;;  %v3391_v43 = vadd.f32 %v3377_v22, %v3356_v61 }
 0x199   :  { %v3629_v35 = vmul.f32 %v7836_v17, %v6739_v54  ;;  %v3433_v5 = vrot.slane %v3420_v40, 7  ;;  %v3498_v20 = vrot.slane %v3484_v37, 1  ;;  %v2800_v26 = vrot.slane %v2786_v0, 1  ;;  %v6778_v40 = vpop.f32.mrf.mxu2 }
 0x19a   :  { %7835 = vst [vmem:[#allocation8_spill] sm:$0xff] %v6754_v51  ;;  %v3239_v19 = vadd.f32 %v3225_v33, %v3190_v16  ;;  %v7837_v28 = vrot.slane %v6697_v11, 3  ;;  %v2732_v48 = vadd.f32 %v2718_v1, %v2683_v10  ;;  %v3274_v13 = vrot.slane %v3260_v52, 2 }
 0x19b   :  { %v7838_v30 = vrot.slane %v6372_v21, 7  ;;  %v7839_v61 = vrot.slane %v6409_v18, 5  ;;  %v7840_v60 = vrot.slane %v6364_v42, 1  ;;  %v7841_v62 = vrot.slane %v6512_v27, 7 }
 0x19c   :  { %v3419_v25 = vadd.f32 %v7837_v28, %v3391_v43  ;;  %v3643_v0 = vrot.slane %v3629_v35, 1  ;;  %v7843_v22 = vrot.slane %v6560_v49, 3  ;;  %v7845_v52 = vperm.slane %v6482_v15, 4 }
 0x19d   :  { %v3463_v41 = vmul.f32 %v7838_v30, %v6650_v63  ;;  %v3533_v50 = vmul.f32 %v7839_v61, %v6650_v63  ;;  %v2779_v33 = vmul.f32 %v7840_v60, %v6718_v31  ;;  %v2835_v36 = vmul.f32 %v7841_v62, %v6718_v31 }
 0x19e   :  { %v6776_v37 = vsel %vm1253_vm0, %v3419_v25, %v3433_v5  ;;  %v6782_v10 = vadd.f32 %v3289_v32, %v7843_v22  ;;  %v6788_v43 = vadd.f32 %v7845_v52, %v6629_v59  ;;  %v3288_v17 = vadd.f32 %v3274_v13, %v3239_v19 }
 0x19f   :  { %7842 = vst [vmem:[#allocation9_spill] sm:$0xff] %v6776_v37  ;;  %v3512_v1 = vadd.f32 %v3498_v20, %v3463_v41  ;;  %v2814_v28 = vadd.f32 %v2800_v26, %v2779_v33  ;;  %v7846_v25 = vrot.slane %v6372_v21, 3  ;;  %v7847_v35 = vrot.slane %v6409_v18, 1 }
 0x1a0   :  { %7844 = vst [vmem:[#allocation10_spill] sm:$0xff] %v6782_v10  ;;  %v6796_v32 = vadd.f32 %v2732_v48, %v2577_v39  ;;  %v3547_v30 = vrot.slane %v3533_v50, 2  ;;  %v7849_v61 = vrot.slane %v6430_v44, 4  ;;  %v7850_v59 = vrot.slane %v6497_v46, 7 }
 0x1a1   :  { %v3608_v5 = vmul.f32 %v7846_v25, %v6739_v54  ;;  %v3678_v49 = vmul.f32 %v7847_v35, %v6739_v54  ;;  %v2849_v26 = vrot.slane %v2835_v36, 2  ;;  %v7851_v41 = vrot.slane %v6581_v8, 6  ;;  %v6828_v35 = vpop.f32.mrf.mxu3 }
 0x1a2   :  { %7848 = vst [vmem:[#allocation11_spill] sm:$0xff] %v6796_v32  ;;  %v2927_v15 = vmul.f32 %v7849_v61, %v6718_v31  ;;  %v2193_v20 = vmul.f32 %v7850_v59, %v6778_v40  ;;  %v7852_v48 = vrot.slane %v6618_v58, 3  ;;  %v7854_v50 = vrot.slane %v6512_v27, 3 }
 0x1a3   :  { %v3657_v13 = vadd.f32 %v3643_v0, %v3608_v5  ;;  %v2249_v60 = vmul.f32 %v7851_v41, %v6778_v40  ;;  %v2165_v62 = vmul.f32 %v6778_v40, %v6393_v3  ;;  %v6819_v22 = vadd.f32 %v3547_v30, %v3512_v1 }
 0x1a4   :  { %v6810_v39 = vadd.f32 %v3288_v17, %v7852_v48  ;;  %v6815_v33 = vmul.f32 %v7854_v50, %v6718_v31  ;;  %v2207_v36 = vrot.slane %v2193_v20, 1  ;;  %v6821_v0 = vadd.f32 %v2849_v26, %v2814_v28  ;;  %v6826_v17 = vpop.f32.mrf.mxu0 }
 0x1a5   :  { %v7855_v52 = vrot.slane %v6364_v42, 5  ;;  %v3692_v58 = vrot.slane %v3678_v49, 2  ;;  %7856 = vst [vmem:[#allocation13_spill] sm:$0xff] %v6826_v17  ;;  %v2941_v5 = vrot.slane %v2927_v15, 1  ;;  %v2263_v59 = vrot.slane %v2249_v60, 2 }
 0x1a6   :  { %7853 = vst [vmem:[#allocation12_spill] sm:$0xff] %v6810_v39  ;;  %v2221_v61 = vadd.f32 %v2207_v36, %v2165_v62  ;;  %v2291_v41 = vrot.slane %v6778_v40, 3  ;;  %v7768_v1 = vrot.slane %v6739_v54, 3  ;;  %v7857_v28 = vrot.slane %v6497_v46, 3 }
 0x1a7   :  { %v2920_v25 = vmul.f32 %v7855_v52, %v6718_v31  ;;  %v3706_v48 = vadd.f32 %v3692_v58, %v3657_v13  ;;  %v7858_v20 = vrot.slane %v6581_v8, 2  ;;  %v7859_v50 = vrot.slane %v6402_v14, 2 }
 0x1a8   :  { %v2384_v30 = vmul.f32 %v7857_v28, %v6778_v40  ;;  %v2277_v15 = vadd.f32 %v2263_v59, %v2221_v61  ;;  %v7860_v13 = vrot.slane %v6441_v6, 1  ;;  %v7861_v36 = vrot.slane %v6402_v14, 6 }
 0x1a9   :  { %v2433_v49 = vmul.f32 %v7858_v20, %v6778_v40  ;;  %v3628_v60 = vmul.f32 %v7859_v50, %v6826_v17  ;;  %v7862_v58 = vrot.slane %v6430_v44, 1  ;;  %v7863_v20 = vrot.slane %v6393_v3, 4 }
 0x1aa   :  { %v3677_v62 = vmul.f32 %v7860_v13, %v6826_v17  ;;  %v3483_v52 = vmul.f32 %v7861_v36, %v6697_v11  ;;  %v2398_v59 = vrot.slane %v2384_v30, 1  ;;  %v2955_v16 = vadd.f32 %v2941_v5, %v2920_v25 }
 0x1ab   :  { %v3058_v28 = vmul.f32 %v7862_v58, %v6828_v35  ;;  %v2363_v61 = vmul.f32 %v7863_v20, %v6778_v40  ;;  %v2305_v26 = vadd.f32 %v2291_v41, %v2277_v15  ;;  %v7864_v50 = vrot.slane %v6358_v38, 3  ;;  %v6862_v15 = vpop.f32.mrf.mxu1 }
 0x1ac   :  { %v3642_v13 = vrot.slane %v3628_v60, 1  ;;  %v3734_v10 = vadd.f32 %v7768_v1, %v3706_v48  ;;  %v2447_v39 = vrot.slane %v2433_v49, 2  ;;  %v3691_v37 = vrot.slane %v3677_v62, 2 }
 0x1ad   :  { %v3607_v19 = vmul.f32 %v7864_v50, %v6826_v17  ;;  %v2412_v36 = vadd.f32 %v2398_v59, %v2363_v61  ;;  %v2318_v51 = vrot.slane %v2305_v26, 5  ;;  %v3497_v32 = vrot.slane %v3483_v52, 1 }
 0x1ae   :  { %v3072_v40 = vrot.slane %v3058_v28, 1  ;;  %v7865_v25 = vrot.slane %v6430_v44, 5  ;;  %v7866_v60 = vrot.slane %v6364_v42, 2  ;;  %v7867_v20 = vrot.slane %v6572_v57, 6 }
 0x1af   :  { %v3656_v58 = vadd.f32 %v3642_v13, %v3607_v19  ;;  %v2461_v30 = vadd.f32 %v2447_v39, %v2412_v36  ;;  %v7769_v19 = vrot.slane %v6826_v17, 3  ;;  %v3747_v62 = vrot.slane %v3734_v10, 7 }
 0x1b0   :  { %v3213_v5 = vmul.f32 %v7865_v25, %v6828_v35  ;;  %v3037_v48 = vmul.f32 %v7866_v60, %v6828_v35  ;;  %v2324_v49 = vsel %vm2323_vm3, %v7867_v20, %v2318_v51  ;;  %v3093_v52 = vmul.f32 %v6828_v35, %v6512_v27 }
 0x1b1   :  { %v3705_v26 = vadd.f32 %v3691_v37, %v3656_v58  ;;  %v6875_v39 = vsel %vm2325_vm4, %v6500_v23, %v2324_v49  ;;  %v2468_v28 = vadd.f32 %v2461_v30, %v2291_v41  ;;  %v7868_v57 = vrot.slane %v6528_v56, 7 }
 0x1b2   :  { %v7869_v51 = vrot.slane %v6528_v56, 3  ;;  %v2421_v10 = vrot.slane %v6604_v24, 2  ;;  %v7870_v50 = vrot.slane %v6358_v38, 7  ;;  %v7871_v23 = vrot.slane %v6441_v6, 5 }
 0x1b3   :  { %v3733_v61 = vadd.f32 %v7769_v19, %v3705_v26  ;;  %v2195_v59 = vmul.f32 %v7868_v57, %v6862_v15  ;;  %v3086_v36 = vadd.f32 %v3072_v40, %v3037_v48  ;;  %v3227_v58 = vrot.slane %v3213_v5, 1  ;;  %2482 = vst [vmem:[#allocation1 + $0x1b] sm:$0xff] %v2468_v28  ;;  %v6905_v48 = vpop.f32.mrf.mxu3 }
 0x1b4   :  { %v2386_v37 = vmul.f32 %v7869_v51, %v6862_v15  ;;  %v3462_v13 = vmul.f32 %v7870_v50, %v6697_v11  ;;  %v3532_v41 = vmul.f32 %v7871_v23, %v6697_v11  ;;  %v7873_v30 = vrot.slane %v6396_v4, 4 }
 0x1b5   :  { %v6893_v25 = vsel %vm1253_vm0, %v3733_v61, %v3747_v62  ;;  %v2435_v49 = vmul.f32 %v2421_v10, %v6862_v15  ;;  %v3107_v57 = vrot.slane %v3093_v52, 2  ;;  %v7874_v51 = vrot.slane %v6364_v42, 6 }
 0x1b6   :  { %7872 = vst [vmem:[#allocation14_spill] sm:$0xff] %v6893_v25  ;;  %v2365_v60 = vmul.f32 %v7873_v30, %v6862_v15  ;;  %v2400_v20 = vrot.slane %v2386_v37, 1  ;;  %v3511_v26 = vadd.f32 %v3497_v32, %v3462_v13  ;;  %v7875_v40 = vrot.slane %v6512_v27, 4 }
 0x1b7   :  { %v3192_v50 = vmul.f32 %v7874_v51, %v6828_v35  ;;  %v2209_v62 = vrot.slane %v2195_v59, 1  ;;  %v2293_v28 = vrot.slane %v6862_v15, 3  ;;  %v2449_v23 = vrot.slane %v2435_v49, 2 }
 0x1b8   :  { %v3262_v5 = vmul.f32 %v7875_v40, %v6828_v35  ;;  %v2414_v61 = vadd.f32 %v2400_v20, %v2365_v60  ;;  %v7876_v37 = vrot.slane %v6718_v31, 3  ;;  %v3546_v52 = vrot.slane %v3532_v41, 2 }
 0x1b9   :  { %v3121_v10 = vadd.f32 %v3107_v57, %v3086_v36  ;;  %v3241_v13 = vadd.f32 %v3227_v58, %v3192_v50  ;;  %v2167_v30 = vmul.f32 %v6862_v15, %v6396_v4  ;;  %v7877_v51 = vrot.slane %v6604_v24, 6  ;;  %v6929_v50 = vpop.f32.mrf.mxu2 }
 0x1ba   :  { %v6911_v32 = vadd.f32 %v7876_v37, %v6821_v0  ;;  %v2463_v59 = vadd.f32 %v2449_v23, %v2414_v61  ;;  %v7878_v60 = vrot.slane %v6430_v44, 1  ;;  %v7879_v49 = vrot.slane %v6650_v63, 3 }
 0x1bb   :  { %v2251_v40 = vmul.f32 %v7877_v51, %v6862_v15  ;;  %v7881_v41 = vrot.slane %v6815_v33, 2  ;;  %v3135_v58 = vrot.slane %v6828_v35, 3  ;;  %v3276_v57 = vrot.slane %v3262_v5, 2 }
 0x1bc   :  { %v3330_v20 = vmul.f32 %v7878_v60, %v6905_v48  ;;  %v6924_v0 = vadd.f32 %v6819_v22, %v7879_v49  ;;  %v3560_v37 = vadd.f32 %v3546_v52, %v3511_v26  ;;  %v7882_v15 = vrot.slane %v6407_v29, 6 }
 0x1bd   :  { %v2990_v36 = vadd.f32 %v7881_v41, %v2955_v16  ;;  %v2223_v23 = vadd.f32 %v2209_v62, %v2167_v30  ;;  %v2470_v51 = vadd.f32 %v2463_v59, %v2293_v28  ;;  %v6937_v22 = vadd.f32 %v3135_v58, %v3121_v10 }
 0x1be   :  { %7880 = vst [vmem:[#allocation15_spill] sm:$0xff] %v6924_v0  ;;  %v6934_v61 = vmul.f32 %v7882_v15, %v6739_v54  ;;  %v3290_v60 = vadd.f32 %v3276_v57, %v3241_v13  ;;  %v7884_v16 = vrot.slane %v6402_v14, 6  ;;  %v7885_v35 = vrot.slane %v6441_v6, 5  ;;  %v6976_v57 = vpop.f32.mrf.mxu0 }
 0x1bf   :  { %v2265_v29 = vrot.slane %v2251_v40, 2  ;;  %2484 = vst [vmem:[#allocation1 + $0x2d] sm:$0xff] %v2470_v51  ;;  %v3344_v5 = vrot.slane %v3330_v20, 1  ;;  %v7887_v62 = vrot.slane %v6497_v46, 7  ;;  %v7888_v10 = vrot.slane %v6718_v31, 3  ;;  %v7012_v31 = vpop.f32.mrf.mxu1 }
 0x1c0   :  { %7883 = vst [vmem:[#allocation16_spill] sm:$0xff] %v6934_v61  ;;  %v6942_v33 = vmul.f32 %v7884_v16, %v6826_v17  ;;  %v6947_v26 = vmul.f32 %v7885_v35, %v6826_v17  ;;  %v7889_v14 = vrot.slane %v6372_v21, 7  ;;  %v7891_v6 = vrot.slane %v6409_v18, 5 }
 0x1c1   :  { %v2501_v52 = vmul.f32 %v7887_v62, %v6929_v50  ;;  %v6954_v13 = vadd.f32 %v2990_v36, %v7888_v10  ;;  %v3365_v40 = vmul.f32 %v6905_v48, %v6512_v27  ;;  %v7893_v20 = vrot.slane %v6697_v11, 3 }
 0x1c2   :  { %7886 = vst [vmem:[#allocation17_spill] sm:$0xff] %v6947_v26  ;;  %v6959_v30 = vmul.f32 %v7889_v14, %v6739_v54  ;;  %v6964_v59 = vmul.f32 %v7891_v6, %v6739_v54  ;;  %v2279_v41 = vadd.f32 %v2265_v29, %v2223_v23  ;;  %v7895_v21 = vrot.slane %v6364_v42, 2 }
 0x1c3   :  { %v6970_v49 = vadd.f32 %v3560_v37, %v7893_v20  ;;  %v6979_v15 = vadd.f32 %v3290_v60, %v3135_v58  ;;  %v7897_v51 = vrot.slane %v6358_v38, 7  ;;  %v7770_v11 = vrot.slane %v6463_v12, 7 }
 0x1c4   :  { %7890 = vst [vmem:[#allocation18_spill] sm:$0xff] %v6959_v30  ;;  %v3323_v36 = vmul.f32 %v7895_v21, %v6905_v48  ;;  %v2515_v29 = vrot.slane %v2501_v52, 1  ;;  %v3379_v62 = vrot.slane %v3365_v40, 2  ;;  %v2371_v58 = vrot.slane %v6463_v12, 3 }
 0x1c5   :  { %7892 = vst [vmem:[#allocation19_spill] sm:$0xff] %v6964_v59  ;;  %v6984_v16 = vmul.f32 %v7897_v51, %v6826_v17  ;;  %v2194_v10 = vmul.f32 %v7770_v11, %v6976_v57  ;;  %v2420_v60 = vrot.slane %v6680_v45, 2  ;;  %v6994_v38 = vadd.f32 %v2293_v28, %v2279_v41 }
 0x1c6   :  { %7894 = vst [vmem:[#allocation20_spill] sm:$0xff] %v6970_v49  ;;  %v3358_v35 = vadd.f32 %v3344_v5, %v3323_v36  ;;  %v7774_v14 = vrot.slane %v6905_v48, 3  ;;  %v2494_v6 = vmul.f32 %v6929_v50, %v6393_v3  ;;  %v7898_v5 = vrot.slane %v6581_v8, 6 }
 0x1c7   :  { %7896 = vst [vmem:[#allocation21_spill] sm:$0xff] %v6979_v15  ;;  %v7899_v40 = vrot.slane %v6364_v42, 7  ;;  %v2350_v21 = vrot.slane %v6436_v55, 4  ;;  %v2385_v36 = vmul.f32 %v2371_v58, %v6976_v57  ;;  %v2434_v28 = vmul.f32 %v2420_v60, %v6976_v57 }
 0x1c8   :  { %v2536_v52 = vmul.f32 %v7898_v5, %v6929_v50  ;;  %v3393_v41 = vadd.f32 %v3379_v62, %v3358_v35  ;;  %v7900_v51 = vrot.slane %v6430_v44, 6  ;;  %v7773_v19 = vrot.slane %v6512_v27, 5 }
 0x1c9   :  { %v3464_v20 = vmul.f32 %v7899_v40, %v6905_v48  ;;  %v2529_v23 = vadd.f32 %v2515_v29, %v2494_v6  ;;  %v2208_v5 = vrot.slane %v2194_v10, 1  ;;  %v7772_v37 = vrot.slane %v6680_v45, 6 }
 0x1ca   :  { %v3485_v1 = vmul.f32 %v7900_v51, %v6905_v48  ;;  %v2364_v40 = vmul.f32 %v2350_v21, %v6976_v57  ;;  %v2399_v18 = vrot.slane %v2385_v36, 1  ;;  %v2550_v63 = vrot.slane %v2536_v52, 2 }
 0x1cb   :  { %v7901_v58 = vrot.slane %v6497_v46, 4  ;;  %v2166_v62 = vmul.f32 %v6976_v57, %v6436_v55  ;;  %v2292_v60 = vrot.slane %v6976_v57, 3  ;;  %v2250_v29 = vmul.f32 %v7772_v37, %v6976_v57 }
 0x1cc   :  { %v2413_v10 = vadd.f32 %v2399_v18, %v2364_v40  ;;  %v2448_v6 = vrot.slane %v2434_v28, 2  ;;  %v7902_v21 = vrot.slane %v6528_v56, 7  ;;  %v7030_v52 = vadd.f32 %v7774_v14, %v3393_v41 }
 0x1cd   :  { %v2656_v35 = vmul.f32 %v7901_v58, %v6929_v50  ;;  %v3499_v51 = vrot.slane %v3485_v1, 1  ;;  %v3534_v58 = vmul.f32 %v7773_v19, %v6905_v48  ;;  %v7776_v11 = vrot.slane %v6581_v8, 3 }
 0x1ce   :  { %v2503_v36 = vmul.f32 %v7902_v21, %v7012_v31  ;;  %v2564_v54 = vadd.f32 %v2550_v63, %v2529_v23  ;;  %v2578_v57 = vrot.slane %v6929_v50, 3  ;;  %v2222_v18 = vadd.f32 %v2208_v5, %v2166_v62  ;;  %v7045_v23 = vpop.f32.mrf.mxu2 }
 0x1cf   :  { %v2462_v28 = vadd.f32 %v2448_v6, %v2413_v10  ;;  %v2670_v37 = vrot.slane %v2656_v35, 1  ;;  %v2705_v41 = vmul.f32 %v7776_v11, %v6929_v50  ;;  %v7777_v1 = vrot.slane %v6528_v56, 4 }
 0x1d0   :  { %v7903_v21 = vrot.slane %v6393_v3, 5  ;;  %v2264_v14 = vrot.slane %v2250_v29, 2  ;;  %v2517_v63 = vrot.slane %v2503_v36, 1  ;;  %v3513_v62 = vadd.f32 %v3499_v51, %v3464_v20 }
 0x1d1   :  { %v2469_v17 = vadd.f32 %v2462_v28, %v2292_v60  ;;  %v3548_v10 = vrot.slane %v3534_v58, 2  ;;  %v2658_v35 = vmul.f32 %v7777_v1, %v7012_v31  ;;  %v2592_v6 = vadd.f32 %v2578_v57, %v2564_v54 }
 0x1d2   :  { %v2635_v19 = vmul.f32 %v7903_v21, %v6929_v50  ;;  %v2278_v11 = vadd.f32 %v2264_v14, %v2222_v18  ;;  %v2496_v40 = vmul.f32 %v7012_v31, %v6396_v4  ;;  %v7904_v50 = vrot.slane %v6604_v24, 6 }
 0x1d3   :  { %2483 = vst [vmem:[#allocation1 + $0x24] sm:$0xff] %v2469_v17  ;;  %v2719_v28 = vrot.slane %v2705_v41, 2  ;;  %v2766_v21 = vrot.slane %v6393_v3, 1  ;;  %v2787_v20 = vmul.f32 %v7045_v23, %v6497_v46  ;;  %v7780_v58 = vrot.slane %v6396_v4, 5  ;;  %v7061_v17 = vpop.f32.mrf.mxu3  ;;  %v7066_v41 = vpop.f32.mrf.mxu0 }
 0x1d4   :  { %v2538_v29 = vmul.f32 %v7904_v50, %v7012_v31  ;;  %v2684_v36 = vadd.f32 %v2670_v37, %v2635_v19  ;;  %v2531_v51 = vadd.f32 %v2517_v63, %v2496_v40  ;;  %v7781_v54 = vrot.slane %v6604_v24, 3 }
 0x1d5   :  { %v2822_v14 = vrot.slane %v6581_v8, 7  ;;  %v2672_v18 = vrot.slane %v2658_v35, 1  ;;  %v3616_v5 = vrot.slane %v6430_v44, 2  ;;  %v2780_v19 = vmul.f32 %v2766_v21, %v7045_v23 }
 0x1d6   :  { %v2801_v37 = vrot.slane %v2787_v20, 1  ;;  %v2605_v50 = vrot.slane %v2592_v6, 5  ;;  %v2306_v1 = vadd.f32 %v2292_v60, %v2278_v11  ;;  %v2552_v26 = vrot.slane %v2538_v29, 2 }
 0x1d7   :  { %v2836_v40 = vmul.f32 %v2822_v14, %v7045_v23  ;;  %v2637_v63 = vmul.f32 %v7780_v58, %v7012_v31  ;;  %v2707_v35 = vmul.f32 %v7781_v54, %v7012_v31  ;;  %v3630_v59 = vmul.f32 %v3616_v5, %v7061_v17 }
 0x1d8   :  { %v2815_v61 = vadd.f32 %v2801_v37, %v2780_v19  ;;  %v2733_v21 = vadd.f32 %v2719_v28, %v2684_v36  ;;  %v7786_v30 = vrot.slane %v7045_v23, 3  ;;  %v7905_v11 = vrot.slane %v6463_v12, 7 }
 0x1d9   :  { %v2850_v20 = vrot.slane %v2836_v40, 2  ;;  %v7080_v6 = vadd.f32 %v3548_v10, %v3513_v62  ;;  %v2566_v29 = vadd.f32 %v2552_v26, %v2531_v51  ;;  %v2580_v14 = vrot.slane %v7012_v31, 3 }
 0x1da   :  { %v2502_v60 = vmul.f32 %v7905_v11, %v7066_v41  ;;  %v2686_v58 = vadd.f32 %v2672_v18, %v2637_v63  ;;  %v3595_v54 = vrot.slane %v6364_v42, 3  ;;  %v7906_v5 = vrot.slane %v6497_v46, 4 }
 0x1db   :  { %v2864_v0 = vadd.f32 %v2850_v20, %v2815_v61  ;;  %v2319_v28 = vrot.slane %v2306_v1, 4  ;;  %v2721_v19 = vrot.slane %v2707_v35, 2  ;;  %v3644_v37 = vrot.slane %v3630_v59, 1 }
 0x1dc   :  { %v2928_v36 = vmul.f32 %v7906_v5, %v7045_v23  ;;  %v3665_v40 = vrot.slane %v6512_v27, 1  ;;  %v7907_v62 = vrot.slane %v6759_v7, 6  ;;  %v7091_v10 = vadd.f32 %v2733_v21, %v2578_v57 }
 0x1dd   :  { %v2892_v31 = vadd.f32 %v7786_v30, %v2864_v0  ;;  %v2516_v51 = vrot.slane %v2502_v60, 1  ;;  %v7095_v61 = vadd.f32 %v2580_v14, %v2566_v29  ;;  %v2735_v18 = vadd.f32 %v2721_v19, %v2686_v58  ;;  %v7116_v60 = vpop.f32.mrf.mxu1 }
 0x1de   :  { %v2610_v26 = vsel %vm2323_vm3, %v7907_v62, %v2605_v50  ;;  %v3609_v63 = vmul.f32 %v3595_v54, %v7061_v17  ;;  %v3679_v1 = vmul.f32 %v3665_v40, %v7061_v17  ;;  %v2942_v35 = vrot.slane %v2928_v36, 1 }
 0x1df   :  { %v2905_v59 = vrot.slane %v2892_v31, 5  ;;  %v2495_v7 = vmul.f32 %v7066_v41, %v6436_v55  ;;  %v7908_v57 = vrot.slane %v6680_v45, 6  ;;  %v7106_v0 = vsel %vm2325_vm4, %v6545_v53, %v2610_v26 }
 0x1e0   :  { %v7909_v21 = vrot.slane %v6994_v38, 3  ;;  %v3658_v54 = vadd.f32 %v3644_v37, %v3609_v63  ;;  %v7910_v20 = vrot.slane %v6581_v8, 3  ;;  %v7911_v5 = vrot.slane %v6911_v32, 6 }
 0x1e1   :  { %v2537_v50 = vmul.f32 %v7908_v57, %v7066_v41  ;;  %v7912_v53 = vrot.slane %v6393_v3, 5  ;;  %v2530_v19 = vadd.f32 %v2516_v51, %v2495_v7  ;;  %v7126_v37 = vadd.f32 %v2735_v18, %v2580_v14 }
 0x1e2   :  { %v7111_v58 = vsel %vm2327_vm5, %v2319_v28, %v7909_v21  ;;  %v2963_v11 = vmul.f32 %v7910_v20, %v7045_v23  ;;  %v2910_v36 = vsel %vm2323_vm3, %v7911_v5, %v2905_v59  ;;  %v3693_v40 = vrot.slane %v3679_v1, 2  ;;  %v7135_v59 = vpop.f32.mrf.mxu3  ;;  %v7176_v28 = vpop.f32.mrf.mxu2 }
 0x1e3   :  { %v2921_v38 = vmul.f32 %v7912_v53, %v7045_v23  ;;  %v7130_v62 = vsel %vm2325_vm4, %v6615_v2, %v2910_v36  ;;  %v2551_v31 = vrot.slane %v2537_v50, 2  ;;  %v7787_v32 = vrot.slane %v6463_v12, 4  ;;  %7913 = vst [vmem:[#allocation22_spill] sm:$0xff] %v7176_v28 }
 0x1e4   :  { %v2789_v63 = vmul.f32 %v7116_v60, %v6528_v56  ;;  %v7137_v57 = vadd.f32 %v3693_v40, %v3658_v54  ;;  %v2977_v51 = vrot.slane %v2963_v11, 2  ;;  %v7785_v14 = vrot.slane %v6509_v47, 7 }
 0x1e5   :  { %v2956_v26 = vadd.f32 %v2942_v35, %v2921_v38  ;;  %v7783_v18 = vrot.slane %v6788_v43, 6  ;;  %v2565_v1 = vadd.f32 %v2551_v31, %v2530_v19  ;;  %v7782_v2 = vrot.slane %v6436_v55, 5 }
 0x1e6   :  { %v2657_v35 = vmul.f32 %v7787_v32, %v7066_v41  ;;  %v7784_v7 = vrot.slane %v6680_v45, 3  ;;  %v7788_v50 = vrot.slane %v7066_v41, 3  ;;  %v2768_v21 = vrot.slane %v6396_v4, 1 }
 0x1e7   :  { %v2196_v54 = vmul.f32 %v7785_v14, %v7135_v59  ;;  %v2252_v20 = vmul.f32 %v7783_v18, %v7135_v59  ;;  %v7154_v11 = vadd.f32 %v2977_v51, %v2956_v26  ;;  %v2636_v5 = vmul.f32 %v7782_v2, %v7066_v41 }
 0x1e8   :  { %v7162_v36 = vmul.f32 %v7784_v7, %v7066_v41  ;;  %v2803_v53 = vrot.slane %v2789_v63, 1  ;;  %v2782_v38 = vmul.f32 %v2768_v21, %v7116_v60  ;;  %v2824_v19 = vrot.slane %v6604_v24, 7 }
 0x1e9   :  { %v2168_v40 = vmul.f32 %v7135_v59, %v6453_v9  ;;  %v2210_v31 = vrot.slane %v2196_v54, 1  ;;  %v7170_v26 = vadd.f32 %v7788_v50, %v2565_v1  ;;  %v2671_v51 = vrot.slane %v2657_v35, 1 }
 0x1ea   :  { %v2373_v2 = vrot.slane %v6509_v47, 3  ;;  %v2422_v18 = vrot.slane %v6788_v43, 2  ;;  %v2838_v7 = vmul.f32 %v2824_v19, %v7116_v60  ;;  %v2266_v14 = vrot.slane %v2252_v20, 2 }
 0x1eb   :  { %v2224_v63 = vadd.f32 %v2210_v31, %v2168_v40  ;;  %v2352_v21 = vrot.slane %v6453_v9, 4  ;;  %v2817_v30 = vadd.f32 %v2803_v53, %v2782_v38  ;;  %v7790_v1 = vrot.slane %v6497_v46, 1  ;;  %v7192_v31 = vpop.f32.mrf.mxu0 }
 0x1ec   :  { %v2387_v54 = vmul.f32 %v2373_v2, %v7135_v59  ;;  %v2436_v32 = vmul.f32 %v2422_v18, %v7135_v59  ;;  %v2294_v50 = vrot.slane %v7135_v59, 3  ;;  %v2334_v29 = vlaneseq }
 0x1ed   :  { %v2280_v35 = vadd.f32 %v2266_v14, %v2224_v63  ;;  %v2366_v27 = vmul.f32 %v2352_v21, %v7135_v59  ;;  %v7791_v20 = vrot.slane %v6393_v3, 2  ;;  %v3059_v40 = vmul.f32 %v7790_v1, %v7176_v28 }
 0x1ee   :  { %v2401_v19 = vrot.slane %v2387_v54, 1  ;;  %v3094_v2 = vmul.f32 %v7176_v28, %v6581_v8  ;;  %v2852_v53 = vrot.slane %v2838_v7, 2  ;;  %v7914_v18 = vrot.slane %v6528_v56, 4 }
 0x1ef   :  { %v2308_v38 = vadd.f32 %v2294_v50, %v2280_v35  ;;  %v2450_v63 = vrot.slane %v2436_v32, 2  ;;  %v3038_v21 = vmul.f32 %v7791_v20, %v7176_v28  ;;  %v3073_v54 = vrot.slane %v3059_v40, 1 }
 0x1f0   :  { %v2930_v14 = vmul.f32 %v7914_v18, %v7116_v60  ;;  %v2415_v59 = vadd.f32 %v2401_v19, %v2366_v27  ;;  %vm7197_vm8 = vcmp.lt.s32.totalorder %v2334_v29, 896  ;;  %v7793_v7 = vrot.slane %v7176_v28, 3 }
 0x1f1   :  { %v2321_v1 = vrot.slane %v2308_v38, 2  ;;  %v3087_v35 = vadd.f32 %v3073_v54, %v3038_v21  ;;  %v3108_v15 = vrot.slane %v3094_v2, 2  ;;  %v2788_v27 = vmul.f32 %v7192_v31, %v6463_v12 }
 0x1f2   :  { %v2464_v18 = vadd.f32 %v2450_v63, %v2415_v59  ;;  %v2685_v32 = vadd.f32 %v2671_v51, %v2636_v5  ;;  %v7799_v19 = vrot.slane %v7116_v60, 3  ;;  %v2944_v25 = vrot.slane %v2930_v14, 1 }
 0x1f3   :  { %v2330_v40 = vsel %vm2329_vm6, %v7111_v58, %v2321_v1  ;;  %v2866_v38 = vadd.f32 %v2852_v53, %v2817_v30  ;;  %v3122_v42 = vadd.f32 %v3108_v15, %v3087_v35  ;;  %v2606_v59 = vrot.slane %v7170_v26, 4 }
 0x1f4   :  { %v2332_v29 = vsel %vm2331_vm7, %v6875_v39, %v2330_v40  ;;  %v2471_v20 = vadd.f32 %v2464_v18, %v2294_v50  ;;  %v2720_v2 = vrot.slane %v7162_v36, 2  ;;  %v7917_v63 = vrot.slane %v6396_v4, 5 }
 0x1f5   :  { %v7918_v51 = vrot.slane %v6604_v24, 3  ;;  %2338 = vst.msk [vmem:[%s7757_s5] ss:$4 sm:$0x7f] %vm7197_vm8, %v2332_v29  ;;  %v3150_v39 = vadd.f32 %v7793_v7, %v3122_v42  ;;  %v2767_v30 = vrot.slane %v6436_v55, 1  ;;  %v2802_v15 = vrot.slane %v2788_v27, 1 }
 0x1f6   :  { %v2923_v5 = vmul.f32 %v7917_v63, %v7116_v60  ;;  %2485 = vst [vmem:[#allocation1 + $0x36] sm:$0xff] %v2471_v20  ;;  %v2823_v58 = vrot.slane %v6680_v45, 7  ;;  %v2734_v50 = vadd.f32 %v2720_v2, %v2685_v32  ;;  %v3200_v26 = vrot.slane %v6497_v46, 5 }
 0x1f7   :  { %v2965_v14 = vmul.f32 %v7918_v51, %v7116_v60  ;;  %v3249_v1 = vrot.slane %v6581_v8, 4  ;;  %v7230_v53 = vadd.f32 %v7799_v19, %v2866_v38  ;;  %v3163_v21 = vrot.slane %v3150_v39, 5 }
 0x1f8   :  { %v2958_v36 = vadd.f32 %v2944_v25, %v2923_v5  ;;  %v2781_v20 = vmul.f32 %v2767_v30, %v7192_v31  ;;  %v2837_v42 = vmul.f32 %v2823_v58, %v7192_v31  ;;  %v7919_v54 = vrot.slane %v7061_v17, 3 }
 0x1f9   :  { %v2979_v35 = vrot.slane %v2965_v14, 2  ;;  %v7240_v25 = vmul.f32 %v3200_v26, %v7176_v28  ;;  %v7243_v27 = vmul.f32 %v3249_v1, %v7176_v28  ;;  %v7920_v32 = vrot.slane %v6937_v22, 6 }
 0x1fa   :  { %v7237_v18 = vadd.f32 %v7919_v54, %v7137_v57  ;;  %v3179_v38 = vrot.slane %v6393_v3, 6  ;;  %v2816_v29 = vadd.f32 %v2802_v15, %v2781_v20  ;;  %v7921_v2 = vrot.slane %v6463_v12, 4  ;;  %v7252_v57 = vpop.f32.mrf.mxu3 }
 0x1fb   :  { %v3168_v40 = vsel %vm2323_vm3, %v7920_v32, %v3163_v21  ;;  %v7922_v5 = vrot.slane %v7045_v23, 3  ;;  %v7923_v14 = vrot.slane %v7095_v61, 3  ;;  %v7924_v39 = vrot.slane %v7066_v41, 3  ;;  %v7928_v32 = vld [vmem:[#allocation5_spill] sm:$0xff] }
 0x1fc   :  { %v2929_v63 = vmul.f32 %v7921_v2, %v7192_v31  ;;  %v7268_v15 = vsel %vm2325_vm4, %v6687_v34, %v3168_v40  ;;  %v7271_v26 = vadd.f32 %v2979_v35, %v2958_v36  ;;  %v7274_v23 = vmul.f32 %v3179_v38, %v7176_v28 }
 0x1fd   :  { %v7257_v51 = vadd.f32 %v7154_v11, %v7922_v5  ;;  %v7262_v22 = vsel %vm2327_vm5, %v2606_v59, %v7923_v14  ;;  %v2741_v30 = vadd.f32 %v2734_v50, %v7924_v39  ;;  %7925 = vst [vmem:[#allocation23_spill] sm:$0xff] %v7268_v15  ;;  %v2851_v11 = vrot.slane %v2837_v42, 2  ;;  %v2487_v1 = vld [vmem:[#allocation1 + $0x4] ss:$9 sm:$0xff]  ;;  %v7279_v50 = vpop.f32.mrf.mxu1  ;;  %v7302_v14 = vpop.f32.mrf.mxu2 }
 0x1fe   :  { %v7797_v41 = vrot.slane %v7192_v31, 3  ;;  %v7926_v34 = vrot.slane %v6509_v47, 7  ;;  %4695 = vst.msk [vmem:[%s7757_s5 + $0x1c] ss:$4 sm:$0x7f] %vm7197_vm8, %v2487_v1  ;;  %v2943_v20 = vrot.slane %v2929_v63, 1 }
 0x1ff   :  { %v2865_v36 = vadd.f32 %v2851_v11, %v2816_v29  ;;  %v7794_v42 = vrot.slane %v6528_v56, 1  ;;  %v7927_v54 = vrot.slane %v6788_v43, 6  ;;  %2751 = vst [vmem:[#allocation1] sm:$0xff] %v7928_v32  ;;  %v7929_v40 = vrot.slane %v6436_v55, 5  ;;  %v7931_v39 = vld [vmem:[#allocation4_spill] sm:$0xff]  ;;  %v7932_v32 = vld [vmem:[#allocation11_spill] sm:$0xff] }
 0x200   :  { %v2504_v21 = vmul.f32 %v7926_v34, %v7252_v57  ;;  %v7930_v2 = vrot.slane %v6680_v45, 3  ;;  %v2497_v29 = vmul.f32 %v7252_v57, %v6453_v9  ;;  %2752 = vst [vmem:[#allocation1 + $0x9] sm:$0xff] %v7931_v39  ;;  %v3026_v11 = vrot.slane %v6396_v4, 2 }
 0x201   :  { %v2539_v35 = vmul.f32 %v7927_v54, %v7252_v57  ;;  %v2922_v38 = vmul.f32 %v7929_v40, %v7192_v31  ;;  %v3061_v1 = vmul.f32 %v7794_v42, %v7279_v50  ;;  %v3096_v34 = vmul.f32 %v7279_v50, %v6604_v24  ;;  %2753 = vst [vmem:[#allocation1 + $0x12] sm:$0xff] %v7932_v32 }
 0x202   :  { %v2964_v5 = vmul.f32 %v7930_v2, %v7192_v31  ;;  %v2518_v63 = vrot.slane %v2504_v21, 1  ;;  %v7795_v54 = vrot.slane %v6509_v47, 4  ;;  %v7796_v21 = vrot.slane %v6453_v9, 5  ;;  %2754 = vst [vmem:[#allocation1 + $0x1b] sm:$0xff] %v7091_v10 }
 0x203   :  { %v2553_v2 = vrot.slane %v2539_v35, 2  ;;  %v7798_v7 = vrot.slane %v6788_v43, 3  ;;  %v2893_v39 = vadd.f32 %v7797_v41, %v2865_v36  ;;  %v2957_v59 = vadd.f32 %v2943_v20, %v2922_v38  ;;  %2755 = vst [vmem:[#allocation1 + $0x24] sm:$0xff] %v2741_v30 }
 0x204   :  { %v2532_v40 = vadd.f32 %v2518_v63, %v2497_v29  ;;  %v2659_v42 = vmul.f32 %v7795_v54, %v7252_v57  ;;  %v7933_v58 = vrot.slane %v6497_v46, 1  ;;  %v2581_v29 = vrot.slane %v7252_v57, 3  ;;  %2756 = vst [vmem:[#allocation1 + $0x2d] sm:$0xff] %v7126_v37 }
 0x205   :  { %v2638_v10 = vmul.f32 %v7796_v21, %v7252_v57  ;;  %v2708_v36 = vmul.f32 %v7798_v7, %v7252_v57  ;;  %v7934_v38 = vrot.slane %v6393_v3, 2  ;;  %v3366_v30 = vmul.f32 %v7302_v14, %v6581_v8 }
 0x206   :  { %v3331_v32 = vmul.f32 %v7933_v58, %v7302_v14  ;;  %v2567_v35 = vadd.f32 %v2553_v2, %v2532_v40  ;;  %v2673_v20 = vrot.slane %v2659_v42, 1  ;;  %v3075_v40 = vrot.slane %v3061_v1, 1 }
 0x207   :  { %v3324_v63 = vmul.f32 %v7934_v38, %v7302_v14  ;;  %v3202_v2 = vrot.slane %v6528_v56, 5  ;;  %v2722_v61 = vrot.slane %v2708_v36, 2  ;;  %v3380_v7 = vrot.slane %v3366_v30, 2  ;;  %v7354_v30 = vpop.f32.mrf.mxu0 }
 0x208   :  { %v3345_v58 = vrot.slane %v3331_v32, 1  ;;  %v2595_v54 = vadd.f32 %v2581_v29, %v2567_v35  ;;  %v2687_v41 = vadd.f32 %v2673_v20, %v2638_v10  ;;  %v2978_v37 = vrot.slane %v2964_v5, 2 }
 0x209   :  { %v3040_v42 = vmul.f32 %v3026_v11, %v7279_v50  ;;  %v3216_v32 = vmul.f32 %v3202_v2, %v7279_v50  ;;  %v3181_v19 = vrot.slane %v6396_v4, 6  ;;  %v3251_v1 = vrot.slane %v6604_v24, 4 }
 0x20a   :  { %v3359_v57 = vadd.f32 %v3345_v58, %v3324_v63  ;;  %v2608_v38 = vrot.slane %v2595_v54, 2  ;;  %v2736_v15 = vadd.f32 %v2722_v61, %v2687_v41  ;;  %v2906_v28 = vrot.slane %v2893_v39, 4  ;;  %v2152_v39 = vpop.f32.mrf.mxu3 }
 0x20b   :  { %v2992_v21 = vadd.f32 %v2978_v37, %v2957_v59  ;;  %v3089_v10 = vadd.f32 %v3075_v40, %v3040_v42  ;;  %v7348_v5 = vmul.f32 %v3251_v1, %v7279_v50  ;;  %v7935_v54 = vrot.slane %v7302_v14, 3 }
 0x20c   :  { %v3394_v35 = vadd.f32 %v3380_v7, %v3359_v57  ;;  %v2613_v36 = vsel %vm2329_vm6, %v7262_v22, %v2608_v38  ;;  %v2743_v63 = vadd.f32 %v2736_v15, %v2581_v29  ;;  %v7936_v7 = vrot.slane %v7116_v60, 3 }
 0x20d   :  { %v2614_v20 = vsel %vm2331_vm7, %v7106_v0, %v2613_v36  ;;  %v3110_v59 = vrot.slane %v3096_v34, 2  ;;  %v3230_v41 = vrot.slane %v3216_v32, 1  ;;  %v3046_v0 = vrot.slane %v6463_v12, 1  ;;  %v7406_v36 = vpop.f32.mrf.mxu1 }
 0x20e   :  { %v3422_v58 = vadd.f32 %v7935_v54, %v3394_v35  ;;  %v7359_v61 = vadd.f32 %v7271_v26, %v7936_v7  ;;  %4696 = vst.msk [vmem:[%s7757_s5 + $0x38] ss:$4 sm:$0x7f] %vm7197_vm8, %v2614_v20  ;;  %v7937_v22 = vrot.slane %v7240_v25, 1  ;;  %v3195_v26 = vmul.f32 %v3181_v19, %v7279_v50 }
 0x20f   :  { %2757 = vst [vmem:[#allocation1 + $0x36] sm:$0xff] %v2743_v63  ;;  %v7938_v29 = vrot.slane %v7230_v53, 3  ;;  %v7939_v2 = vrot.slane %v7192_v31, 3  ;;  %v7381_v37 = vadd.f32 %v3110_v59, %v3089_v10  ;;  %v3060_v25 = vmul.f32 %v3046_v0, %v7354_v30  ;;  %v7941_v31 = vld [vmem:[#allocation9_spill] sm:$0xff] }
 0x210   :  { %v7370_v15 = vadd.f32 %v7937_v22, %v7274_v23  ;;  %v3435_v34 = vrot.slane %v3422_v58, 5  ;;  %v7940_v19 = vrot.slane %v7030_v52, 6  ;;  %v7801_v53 = vrot.slane %v6436_v55, 2  ;;  %v7947_v23 = vld [vmem:[#allocation6_spill] sm:$0xff] }
 0x211   :  { %v7377_v40 = vsel %vm2327_vm5, %v2906_v28, %v7938_v29  ;;  %v2999_v57 = vadd.f32 %v2992_v21, %v7939_v2  ;;  %v3095_v28 = vmul.f32 %v7354_v30, %v6680_v45  ;;  %v7393_v32 = vadd.f32 %v3230_v41, %v3195_v26 }
 0x212   :  { %v3440_v42 = vsel %vm2323_vm3, %v7940_v19, %v3435_v34  ;;  %v2769_v38 = vrot.slane %v6453_v9, 1  ;;  %v2790_v1 = vmul.f32 %v2152_v39, %v6509_v47  ;;  %v3039_v52 = vmul.f32 %v7801_v53, %v7354_v30  ;;  %v7946_v53 = vld [vmem:[#allocation8_spill] sm:$0xff] }
 0x213   :  { %v7397_v21 = vsel %vm2325_vm4, %v7941_v31, %v3440_v42  ;;  %v3137_v35 = vrot.slane %v7354_v30, 3  ;;  %v3180_v10 = vrot.slane %v6436_v55, 6  ;;  %v2825_v20 = vrot.slane %v6788_v43, 7 }
 0x214   :  { %v3074_v63 = vrot.slane %v3060_v25, 1  ;;  %v2783_v54 = vmul.f32 %v2769_v38, %v2152_v39  ;;  %v2804_v58 = vrot.slane %v2790_v1, 1  ;;  %v7942_v7 = vrot.slane %v6509_v47, 4 }
 0x215   :  { %v3109_v41 = vrot.slane %v3095_v28, 2  ;;  %v3201_v22 = vrot.slane %v6463_v12, 5  ;;  %v2839_v26 = vmul.f32 %v2825_v20, %v2152_v39  ;;  %v7943_v34 = vrot.slane %v6788_v43, 3 }
 0x216   :  { %v2931_v59 = vmul.f32 %v7942_v7, %v2152_v39  ;;  %v2759_v2 = vld [vmem:[#allocation1 + $0x4] ss:$9 sm:$0xff]  ;;  %v7944_v19 = vrot.slane %v6528_v56, 1  ;;  %v2818_v31 = vadd.f32 %v2804_v58, %v2783_v54  ;;  %v7945_v25 = vrot.slane %v6453_v9, 5 }
 0x217   :  { %v2966_v29 = vmul.f32 %v7943_v34, %v2152_v39  ;;  %4697 = vst.msk [vmem:[%s7757_s5 + $0x1] ss:$4 sm:$0x7f] %vm7197_vm8, %v2759_v2  ;;  %v3194_v28 = vmul.f32 %v3180_v10, %v7354_v30  ;;  %v3215_v20 = vmul.f32 %v3201_v22, %v7354_v30  ;;  %v3250_v7 = vrot.slane %v6680_v45, 4 }
 0x218   :  { %v3333_v42 = vmul.f32 %v7944_v19, %v7406_v36  ;;  %v2924_v38 = vmul.f32 %v7945_v25, %v2152_v39  ;;  %v2945_v1 = vrot.slane %v2931_v59, 1  ;;  %v2853_v34 = vrot.slane %v2839_v26, 2  ;;  %3009 = vst [vmem:[#allocation1] sm:$0xff] %v7946_v53  ;;  %v7431_v25 = vpop.f32.mrf.mxu2 }
 0x219   :  { %v3088_v54 = vadd.f32 %v3074_v63, %v3039_v52  ;;  %v3326_v58 = vmul.f32 %v3026_v11, %v7406_v36  ;;  %v2980_v19 = vrot.slane %v2966_v29, 2  ;;  %3010 = vst [vmem:[#allocation1 + $0x9] sm:$0xff] %v7947_v23  ;;  %v2881_v10 = vrot.slane %v2152_v39, 3 }
 0x21a   :  { %v2959_v59 = vadd.f32 %v2945_v1, %v2924_v38  ;;  %v2867_v2 = vadd.f32 %v2853_v34, %v2818_v31  ;;  %v3472_v22 = vrot.slane %v6497_v46, 6  ;;  %v3617_v60 = vrot.slane %v6497_v46, 2  ;;  %3011 = vst [vmem:[#allocation1 + $0x12] sm:$0xff] %v6954_v13  ;;  %v7559_v46 = vpop.f32.mrf.mxu1 }
 0x21b   :  { %v3347_v53 = vrot.slane %v3333_v42, 1  ;;  %v3368_v52 = vmul.f32 %v7406_v36, %v6604_v24  ;;  %v3666_v11 = vrot.slane %v6581_v8, 1  ;;  %3012 = vst [vmem:[#allocation1 + $0x1b] sm:$0xff] %v7257_v51  ;;  %v3596_v23 = vrot.slane %v6393_v3, 3 }
 0x21c   :  { %v2994_v63 = vadd.f32 %v2980_v19, %v2959_v59  ;;  %v2895_v26 = vadd.f32 %v2881_v10, %v2867_v2  ;;  %v3486_v39 = vmul.f32 %v3472_v22, %v7302_v14  ;;  %v3631_v29 = vmul.f32 %v3617_v60, %v7431_v25  ;;  %3013 = vst [vmem:[#allocation1 + $0x24] sm:$0xff] %v2999_v57 }
 0x21d   :  { %v3123_v13 = vadd.f32 %v3109_v41, %v3088_v54  ;;  %v3229_v42 = vrot.slane %v3215_v20, 1  ;;  %v3680_v38 = vmul.f32 %v3666_v11, %v7431_v25  ;;  %3014 = vst [vmem:[#allocation1 + $0x2d] sm:$0xff] %v7359_v61  ;;  %v3264_v1 = vmul.f32 %v3250_v7, %v7354_v30  ;;  %v7453_v41 = vpop.f32.mrf.mxu0 }
 0x21e   :  { %v3001_v31 = vadd.f32 %v2994_v63, %v2881_v10  ;;  %v2908_v51 = vrot.slane %v2895_v26, 2  ;;  %v3610_v34 = vmul.f32 %v3596_v23, %v7431_v25  ;;  %v3645_v59 = vrot.slane %v3631_v29, 1 }
 0x21f   :  { %v3361_v19 = vadd.f32 %v3347_v53, %v3326_v58  ;;  %v7806_v2 = vrot.slane %v6393_v3, 7  ;;  %v7805_v60 = vrot.slane %v6581_v8, 5  ;;  %v7802_v57 = vrot.slane %v7431_v25, 3 }
 0x220   :  { %3015 = vst [vmem:[#allocation1 + $0x36] sm:$0xff] %v3001_v31  ;;  %v2913_v20 = vsel %vm2329_vm6, %v7377_v40, %v2908_v51  ;;  %v3500_v61 = vrot.slane %v3486_v39, 1  ;;  %v3659_v54 = vadd.f32 %v3645_v59, %v3610_v34  ;;  %v3694_v7 = vrot.slane %v3680_v38, 2 }
 0x221   :  { %v3151_v10 = vadd.f32 %v3137_v35, %v3123_v13  ;;  %v3243_v63 = vadd.f32 %v3229_v42, %v3194_v28  ;;  %v3382_v58 = vrot.slane %v3368_v52, 2  ;;  %v2914_v53 = vsel %vm2331_vm7, %v7130_v62, %v2913_v20 }
 0x222   :  { %4698 = vst.msk [vmem:[%s7757_s5 + $0x1d] ss:$4 sm:$0x7f] %vm7197_vm8, %v2914_v53  ;;  %v3465_v40 = vmul.f32 %v7806_v2, %v7302_v14  ;;  %v3535_v11 = vmul.f32 %v7805_v60, %v7302_v14  ;;  %v3708_v26 = vadd.f32 %v3694_v7, %v3659_v54  ;;  %v3332_v28 = vmul.f32 %v3046_v0, %v7453_v41 }
 0x223   :  { %v7948_v62 = vrot.slane %v7279_v50, 3  ;;  %v3278_v39 = vrot.slane %v3264_v1, 2  ;;  %v3396_v23 = vadd.f32 %v3382_v58, %v3361_v19  ;;  %v3410_v29 = vrot.slane %v7406_v36, 3 }
 0x224   :  { %v7949_v13 = vrot.slane %v6942_v33, 1  ;;  %v7950_v31 = vrot.slane %v6430_v44, 6  ;;  %v3514_v51 = vadd.f32 %v3500_v61, %v3465_v40  ;;  %v3736_v0 = vadd.f32 %v7802_v57, %v3708_v26  ;;  %v7958_v26 = vld [vmem:[#allocation22_spill] sm:$0xff] }
 0x225   :  { %v3152_v52 = vadd.f32 %v7948_v62, %v7381_v37  ;;  %v3748_v37 = vrot.slane %v7237_v18, 6  ;;  %v7951_v1 = vrot.slane %v7243_v27, 2  ;;  %v7952_v33 = vrot.slane %v7348_v5, 2  ;;  %v7954_v18 = vld [vmem:[#allocation2_spill] sm:$0xff] }
 0x226   :  { %v7482_v42 = vadd.f32 %v7949_v13, %v6984_v16  ;;  %v7487_v38 = vmul.f32 %v7950_v31, %v7061_v17  ;;  %v3292_v59 = vadd.f32 %v3278_v39, %v3243_v63  ;;  %v3164_v19 = vrot.slane %v3151_v10, 4  ;;  %v7961_v39 = vld [vmem:[#allocation14_spill] sm:$0xff] }
 0x227   :  { %v3291_v34 = vadd.f32 %v7951_v1, %v7370_v15  ;;  %v3293_v16 = vadd.f32 %v7952_v33, %v7393_v32  ;;  %v3017_v20 = vld [vmem:[#allocation1 + $0x4] ss:$9 sm:$0xff]  ;;  %v3549_v44 = vrot.slane %v3535_v11, 2  ;;  %v3749_v54 = vrot.slane %v3736_v0, 5  ;;  %v7541_v33 = vpop.f32.mrf.mxu3 }
 0x228   :  { %v3346_v7 = vrot.slane %v3332_v28, 1  ;;  %v7953_v61 = vrot.slane %v6905_v48, 3  ;;  %v7955_v53 = vrot.slane %v7954_v18, 7  ;;  %v3165_v15 = vrot.slane %v3152_v52, 3  ;;  %v7956_v48 = vld [vmem:[#allocation12_spill] sm:$0xff]  ;;  %v7960_v52 = vld [vmem:[#allocation10_spill] sm:$0xff] }
 0x229   :  { %v7510_v5 = vadd.f32 %v3410_v29, %v3396_v23  ;;  %4699 = vst.msk [vmem:[%s7757_s5 + $0x39] ss:$4 sm:$0x7f] %vm7197_vm8, %v3017_v20  ;;  %v3754_v32 = vsel %vm2323_vm3, %v3748_v37, %v3749_v54  ;;  %v7957_v10 = vrot.slane %v6436_v55, 2  ;;  %v3367_v40 = vmul.f32 %v7453_v41, %v6680_v45  ;;  %v7963_v1 = vld [vmem:[#allocation21_spill] sm:$0xff] }
 0x22a   :  { %v7501_v58 = vadd.f32 %v7080_v6, %v7953_v61  ;;  %v7506_v27 = vmul.f32 %v7955_v53, %v7061_v17  ;;  %3309 = vst [vmem:[#allocation1] sm:$0xff] %v7956_v48  ;;  %v3563_v6 = vadd.f32 %v3549_v44, %v3514_v51  ;;  %v7959_v28 = vrot.slane %v7958_v26, 3 }
 0x22b   :  { %v3325_v63 = vmul.f32 %v7957_v10, %v7453_v41  ;;  %3310 = vst [vmem:[#allocation1 + $0x9] sm:$0xff] %v7960_v52  ;;  %v7530_v23 = vsel %vm2325_vm4, %v7961_v39, %v3754_v32  ;;  %v3474_v13 = vrot.slane %v6528_v56, 6  ;;  %v7962_v31 = vrot.slane %v7279_v50, 3 }
 0x22c   :  { %v3298_v62 = vadd.f32 %v3291_v34, %v7959_v28  ;;  %v7536_v0 = vsel %vm2327_vm5, %v3164_v19, %v3165_v15  ;;  %v3299_v37 = vadd.f32 %v3292_v59, %v3137_v35  ;;  %3311 = vst [vmem:[#allocation1 + $0x12] sm:$0xff] %v7963_v1  ;;  %v3437_v20 = vrot.slane %v7510_v5, 3 }
 0x22d   :  { %v3300_v51 = vadd.f32 %v3293_v16, %v7962_v31  ;;  %v3360_v34 = vadd.f32 %v3346_v7, %v3325_v63  ;;  %v7547_v44 = vmul.f32 %v3472_v22, %v7431_v25  ;;  %v7804_v50 = vrot.slane %v6396_v4, 7 }
 0x22e   :  { %3312 = vst [vmem:[#allocation1 + $0x1b] sm:$0xff] %v3298_v62  ;;  %v3488_v30 = vmul.f32 %v3474_v13, %v7406_v36  ;;  %v7964_v35 = vrot.slane %v7302_v14, 3  ;;  %v3381_v59 = vrot.slane %v3367_v40, 2  ;;  %v3409_v19 = vrot.slane %v7453_v41, 3 }
 0x22f   :  { %3313 = vst [vmem:[#allocation1 + $0x24] sm:$0xff] %v3299_v37  ;;  %v3048_v54 = vrot.slane %v6509_v47, 1  ;;  %v3467_v22 = vmul.f32 %v7804_v50, %v7406_v36  ;;  %v7803_v7 = vrot.slane %v6604_v24, 5  ;;  %v3598_v61 = vrot.slane %v6396_v4, 3 }
 0x230   :  { %v7555_v16 = vadd.f32 %v3563_v6, %v7964_v35  ;;  %3314 = vst [vmem:[#allocation1 + $0x2d] sm:$0xff] %v3300_v51  ;;  %v3619_v14 = vrot.slane %v6528_v56, 2  ;;  %v3395_v18 = vadd.f32 %v3381_v59, %v3360_v34  ;;  %v3027_v53 = vrot.slane %v6453_v9, 2 }
 0x231   :  { %v3062_v15 = vmul.f32 %v3048_v54, %v7541_v33  ;;  %v3097_v48 = vmul.f32 %v7541_v33, %v6788_v43  ;;  %v3502_v6 = vrot.slane %v3488_v30, 1  ;;  %v3537_v32 = vmul.f32 %v7803_v7, %v7406_v36  ;;  %v7597_v7 = vpop.f32.mrf.mxu3 }
 0x232   :  { %v3203_v10 = vrot.slane %v6509_v47, 5  ;;  %v3252_v63 = vrot.slane %v6788_v43, 4  ;;  %v3612_v40 = vmul.f32 %v3598_v61, %v7559_v46  ;;  %v3633_v26 = vmul.f32 %v3619_v14, %v7559_v46  ;;  %v7589_v14 = vpop.f32.mrf.mxu0 }
 0x233   :  { %v3041_v28 = vmul.f32 %v3027_v53, %v7541_v33  ;;  %v3076_v62 = vrot.slane %v3062_v15, 1  ;;  %v3182_v52 = vrot.slane %v6453_v9, 6  ;;  %v7808_v51 = vrot.slane %v6463_v12, 6 }
 0x234   :  { %v3217_v39 = vmul.f32 %v3203_v10, %v7541_v33  ;;  %v3266_v31 = vmul.f32 %v3252_v63, %v7541_v33  ;;  %v7585_v37 = vadd.f32 %v3409_v19, %v3395_v18  ;;  %v3668_v1 = vrot.slane %v6604_v24, 1 }
 0x235   :  { %v3090_v34 = vadd.f32 %v3076_v62, %v3041_v28  ;;  %v3111_v30 = vrot.slane %v3097_v48, 2  ;;  %v3551_v35 = vrot.slane %v3537_v32, 2  ;;  %v3196_v59 = vmul.f32 %v3182_v52, %v7541_v33 }
 0x236   :  { %v3231_v61 = vrot.slane %v3217_v39, 1  ;;  %v3487_v15 = vmul.f32 %v7808_v51, %v7453_v41  ;;  %v3724_v10 = vrot.slane %v7559_v46, 3  ;;  %v3139_v18 = vrot.slane %v7541_v33, 3 }
 0x237   :  { %v3125_v63 = vadd.f32 %v3111_v30, %v3090_v34  ;;  %v3618_v57 = vrot.slane %v6463_v12, 2  ;;  %v3647_v48 = vrot.slane %v3633_v26, 1  ;;  %v3280_v28 = vrot.slane %v3266_v31, 2 }
 0x238   :  { %v3245_v32 = vadd.f32 %v3231_v61, %v3196_v59  ;;  %v7807_v62 = vrot.slane %v6436_v55, 7  ;;  %v3501_v39 = vrot.slane %v3487_v15, 1  ;;  %v7809_v50 = vrot.slane %v6680_v45, 5 }
 0x239   :  { %v3153_v52 = vadd.f32 %v3139_v18, %v3125_v63  ;;  %v3632_v60 = vmul.f32 %v3618_v57, %v7589_v14  ;;  %v3682_v2 = vmul.f32 %v3668_v1, %v7559_v46  ;;  %v3597_v30 = vrot.slane %v6436_v55, 3 }
 0x23a   :  { %v3294_v34 = vadd.f32 %v3280_v28, %v3245_v32  ;;  %v3466_v33 = vmul.f32 %v7807_v62, %v7453_v41  ;;  %v3536_v31 = vmul.f32 %v7809_v50, %v7453_v41  ;;  %v3667_v61 = vrot.slane %v6680_v45, 1  ;;  %v7965_v50 = vld [vmem:[#allocation23_spill] sm:$0xff] }
 0x23b   :  { %v3166_v26 = vrot.slane %v3153_v52, 2  ;;  %v3646_v59 = vrot.slane %v3632_v60, 1  ;;  %v3516_v15 = vadd.f32 %v3502_v6, %v3467_v22  ;;  %v3661_v63 = vadd.f32 %v3647_v48, %v3612_v40 }
 0x23c   :  { %v3301_v57 = vadd.f32 %v3294_v34, %v3139_v18  ;;  %v3611_v1 = vmul.f32 %v3597_v30, %v7589_v14  ;;  %v3515_v28 = vadd.f32 %v3501_v39, %v3466_v33  ;;  %v3681_v62 = vmul.f32 %v3667_v61, %v7589_v14  ;;  %v7629_v30 = vpop.f32.mrf.mxu3 }
 0x23d   :  { %v3171_v32 = vsel %vm2329_vm6, %v7536_v0, %v3166_v26  ;;  %v3334_v52 = vmul.f32 %v3048_v54, %v7597_v7  ;;  %v3436_v11 = vrot.slane %v7585_v37, 4  ;;  %v3696_v51 = vrot.slane %v3682_v2, 2 }
 0x23e   :  { %v3172_v60 = vsel %vm2331_vm7, %v7965_v50, %v3171_v32  ;;  %3315 = vst [vmem:[#allocation1 + $0x36] sm:$0xff] %v3301_v57  ;;  %v3369_v22 = vmul.f32 %v7597_v7, %v6788_v43  ;;  %v3550_v0 = vrot.slane %v3536_v31, 2  ;;  %v3660_v6 = vadd.f32 %v3646_v59, %v3611_v1 }
 0x23f   :  { %4700 = vst.msk [vmem:[%s7757_s5 + $0x2] ss:$4 sm:$0x7f] %vm7197_vm8, %v3172_v60  ;;  %v3327_v54 = vmul.f32 %v3027_v53, %v7597_v7  ;;  %v3348_v40 = vrot.slane %v3334_v52, 1  ;;  %v3565_v37 = vadd.f32 %v3551_v35, %v3516_v15  ;;  %v3710_v2 = vadd.f32 %v3696_v51, %v3661_v63 }
 0x240   :  { %v3475_v18 = vrot.slane %v6509_v47, 6  ;;  %v3524_v50 = vrot.slane %v6788_v43, 5  ;;  %v3564_v48 = vadd.f32 %v3550_v0, %v3515_v28  ;;  %v3695_v39 = vrot.slane %v3681_v62, 2 }
 0x241   :  { %v3362_v34 = vadd.f32 %v3348_v40, %v3327_v54  ;;  %v3383_v33 = vrot.slane %v3369_v22, 2  ;;  %v3454_v26 = vrot.slane %v6453_v9, 7  ;;  %v3620_v51 = vrot.slane %v6509_v47, 2 }
 0x242   :  { %v3489_v31 = vmul.f32 %v3475_v18, %v7597_v7  ;;  %v3538_v53 = vmul.f32 %v3524_v50, %v7597_v7  ;;  %v3709_v35 = vadd.f32 %v3695_v39, %v3660_v6  ;;  %v3411_v61 = vrot.slane %v7597_v7, 3  ;;  %v7966_v39 = vld [vmem:[#allocation20_spill] sm:$0xff] }
 0x243   :  { %v3397_v59 = vadd.f32 %v3383_v33, %v3362_v34  ;;  %v3669_v62 = vrot.slane %v6788_v43, 1  ;;  %v3468_v15 = vmul.f32 %v3454_v26, %v7597_v7  ;;  %v3599_v57 = vrot.slane %v6453_v9, 3 }
 0x244   :  { %v3503_v63 = vrot.slane %v3489_v31, 1  ;;  %v3634_v1 = vmul.f32 %v3620_v51, %v7629_v30  ;;  %v3571_v28 = vadd.f32 %v3564_v48, %v3409_v19  ;;  %v3723_v47 = vrot.slane %v7589_v14, 3 }
 0x245   :  { %v3317_v32 = vld [vmem:[#allocation1 + $0x4] ss:$9 sm:$0xff]  ;;  %v3425_v52 = vadd.f32 %v3411_v61, %v3397_v59  ;;  %v3683_v60 = vmul.f32 %v3669_v62, %v7629_v30  ;;  %v3552_v22 = vrot.slane %v3538_v53, 2  ;;  %v3613_v0 = vmul.f32 %v3599_v57, %v7629_v30 }
 0x246   :  { %4701 = vst.msk [vmem:[%s7757_s5 + $0x1e] ss:$4 sm:$0x7f] %vm7197_vm8, %v3317_v32  ;;  %v3517_v7 = vadd.f32 %v3503_v63, %v3468_v15  ;;  %v3648_v6 = vrot.slane %v3634_v1, 1  ;;  %v3442_v41 = vsel %vm2327_vm5, %v3436_v11, %v3437_v20  ;;  %v3774_v19 = vmul.f32 %v3474_v13, %v7559_v46  ;;  %v7968_v13 = vld [vmem:[#allocation15_spill] sm:$0xff]  ;;  %v7973_v63 = vld [vmem:[#allocation17_spill] sm:$0xff] }
 0x247   :  { %3585 = vst [vmem:[#allocation1 + $0x24] sm:$0xff] %v3571_v28  ;;  %v3737_v54 = vadd.f32 %v3723_v47, %v3709_v35  ;;  %v3438_v40 = vrot.slane %v3425_v52, 2  ;;  %v3572_v48 = vadd.f32 %v3565_v37, %v3410_v29  ;;  %v3697_v31 = vrot.slane %v3683_v60, 2  ;;  %v7970_v35 = vld [vmem:[#allocation16_spill] sm:$0xff]  ;;  %v7972_v62 = vld [vmem:[#allocation19_spill] sm:$0xff] }
 0x248   :  { %3581 = vst [vmem:[#allocation1] sm:$0xff] %v7966_v39  ;;  %v3566_v34 = vadd.f32 %v3552_v22, %v3517_v7  ;;  %v3662_v33 = vadd.f32 %v3648_v6, %v3613_v0  ;;  %v3738_v5 = vadd.f32 %v3724_v10, %v3710_v2  ;;  %v7967_v56 = vrot.slane %v6463_v12, 6  ;;  %v7969_v2 = vld [vmem:[#allocation18_spill] sm:$0xff] }
 0x249   :  { %3582 = vst [vmem:[#allocation1 + $0x9] sm:$0xff] %v7968_v13  ;;  %v3443_v20 = vsel %vm2329_vm6, %v3442_v41, %v3438_v40  ;;  %v3775_v53 = vmul.f32 %v3475_v18, %v7629_v30  ;;  %v3725_v51 = vrot.slane %v7629_v30, 3  ;;  %v7971_v59 = vrot.slane %v7970_v35, 1  ;;  %v7986_v35 = vld [vmem:[#allocation7_spill] sm:$0xff] }
 0x24a   :  { %v3773_v11 = vmul.f32 %v7967_v56, %v7589_v14  ;;  %3583 = vst [vmem:[#allocation1 + $0x12] sm:$0xff] %v7501_v58  ;;  %v3444_v36 = vsel %vm2331_vm7, %v7397_v21, %v3443_v20  ;;  %v3573_v29 = vadd.f32 %v3566_v34, %v3411_v61  ;;  %v3711_v37 = vadd.f32 %v3697_v31, %v3662_v33  ;;  %v7976_v61 = vld [vmem:[#allocation3_spill] sm:$0xff] }
 0x24b   :  { %v3798_v12 = vadd.f32 %v7971_v59, %v7969_v2  ;;  %v3819_v15 = vrot.slane %v7972_v62, 2  ;;  %v7974_v57 = vrot.slane %v7973_v63, 2  ;;  %v3750_v18 = vrot.slane %v3737_v54, 4  ;;  %3584 = vst [vmem:[#allocation1 + $0x1b] sm:$0xff] %v7555_v16 }
 0x24c   :  { %v7975_v21 = vrot.slane %v7487_v38, 1  ;;  %v7977_v32 = vrot.slane %v7976_v61, 5  ;;  %v3786_v52 = vrot.slane %v7547_v44, 1  ;;  %3586 = vst [vmem:[#allocation1 + $0x2d] sm:$0xff] %v3572_v48  ;;  %v3739_v60 = vadd.f32 %v3725_v51, %v3711_v37 }
 0x24d   :  { %v3832_v1 = vadd.f32 %v7974_v57, %v7482_v42  ;;  %v7978_v7 = vrot.slane %v6393_v3, 7  ;;  %v3751_v42 = vrot.slane %v3738_v5, 3  ;;  %v3787_v0 = vrot.slane %v3773_v11, 1  ;;  %4702 = vst.msk [vmem:[%s7757_s5 + $0x3a] ss:$4 sm:$0x7f] %vm7197_vm8, %v3444_v36 }
 0x24e   :  { %v3799_v58 = vadd.f32 %v7975_v21, %v7506_v27  ;;  %v3806_v28 = vmul.f32 %v7977_v32, %v7061_v17  ;;  %v3789_v38 = vrot.slane %v3775_v53, 1  ;;  %v7979_v27 = vrot.slane %v6581_v8, 5  ;;  %3587 = vst [vmem:[#allocation1 + $0x36] sm:$0xff] %v3573_v29  ;;  %v7984_v53 = vld [vmem:[#allocation13_spill] sm:$0xff] }
 0x24f   :  { %v3765_v22 = vmul.f32 %v7978_v7, %v7431_v25  ;;  %v3788_v44 = vrot.slane %v3774_v19, 1  ;;  %v7980_v6 = vrot.slane %v6436_v55, 7  ;;  %v3752_v3 = vrot.slane %v3739_v60, 2 }
 0x250   :  { %v3807_v16 = vmul.f32 %v7979_v27, %v7431_v25  ;;  %v3756_v54 = vsel %vm2327_vm5, %v3750_v18, %v3751_v42  ;;  %v7981_v40 = vrot.slane %v6680_v45, 5  ;;  %v3768_v39 = vmul.f32 %v3454_v26, %v7629_v30 }
 0x251   :  { %v3766_v41 = vmul.f32 %v7980_v6, %v7589_v14  ;;  %v3810_v8 = vmul.f32 %v3524_v50, %v7629_v30  ;;  %v3800_v19 = vadd.f32 %v3786_v52, %v3765_v22  ;;  %v7982_v55 = vrot.slane %v6396_v4, 7 }
 0x252   :  { %v3808_v48 = vmul.f32 %v7981_v40, %v7589_v14  ;;  %v7983_v33 = vrot.slane %v6604_v24, 5  ;;  %v3757_v45 = vsel %vm2329_vm6, %v3756_v54, %v3752_v3  ;;  %v3820_v5 = vrot.slane %v3806_v28, 2 }
 0x253   :  { %v3767_v34 = vmul.f32 %v7982_v55, %v7559_v46  ;;  %v3801_v56 = vadd.f32 %v3787_v0, %v3766_v41  ;;  %v3758_v9 = vsel %vm2331_vm7, %v7530_v23, %v3757_v45  ;;  %v3803_v26 = vadd.f32 %v3789_v38, %v3768_v39 }
 0x254   :  { %v3809_v31 = vmul.f32 %v7983_v33, %v7559_v46  ;;  %v3833_v11 = vadd.f32 %v3819_v15, %v3798_v12  ;;  %v3821_v43 = vrot.slane %v3807_v16, 2  ;;  %4704 = vst.msk [vmem:[%s7757_s5 + $0x1f] ss:$4 sm:$0x7f] %vm7197_vm8, %v3758_v9  ;;  %v3834_v4 = vadd.f32 %v3820_v5, %v3799_v58 }
 0x255   :  { %v3802_v50 = vadd.f32 %v3788_v44, %v3767_v34  ;;  %v3822_v24 = vrot.slane %v3808_v48, 2  ;;  %v3824_v30 = vrot.slane %v3810_v8, 2  ;;  %v7985_v36 = vrot.slane %v7984_v53, 3  ;;  %v3589_v23 = vld [vmem:[#allocation1 + $0x4] ss:$9 sm:$0xff] }
 0x256   :  { %v3835_v13 = vadd.f32 %v3821_v43, %v3800_v19  ;;  %v3823_v20 = vrot.slane %v3809_v31, 2  ;;  %v7987_v59 = vrot.slane %v7986_v35, 3  ;;  %4703 = vst.msk [vmem:[%s7757_s5 + $0x3] ss:$4 sm:$0x7f] %vm7197_vm8, %v3589_v23  ;;  %v7988_v15 = vrot.slane %v7061_v17, 3 }
 0x257   :  { %v3839_v29 = vadd.f32 %v3832_v1, %v7985_v36  ;;  %v3836_v37 = vadd.f32 %v3822_v24, %v3801_v56  ;;  %v3838_v2 = vadd.f32 %v3824_v30, %v3803_v26  ;;  %v7989_v57 = vrot.slane %v7431_v25, 3 }
 0x258   :  { %v3840_v12 = vadd.f32 %v3833_v11, %v7987_v59  ;;  %v3837_v62 = vadd.f32 %v3823_v20, %v3802_v50  ;;  %v3841_v63 = vadd.f32 %v3834_v4, %v7988_v15 }
 0x259   :  { %3853 = vst [vmem:[#allocation1] sm:$0xff] %v3839_v29  ;;  %v3842_v1 = vadd.f32 %v3835_v13, %v7989_v57  ;;  %v3843_v18 = vadd.f32 %v3836_v37, %v3723_v47  ;;  %v3845_v21 = vadd.f32 %v3838_v2, %v3725_v51 }
 0x25a   :  { %3854 = vst [vmem:[#allocation1 + $0x9] sm:$0xff] %v3840_v12  ;;  %v3844_v58 = vadd.f32 %v3837_v62, %v3724_v10 }
 0x25b   :  { %3855 = vst [vmem:[#allocation1 + $0x12] sm:$0xff] %v3841_v63 }
 0x25c   :  { %3856 = vst [vmem:[#allocation1 + $0x1b] sm:$0xff] %v3842_v1 }
 0x25d   :  { %3857 = vst [vmem:[#allocation1 + $0x24] sm:$0xff] %v3843_v18 }
 0x25e   :  { %3858 = vst [vmem:[#allocation1 + $0x2d] sm:$0xff] %v3844_v58 }
 0x25f   :  { %3859 = vst [vmem:[#allocation1 + $0x36] sm:$0xff] %v3845_v21 }
 0x266   :  { %v3861_v61 = vld [vmem:[#allocation1 + $0x4] ss:$9 sm:$0xff] }
 0x267   :  { %4705 = vst.msk [vmem:[%s7757_s5 + $0x3b] ss:$4 sm:$0x7f] %vm7197_vm8, %v3861_v61 }

</bundles_post_ra>
